<compile_context>
chip_gen: v7x
topology: tpu7x:2x2x1
jax: 0.10.0
libtpu: 0.0.40
codegen_flags: <defaults>
</compile_context>

<pallas_src>
import functools
import math

import jax
import jax.numpy as jnp
from jax.experimental import pallas as pl
from jax.experimental.pallas import tpu as pltpu

# ---------------- small synthetic ViT config ----------------
IMG = 16            # image spatial size
PATCH = 4           # patch size (conv kernel == stride == PATCH)
CIN = 3             # input channels
HIDDEN = 32         # hidden size
HEADS = 2
HEAD_DIM = HIDDEN // HEADS
MLP = 64            # intermediate size
LAYERS = 2
NUM_LABELS = 3
PAD_LABELS = 128    # lane-dense classifier width; real labels live in [:NUM_LABELS]
NUM_PATCHES = (IMG // PATCH) ** 2
SEQ = NUM_PATCHES + 1            # +1 for CLS token (17)
SEQ_PAD = 24                     # sublane-aligned sequence slab (multiple of 8)
CPP = CIN * PATCH * PATCH        # flattened patch length
LN_EPS = 1e-12                   # HF ViT layer_norm_eps
ATTN_SCALE = 1.0 / math.sqrt(HEAD_DIM)

_DN_NN = (((1,), (0,)), ((), ()))   # (M,K) @ (K,N)
_DN_NT = (((1,), (1,)), ((), ()))   # (M,K) @ (N,K)^T  (no explicit transpose)


def _mxu(a_bf, b_bf, dims=_DN_NN):
    """MXU matmul on PRE-CAST bf16 operands, f32 accumulation (no hidden casts)."""
    return jax.lax.dot_general(a_bf, b_bf, dimension_numbers=dims,
                               preferred_element_type=jnp.float32)


def _bf16(x):
    return x.astype(jnp.bfloat16)


def _ln(x, g, b):
    """Row-wise layernorm in f32.  var = E[x^2] - mu^2 so the two cross-lane
    reductions depend only on x and can overlap in the XLU."""
    mu = jnp.mean(x, axis=-1, keepdims=True)
    var = jnp.maximum(jnp.mean(x * x, axis=-1, keepdims=True) - mu * mu, 0.0)
    return (x - mu) * jax.lax.rsqrt(var + LN_EPS) * g + b


# ---------------- the single fused kernel (one grid step) ----------------
def _fused_vit_kernel(
    xp_ref, patch_w_ref, patch_b_ref, cls_pos_ref, pos_patches_ref, key_mask_ref,
    ln1_g_ref, ln1_b_ref, wqkv_ref, bqkv_ref, wo_ref, bo_ref,
    ln2_g_ref, ln2_b_ref, w1_ref, b1_ref, w2_ref, b2_ref,
    lnf_g_ref, lnf_b_ref, head_w_ref, head_b_ref,
    out_ref, h_ref, *, batch):

    # ---- stage 0: patch embed + CLS (+pos pre-added on host), pad rows zeroed ----
    emb = _mxu(_bf16(xp_ref[...]), _bf16(patch_w_ref[...])) + patch_b_ref[...]  # (B*NP, H)
    cls_pos = cls_pos_ref[...]                                                  # (1, H)
    pos_patches = pos_patches_ref[...]                                          # (NP, H)
    h_ref[...] = jnp.zeros((batch * SEQ_PAD, HIDDEN), jnp.float32)              # zero pad rows
    for b in range(batch):
        r0 = b * SEQ_PAD                                                        # 8-aligned
        h_ref[pl.ds(r0, 1), :] = cls_pos
        h_ref[pl.ds(r0 + 1, NUM_PATCHES), :] = (
            emb[b * NUM_PATCHES:(b + 1) * NUM_PATCHES, :] + pos_patches)

    # additive key mask: 0 on real keys, -1e30 on the SEQ_PAD-SEQ pad keys
    key_mask = key_mask_ref[...]                                                # (1, SEQ_PAD)

    # ---- LAYERS pre-LN encoder layers (static unroll; weights indexed ref[l]) ----
    for l in range(LAYERS):
        ln1_g, ln1_b = ln1_g_ref[l], ln1_b_ref[l]
        bqkv, bo = bqkv_ref[l], bo_ref[l]
        wqkv_bf = _bf16(wqkv_ref[l])          # cast once per layer
        wo_bf = _bf16(wo_ref[l])

        # LN1 + fused QKV projection on the full (B*SEQ_PAD, H) slab (hoisted).
        h = h_ref[...]
        qkv = _mxu(_bf16(_ln(h, ln1_g, ln1_b)), wqkv_bf) + bqkv                 # (B*S', 3H) f32
        qkv_bf = _bf16(qkv)                                                     # cast once

        # Attention: per-(batch, head) score/softmax/ctx on slices of qkv; the
        # output projection is folded per head (ctx_h @ Wo[h-rows]), no concat.
        for b in range(batch):
            r0 = b * SEQ_PAD
            qkvb = qkv_bf[r0:r0 + SEQ_PAD, :]                                   # (S', 3H) bf16
            acc = None
            for hidx in range(HEADS):
                off = hidx * HEAD_DIM
                qh = qkvb[:, off:off + HEAD_DIM]
                kh = qkvb[:, HIDDEN + off:HIDDEN + off + HEAD_DIM]
                vh = qkvb[:, 2 * HIDDEN + off:2 * HIDDEN + off + HEAD_DIM]
                s = _mxu(qh, kh, dims=_DN_NT) * ATTN_SCALE + key_mask           # (S', S')
                m = jnp.max(s, axis=-1, keepdims=True)
                p = jnp.exp(s - m)
                p = p / jnp.sum(p, axis=-1, keepdims=True)                      # exact div
                ctx = _mxu(_bf16(p), vh)                                        # (S', dh)
                contrib = _mxu(_bf16(ctx), wo_bf[off:off + HEAD_DIM, :])        # fold Wo
                acc = contrib if acc is None else acc + contrib
            h_ref[pl.ds(r0, SEQ_PAD), :] = h[r0:r0 + SEQ_PAD, :] + acc + bo     # residual 1

        # MLP block on the full slab, residual fused in-kernel.
        w1_bf = _bf16(w1_ref[l])
        w2_bf = _bf16(w2_ref[l])
        h2 = h_ref[...]
        # TODO(synk): HF ViT uses exact (erf) GELU; tanh approximation kept here.
        m1 = jax.nn.gelu(
            _mxu(_bf16(_ln(h2, ln2_g_ref[l], ln2_b_ref[l])), w1_bf) + b1_ref[l],
            approximate=True)
        h_ref[...] = h2 + _mxu(_bf16(m1), w2_bf) + b2_ref[l]                    # residual 2

    # ---- head: gather B CLS rows -> one LN -> one matmul -> one softmax ----
    cls_rows = jnp.concatenate(
        [h_ref[pl.ds(b * SEQ_PAD, 1), :] for b in range(batch)], axis=0)        # (B, H)
    logits = _mxu(_bf16(_ln(cls_rows, lnf_g_ref[...], lnf_b_ref[...])),
                  _bf16(head_w_ref[...])) + head_b_ref[...]                     # (B, 128) f32
    mx = jnp.max(logits, axis=-1, keepdims=True)
    e = jnp.exp(logits - mx)                                                    # pad cols -> 0
    out_ref[...] = e / jnp.sum(e, axis=-1, keepdims=True)                       # one dense store


# ---------------- BlockSpec helper ----------------
def _full_spec(shape):
    nd = len(shape)
    # whole array resident in VMEM; single grid step.
    return pl.BlockSpec(shape, lambda l, _nd=nd: (0,) * _nd)


# ---------------- ViewMode.forward: ViT logits -> Softmax(dim=1) ----------------
def view_mode_forward(x_nchw, params):
    B = x_nchw.shape[0]
    # Patchify (glue): NCHW -> (B*NP, C*P*P), flatten order (C, ph, pw) to match
    # PyTorch Conv2d(CIN, HIDDEN, kernel=PATCH, stride=PATCH) weight layout.
    xp = x_nchw.reshape(B, CIN, IMG // PATCH, PATCH, IMG // PATCH, PATCH)
    xp = xp.transpose(0, 2, 4, 1, 3, 5).reshape(B * NUM_PATCHES, CPP)

    # Host-side layout plumbing: pre-add CLS+pos[0], split positional table, and
    # build the additive key mask for the SEQ_PAD-SEQ pad rows.
    cls_pos = params["cls"] + params["pos"][0:1, :]
    pos_patches = params["pos"][1:, :]
    key_mask = jnp.where(jnp.arange(SEQ_PAD) < SEQ, 0.0, -1e30
                         ).astype(jnp.float32).reshape(1, SEQ_PAD)

    in_specs = [
        _full_spec((B * NUM_PATCHES, CPP)),        # xp
        _full_spec((CPP, HIDDEN)),                 # patch_w
        _full_spec((1, HIDDEN)),                   # patch_b
        _full_spec((1, HIDDEN)),                   # cls + pos[0]
        _full_spec((NUM_PATCHES, HIDDEN)),         # pos[1:]
        _full_spec((1, SEQ_PAD)),                  # key mask
        _full_spec((LAYERS, 1, HIDDEN)),           # ln1_g
        _full_spec((LAYERS, 1, HIDDEN)),           # ln1_b
        _full_spec((LAYERS, HIDDEN, 3 * HIDDEN)),  # wqkv (fused Q|K|V)
        _full_spec((LAYERS, 1, 3 * HIDDEN)),       # bqkv
        _full_spec((LAYERS, HIDDEN, HIDDEN)),      # wo
        _full_spec((LAYERS, 1, HIDDEN)),           # bo
        _full_spec((LAYERS, 1, HIDDEN)),           # ln2_g
        _full_spec((LAYERS, 1, HIDDEN)),           # ln2_b
        _full_spec((LAYERS, HIDDEN, MLP)),         # w1
        _full_spec((LAYERS, 1, MLP)),              # b1
        _full_spec((LAYERS, MLP, HIDDEN)),         # w2
        _full_spec((LAYERS, 1, HIDDEN)),           # b2
        _full_spec((1, HIDDEN)),                   # final ln_g
        _full_spec((1, HIDDEN)),                   # final ln_b
        _full_spec((HIDDEN, PAD_LABELS)),          # head_w (zero-padded columns)
        _full_spec((1, PAD_LABELS)),               # head_b (-1e30 on padded columns)
    ]

    probs_padded = pl.pallas_call(
        functools.partial(_fused_vit_kernel, batch=B),
        out_shape=jax.ShapeDtypeStruct((B, PAD_LABELS), jnp.float32),
        grid=(1,),                                 # single step: layers unrolled in-kernel
        in_specs=in_specs,
        out_specs=pl.BlockSpec((B, PAD_LABELS), lambda l: (0, 0)),
        scratch_shapes=[pltpu.VMEM((B * SEQ_PAD, HIDDEN), jnp.float32)],
        compiler_params=pltpu.CompilerParams(
            # Tiny problem: keep on a single TensorCore.  (On v7x with larger
            # batch, a leading "parallel" batch grid axis would use both TCs.)
            dimension_semantics=("arbitrary",)),
    )(xp,
      params["patch_w"], params["patch_b"], cls_pos, pos_patches, key_mask,
      params["ln1_g"], params["ln1_b"], params["wqkv"], params["bqkv"],
      params["wo"], params["bo"], params["ln2_g"], params["ln2_b"],
      params["w1"], params["b1"], params["w2"], params["b2"],
      params["ln_g"], params["ln_b"], params["head_w"], params["head_b"])

    return probs_padded[:, :NUM_LABELS]


# ---------------- deterministic synthetic parameters (pre-stacked) ----------------
def init_params(key):
    keys = iter(jax.random.split(key, 16))

    def nrm(shape, scale=0.02):
        return scale * jax.random.normal(next(keys), shape, dtype=jnp.float32)

    params = {
        # patch embedding == Conv2d(CIN, HIDDEN, kernel=PATCH, stride=PATCH),
        # stored as (CIN*PATCH*PATCH, HIDDEN) matmul weight (C, ph, pw order).
        "patch_w": nrm((CPP, HIDDEN)),
        "patch_b": nrm((1, HIDDEN)),
        "cls": nrm((1, HIDDEN)),
        "pos": nrm((SEQ, HIDDEN)),
        # per-layer weights pre-stacked along a leading LAYERS axis.
        "ln1_g": jnp.ones((LAYERS, 1, HIDDEN), jnp.float32),
        "ln1_b": jnp.zeros((LAYERS, 1, HIDDEN), jnp.float32),
        "wqkv": nrm((LAYERS, HIDDEN, 3 * HIDDEN)),      # [Wq | Wk | Wv]
        "bqkv": nrm((LAYERS, 1, 3 * HIDDEN)),
        "wo": nrm((LAYERS, HIDDEN, HIDDEN)),
        "bo": nrm((LAYERS, 1, HIDDEN)),
        "ln2_g": jnp.ones((LAYERS, 1, HIDDEN), jnp.float32),
        "ln2_b": jnp.zeros((LAYERS, 1, HIDDEN), jnp.float32),
        "w1": nrm((LAYERS, HIDDEN, MLP)),
        "b1": nrm((LAYERS, 1, MLP)),
        "w2": nrm((LAYERS, MLP, HIDDEN)),
        "b2": nrm((LAYERS, 1, HIDDEN)),
        "ln_g": jnp.ones((1, HIDDEN), jnp.float32),
        "ln_b": jnp.zeros((1, HIDDEN), jnp.float32),
    }
    # Classification head padded to 128 lanes (dense stores); padded columns get
    # zero weight and -1e30 bias (f32 add path) so their probability is exactly 0.
    head_w = jnp.zeros((HIDDEN, PAD_LABELS), jnp.float32)
    head_w = head_w.at[:, :NUM_LABELS].set(nrm((HIDDEN, NUM_LABELS)))
    head_b = jnp.full((1, PAD_LABELS), -1e30, jnp.float32)
    head_b = head_b.at[:, :NUM_LABELS].set(0.0)
    params["head_w"] = head_w
    params["head_b"] = head_b
    return params


if __name__ == "__main__":
    key = jax.random.PRNGKey(0)
    kx, kp = jax.random.split(key)
    x = jax.random.normal(kx, (2, CIN, IMG, IMG), dtype=jnp.float32)   # NCHW, like PyTorch
    params = init_params(kp)

    fwd = jax.jit(view_mode_forward)
    probs = jax.block_until_ready(fwd(x, params))

    assert probs.shape == (2, NUM_LABELS)
    assert bool(jnp.all(jnp.isfinite(probs)))
    assert bool(jnp.allclose(jnp.sum(probs, axis=1), 1.0, atol=1e-5))
    print("KERNEL_OK")
</pallas_src>

<mosaic_0001>
module attributes {stable_mosaic.version = 11 : i64} {
  func.func @_fused_vit_kernel(%arg0: i32, %arg1: memref<32x48xf32, #tpu.memory_space<vmem>>, %arg2: memref<48x32xf32, #tpu.memory_space<vmem>>, %arg3: memref<1x32xf32, #tpu.memory_space<vmem>>, %arg4: memref<1x32xf32, #tpu.memory_space<vmem>>, %arg5: memref<16x32xf32, #tpu.memory_space<vmem>>, %arg6: memref<1x24xf32, #tpu.memory_space<vmem>>, %arg7: memref<2x1x32xf32, #tpu.memory_space<vmem>>, %arg8: memref<2x1x32xf32, #tpu.memory_space<vmem>>, %arg9: memref<2x32x96xf32, #tpu.memory_space<vmem>>, %arg10: memref<2x1x96xf32, #tpu.memory_space<vmem>>, %arg11: memref<2x32x32xf32, #tpu.memory_space<vmem>>, %arg12: memref<2x1x32xf32, #tpu.memory_space<vmem>>, %arg13: memref<2x1x32xf32, #tpu.memory_space<vmem>>, %arg14: memref<2x1x32xf32, #tpu.memory_space<vmem>>, %arg15: memref<2x32x64xf32, #tpu.memory_space<vmem>>, %arg16: memref<2x1x64xf32, #tpu.memory_space<vmem>>, %arg17: memref<2x64x32xf32, #tpu.memory_space<vmem>>, %arg18: memref<2x1x32xf32, #tpu.memory_space<vmem>>, %arg19: memref<1x32xf32, #tpu.memory_space<vmem>>, %arg20: memref<1x32xf32, #tpu.memory_space<vmem>>, %arg21: memref<32x128xf32, #tpu.memory_space<vmem>>, %arg22: memref<1x128xf32, #tpu.memory_space<vmem>>, %arg23: memref<2x128xf32, #tpu.memory_space<vmem>>, %arg24: memref<48x32xf32, #tpu.memory_space<vmem>>) attributes {dimension_semantics = [#tpu.dimension_semantics<arbitrary>], iteration_bounds = array<i64: 1>, scalar_prefetch = 0 : i64, scratch_operands = 1 : i64, tpu.core_type = #tpu.core_type<tc>, window_params = [{pipeline_mode = #tpu.pipeline_mode<synchronous>, transform_indices = @transform_0, window_bounds = array<i64: 32, 48>}, {pipeline_mode = #tpu.pipeline_mode<synchronous>, transform_indices = @transform_1, window_bounds = array<i64: 48, 32>}, {pipeline_mode = #tpu.pipeline_mode<synchronous>, transform_indices = @transform_2, window_bounds = array<i64: 1, 32>}, {pipeline_mode = #tpu.pipeline_mode<synchronous>, transform_indices = @transform_3, window_bounds = array<i64: 1, 32>}, {pipeline_mode = #tpu.pipeline_mode<synchronous>, transform_indices = @transform_4, window_bounds = array<i64: 16, 32>}, {pipeline_mode = #tpu.pipeline_mode<synchronous>, transform_indices = @transform_5, window_bounds = array<i64: 1, 24>}, {pipeline_mode = #tpu.pipeline_mode<synchronous>, transform_indices = @transform_6, window_bounds = array<i64: 2, 1, 32>}, {pipeline_mode = #tpu.pipeline_mode<synchronous>, transform_indices = @transform_7, window_bounds = array<i64: 2, 1, 32>}, {pipeline_mode = #tpu.pipeline_mode<synchronous>, transform_indices = @transform_8, window_bounds = array<i64: 2, 32, 96>}, {pipeline_mode = #tpu.pipeline_mode<synchronous>, transform_indices = @transform_9, window_bounds = array<i64: 2, 1, 96>}, {pipeline_mode = #tpu.pipeline_mode<synchronous>, transform_indices = @transform_10, window_bounds = array<i64: 2, 32, 32>}, {pipeline_mode = #tpu.pipeline_mode<synchronous>, transform_indices = @transform_11, window_bounds = array<i64: 2, 1, 32>}, {pipeline_mode = #tpu.pipeline_mode<synchronous>, transform_indices = @transform_12, window_bounds = array<i64: 2, 1, 32>}, {pipeline_mode = #tpu.pipeline_mode<synchronous>, transform_indices = @transform_13, window_bounds = array<i64: 2, 1, 32>}, {pipeline_mode = #tpu.pipeline_mode<synchronous>, transform_indices = @transform_14, window_bounds = array<i64: 2, 32, 64>}, {pipeline_mode = #tpu.pipeline_mode<synchronous>, transform_indices = @transform_15, window_bounds = array<i64: 2, 1, 64>}, {pipeline_mode = #tpu.pipeline_mode<synchronous>, transform_indices = @transform_16, window_bounds = array<i64: 2, 64, 32>}, {pipeline_mode = #tpu.pipeline_mode<synchronous>, transform_indices = @transform_17, window_bounds = array<i64: 2, 1, 32>}, {pipeline_mode = #tpu.pipeline_mode<synchronous>, transform_indices = @transform_18, window_bounds = array<i64: 1, 32>}, {pipeline_mode = #tpu.pipeline_mode<synchronous>, transform_indices = @transform_19, window_bounds = array<i64: 1, 32>}, {pipeline_mode = #tpu.pipeline_mode<synchronous>, transform_indices = @transform_20, window_bounds = array<i64: 32, 128>}, {pipeline_mode = #tpu.pipeline_mode<synchronous>, transform_indices = @transform_21, window_bounds = array<i64: 1, 128>}, {pipeline_mode = #tpu.pipeline_mode<synchronous>, transform_indices = @transform_22, window_bounds = array<i64: 2, 128>}]} {
    %c0 = arith.constant 0 : index
    %c0_0 = arith.constant 0 : index
    %0 = vector.load %arg1[%c0, %c0_0] : memref<32x48xf32, #tpu.memory_space<vmem>>, vector<32x48xf32>
    %1 = arith.truncf %0 : vector<32x48xf32> to vector<32x48xbf16>
    %c0_1 = arith.constant 0 : index
    %c0_2 = arith.constant 0 : index
    %2 = vector.load %arg2[%c0_1, %c0_2] : memref<48x32xf32, #tpu.memory_space<vmem>>, vector<48x32xf32>
    %3 = arith.truncf %2 : vector<48x32xf32> to vector<48x32xbf16>
    %cst = arith.constant dense<0.000000e+00> : vector<32x32xf32>
    %4 = tpu.matmul %1, %3, %cst {dimension_numbers = #tpu.dot_dimension_numbers<[1], [0], [0], [1], [0, 0, 1, 1], [], []>} : vector<32x48xbf16>, vector<48x32xbf16>, vector<32x32xf32> -> vector<32x32xf32>
    %c0_3 = arith.constant 0 : index
    %c0_4 = arith.constant 0 : index
    %5 = vector.load %arg3[%c0_3, %c0_4] : memref<1x32xf32, #tpu.memory_space<vmem>>, vector<1x32xf32>
    %6 = vector.broadcast %5 : vector<1x32xf32> to vector<32x32xf32>
    %7 = arith.addf %4, %6 : vector<32x32xf32>
    %c0_5 = arith.constant 0 : index
    %c0_6 = arith.constant 0 : index
    %8 = vector.load %arg4[%c0_5, %c0_6] : memref<1x32xf32, #tpu.memory_space<vmem>>, vector<1x32xf32>
    %c0_7 = arith.constant 0 : index
    %c0_8 = arith.constant 0 : index
    %9 = vector.load %arg5[%c0_7, %c0_8] : memref<16x32xf32, #tpu.memory_space<vmem>>, vector<16x32xf32>
    %cst_9 = arith.constant 0.000000e+00 : f32
    %10 = vector.broadcast %cst_9 : f32 to vector<48x32xf32>
    %c0_10 = arith.constant 0 : index
    %c0_11 = arith.constant 0 : index
    %11 = vector.load %arg24[%c0_10, %c0_11] : memref<48x32xf32, #tpu.memory_space<vmem>>, vector<48x32xf32>
    tpu.vector_store %arg24[%c0_10, %c0_11], %10 {strides = array<i32>} : memref<48x32xf32, #tpu.memory_space<vmem>>, vector<48x32xf32>,
    %c0_12 = arith.constant 0 : index
    %c0_13 = arith.constant 0 : index
    %12 = vector.load %arg24[%c0_12, %c0_13] : memref<48x32xf32, #tpu.memory_space<vmem>>, vector<1x32xf32>
    tpu.vector_store %arg24[%c0_12, %c0_13], %8 {strides = array<i32>} : memref<48x32xf32, #tpu.memory_space<vmem>>, vector<1x32xf32>,
    %13 = vector.extract_strided_slice %7 {offsets = [0, 0], sizes = [16, 32], strides = [1, 1]} : vector<32x32xf32> to vector<16x32xf32>
    %14 = arith.addf %13, %9 : vector<16x32xf32>
    %c1 = arith.constant 1 : index
    %c0_14 = arith.constant 0 : index
    %15 = vector.load %arg24[%c1, %c0_14] : memref<48x32xf32, #tpu.memory_space<vmem>>, vector<16x32xf32>
    tpu.vector_store %arg24[%c1, %c0_14], %14 {strides = array<i32>} : memref<48x32xf32, #tpu.memory_space<vmem>>, vector<16x32xf32>,
    %c24 = arith.constant 24 : index
    %c0_15 = arith.constant 0 : index
    %16 = vector.load %arg24[%c24, %c0_15] : memref<48x32xf32, #tpu.memory_space<vmem>>, vector<1x32xf32>
    tpu.vector_store %arg24[%c24, %c0_15], %8 {strides = array<i32>} : memref<48x32xf32, #tpu.memory_space<vmem>>, vector<1x32xf32>,
    %17 = vector.extract_strided_slice %7 {offsets = [16, 0], sizes = [16, 32], strides = [1, 1]} : vector<32x32xf32> to vector<16x32xf32>
    %18 = arith.addf %17, %9 : vector<16x32xf32>
    %c25 = arith.constant 25 : index
    %c0_16 = arith.constant 0 : index
    %19 = vector.load %arg24[%c25, %c0_16] : memref<48x32xf32, #tpu.memory_space<vmem>>, vector<16x32xf32>
    tpu.vector_store %arg24[%c25, %c0_16], %18 {strides = array<i32>} : memref<48x32xf32, #tpu.memory_space<vmem>>, vector<16x32xf32>,
    %c0_17 = arith.constant 0 : index
    %c0_18 = arith.constant 0 : index
    %20 = vector.load %arg6[%c0_17, %c0_18] : memref<1x24xf32, #tpu.memory_space<vmem>>, vector<1x24xf32>
    %c0_19 = arith.constant 0 : index
    %c0_20 = arith.constant 0 : index
    %c0_21 = arith.constant 0 : index
    %21 = vector.load %arg7[%c0_19, %c0_20, %c0_21] : memref<2x1x32xf32, #tpu.memory_space<vmem>>, vector<1x1x32xf32>
    %22 = vector.shape_cast %21 : vector<1x1x32xf32> to vector<1x32xf32>
    %c0_22 = arith.constant 0 : index
    %c0_23 = arith.constant 0 : index
    %c0_24 = arith.constant 0 : index
    %23 = vector.load %arg8[%c0_22, %c0_23, %c0_24] : memref<2x1x32xf32, #tpu.memory_space<vmem>>, vector<1x1x32xf32>
    %24 = vector.shape_cast %23 : vector<1x1x32xf32> to vector<1x32xf32>
    %c0_25 = arith.constant 0 : index
    %c0_26 = arith.constant 0 : index
    %c0_27 = arith.constant 0 : index
    %25 = vector.load %arg10[%c0_25, %c0_26, %c0_27] : memref<2x1x96xf32, #tpu.memory_space<vmem>>, vector<1x1x96xf32>
    %26 = vector.shape_cast %25 : vector<1x1x96xf32> to vector<1x96xf32>
    %c0_28 = arith.constant 0 : index
    %c0_29 = arith.constant 0 : index
    %c0_30 = arith.constant 0 : index
    %27 = vector.load %arg12[%c0_28, %c0_29, %c0_30] : memref<2x1x32xf32, #tpu.memory_space<vmem>>, vector<1x1x32xf32>
    %28 = vector.shape_cast %27 : vector<1x1x32xf32> to vector<1x32xf32>
    %c0_31 = arith.constant 0 : index
    %c0_32 = arith.constant 0 : index
    %c0_33 = arith.constant 0 : index
    %29 = vector.load %arg9[%c0_31, %c0_32, %c0_33] : memref<2x32x96xf32, #tpu.memory_space<vmem>>, vector<1x32x96xf32>
    %30 = vector.shape_cast %29 : vector<1x32x96xf32> to vector<32x96xf32>
    %31 = arith.truncf %30 : vector<32x96xf32> to vector<32x96xbf16>
    %c0_34 = arith.constant 0 : index
    %c0_35 = arith.constant 0 : index
    %c0_36 = arith.constant 0 : index
    %32 = vector.load %arg11[%c0_34, %c0_35, %c0_36] : memref<2x32x32xf32, #tpu.memory_space<vmem>>, vector<1x32x32xf32>
    %33 = vector.shape_cast %32 : vector<1x32x32xf32> to vector<32x32xf32>
    %34 = arith.truncf %33 : vector<32x32xf32> to vector<32x32xbf16>
    %c0_37 = arith.constant 0 : index
    %c0_38 = arith.constant 0 : index
    %35 = vector.load %arg24[%c0_37, %c0_38] : memref<48x32xf32, #tpu.memory_space<vmem>>, vector<48x32xf32>
    %cst_39 = arith.constant dense<0.000000e+00> : vector<48xf32>
    %36 = vector.multi_reduction <add>, %35, %cst_39 [1] : vector<48x32xf32> to vector<48xf32>
    %37 = vector.shape_cast %36 : vector<48xf32> to vector<48x1xf32>
    %cst_40 = arith.constant 3.200000e+01 : f32
    %38 = vector.broadcast %cst_40 : f32 to vector<48x1xf32>
    %39 = arith.divf %37, %38 : vector<48x1xf32>
    %40 = arith.mulf %35, %35 : vector<48x32xf32>
    %cst_41 = arith.constant dense<0.000000e+00> : vector<48xf32>
    %41 = vector.multi_reduction <add>, %40, %cst_41 [1] : vector<48x32xf32> to vector<48xf32>
    %42 = vector.shape_cast %41 : vector<48xf32> to vector<48x1xf32>
    %cst_42 = arith.constant 3.200000e+01 : f32
    %43 = vector.broadcast %cst_42 : f32 to vector<48x1xf32>
    %44 = arith.divf %42, %43 : vector<48x1xf32>
    %45 = arith.mulf %39, %39 : vector<48x1xf32>
    %46 = arith.subf %44, %45 : vector<48x1xf32>
    %cst_43 = arith.constant 0.000000e+00 : f32
    %47 = vector.broadcast %cst_43 : f32 to vector<48x1xf32>
    %48 = arith.maximumf %46, %47 : vector<48x1xf32>
    %49 = vector.broadcast %39 : vector<48x1xf32> to vector<48x32xf32>
    %50 = arith.subf %35, %49 : vector<48x32xf32>
    %cst_44 = arith.constant 9.99999996E-13 : f32
    %51 = vector.broadcast %cst_44 : f32 to vector<48x1xf32>
    %52 = arith.addf %48, %51 : vector<48x1xf32>
    %53 = math.rsqrt %52 : vector<48x1xf32>
    %54 = vector.broadcast %53 : vector<48x1xf32> to vector<48x32xf32>
    %55 = arith.mulf %50, %54 : vector<48x32xf32>
    %56 = vector.broadcast %22 : vector<1x32xf32> to vector<48x32xf32>
    %57 = arith.mulf %55, %56 : vector<48x32xf32>
    %58 = vector.broadcast %24 : vector<1x32xf32> to vector<48x32xf32>
    %59 = arith.addf %57, %58 : vector<48x32xf32>
    %60 = arith.truncf %59 : vector<48x32xf32> to vector<48x32xbf16>
    %cst_45 = arith.constant dense<0.000000e+00> : vector<48x96xf32>
    %61 = tpu.matmul %60, %31, %cst_45 {dimension_numbers = #tpu.dot_dimension_numbers<[1], [0], [0], [1], [0, 0, 1, 1], [], []>} : vector<48x32xbf16>, vector<32x96xbf16>, vector<48x96xf32> -> vector<48x96xf32>
    %62 = vector.broadcast %26 : vector<1x96xf32> to vector<48x96xf32>
    %63 = arith.addf %61, %62 : vector<48x96xf32>
    %64 = arith.truncf %63 : vector<48x96xf32> to vector<48x96xbf16>
    %65 = vector.extract_strided_slice %64 {offsets = [0, 0], sizes = [24, 96], strides = [1, 1]} : vector<48x96xbf16> to vector<24x96xbf16>
    %66 = vector.extract_strided_slice %65 {offsets = [0, 0], sizes = [24, 16], strides = [1, 1]} : vector<24x96xbf16> to vector<24x16xbf16>
    %67 = vector.extract_strided_slice %65 {offsets = [0, 32], sizes = [24, 16], strides = [1, 1]} : vector<24x96xbf16> to vector<24x16xbf16>
    %68 = vector.extract_strided_slice %65 {offsets = [0, 64], sizes = [24, 16], strides = [1, 1]} : vector<24x96xbf16> to vector<24x16xbf16>
    %cst_46 = arith.constant dense<0.000000e+00> : vector<24x24xf32>
    %69 = tpu.matmul %66, %67, %cst_46 {dimension_numbers = #tpu.dot_dimension_numbers<[1], [1], [0], [0], [0, 0, 1, 0], [], []>} : vector<24x16xbf16>, vector<24x16xbf16>, vector<24x24xf32> -> vector<24x24xf32>
    %cst_47 = arith.constant 2.500000e-01 : f32
    %70 = vector.broadcast %cst_47 : f32 to vector<24x24xf32>
    %71 = arith.mulf %69, %70 : vector<24x24xf32>
    %72 = vector.broadcast %20 : vector<1x24xf32> to vector<24x24xf32>
    %73 = arith.addf %71, %72 : vector<24x24xf32>
    %cst_48 = arith.constant dense<0xFF800000> : vector<24xf32>
    %74 = vector.multi_reduction <maximumf>, %73, %cst_48 [1] : vector<24x24xf32> to vector<24xf32>
    %75 = vector.shape_cast %74 : vector<24xf32> to vector<24x1xf32>
    %76 = vector.broadcast %75 : vector<24x1xf32> to vector<24x24xf32>
    %77 = arith.subf %73, %76 : vector<24x24xf32>
    %78 = math.exp %77 : vector<24x24xf32>
    %cst_49 = arith.constant dense<0.000000e+00> : vector<24xf32>
    %79 = vector.multi_reduction <add>, %78, %cst_49 [1] : vector<24x24xf32> to vector<24xf32>
    %80 = vector.shape_cast %79 : vector<24xf32> to vector<24x1xf32>
    %81 = vector.broadcast %80 : vector<24x1xf32> to vector<24x24xf32>
    %82 = arith.divf %78, %81 : vector<24x24xf32>
    %83 = arith.truncf %82 : vector<24x24xf32> to vector<24x24xbf16>
    %cst_50 = arith.constant dense<0.000000e+00> : vector<24x16xf32>
    %84 = tpu.matmul %83, %68, %cst_50 {dimension_numbers = #tpu.dot_dimension_numbers<[1], [0], [0], [1], [0, 0, 1, 1], [], []>} : vector<24x24xbf16>, vector<24x16xbf16>, vector<24x16xf32> -> vector<24x16xf32>
    %85 = arith.truncf %84 : vector<24x16xf32> to vector<24x16xbf16>
    %86 = vector.extract_strided_slice %34 {offsets = [0, 0], sizes = [16, 32], strides = [1, 1]} : vector<32x32xbf16> to vector<16x32xbf16>
    %cst_51 = arith.constant dense<0.000000e+00> : vector<24x32xf32>
    %87 = tpu.matmul %85, %86, %cst_51 {dimension_numbers = #tpu.dot_dimension_numbers<[1], [0], [0], [1], [0, 0, 1, 1], [], []>} : vector<24x16xbf16>, vector<16x32xbf16>, vector<24x32xf32> -> vector<24x32xf32>
    %88 = vector.extract_strided_slice %65 {offsets = [0, 16], sizes = [24, 16], strides = [1, 1]} : vector<24x96xbf16> to vector<24x16xbf16>
    %89 = vector.extract_strided_slice %65 {offsets = [0, 48], sizes = [24, 16], strides = [1, 1]} : vector<24x96xbf16> to vector<24x16xbf16>
    %90 = vector.extract_strided_slice %65 {offsets = [0, 80], sizes = [24, 16], strides = [1, 1]} : vector<24x96xbf16> to vector<24x16xbf16>
    %cst_52 = arith.constant dense<0.000000e+00> : vector<24x24xf32>
    %91 = tpu.matmul %88, %89, %cst_52 {dimension_numbers = #tpu.dot_dimension_numbers<[1], [1], [0], [0], [0, 0, 1, 0], [], []>} : vector<24x16xbf16>, vector<24x16xbf16>, vector<24x24xf32> -> vector<24x24xf32>
    %cst_53 = arith.constant 2.500000e-01 : f32
    %92 = vector.broadcast %cst_53 : f32 to vector<24x24xf32>
    %93 = arith.mulf %91, %92 : vector<24x24xf32>
    %94 = vector.broadcast %20 : vector<1x24xf32> to vector<24x24xf32>
    %95 = arith.addf %93, %94 : vector<24x24xf32>
    %cst_54 = arith.constant dense<0xFF800000> : vector<24xf32>
    %96 = vector.multi_reduction <maximumf>, %95, %cst_54 [1] : vector<24x24xf32> to vector<24xf32>
    %97 = vector.shape_cast %96 : vector<24xf32> to vector<24x1xf32>
    %98 = vector.broadcast %97 : vector<24x1xf32> to vector<24x24xf32>
    %99 = arith.subf %95, %98 : vector<24x24xf32>
    %100 = math.exp %99 : vector<24x24xf32>
    %cst_55 = arith.constant dense<0.000000e+00> : vector<24xf32>
    %101 = vector.multi_reduction <add>, %100, %cst_55 [1] : vector<24x24xf32> to vector<24xf32>
    %102 = vector.shape_cast %101 : vector<24xf32> to vector<24x1xf32>
    %103 = vector.broadcast %102 : vector<24x1xf32> to vector<24x24xf32>
    %104 = arith.divf %100, %103 : vector<24x24xf32>
    %105 = arith.truncf %104 : vector<24x24xf32> to vector<24x24xbf16>
    %cst_56 = arith.constant dense<0.000000e+00> : vector<24x16xf32>
    %106 = tpu.matmul %105, %90, %cst_56 {dimension_numbers = #tpu.dot_dimension_numbers<[1], [0], [0], [1], [0, 0, 1, 1], [], []>} : vector<24x24xbf16>, vector<24x16xbf16>, vector<24x16xf32> -> vector<24x16xf32>
    %107 = arith.truncf %106 : vector<24x16xf32> to vector<24x16xbf16>
    %108 = vector.extract_strided_slice %34 {offsets = [16, 0], sizes = [16, 32], strides = [1, 1]} : vector<32x32xbf16> to vector<16x32xbf16>
    %cst_57 = arith.constant dense<0.000000e+00> : vector<24x32xf32>
    %109 = tpu.matmul %107, %108, %cst_57 {dimension_numbers = #tpu.dot_dimension_numbers<[1], [0], [0], [1], [0, 0, 1, 1], [], []>} : vector<24x16xbf16>, vector<16x32xbf16>, vector<24x32xf32> -> vector<24x32xf32>
    %110 = arith.addf %87, %109 : vector<24x32xf32>
    %111 = vector.extract_strided_slice %35 {offsets = [0, 0], sizes = [24, 32], strides = [1, 1]} : vector<48x32xf32> to vector<24x32xf32>
    %112 = arith.addf %111, %110 : vector<24x32xf32>
    %113 = vector.broadcast %28 : vector<1x32xf32> to vector<24x32xf32>
    %114 = arith.addf %112, %113 : vector<24x32xf32>
    %c0_58 = arith.constant 0 : index
    %c0_59 = arith.constant 0 : index
    %115 = vector.load %arg24[%c0_58, %c0_59] : memref<48x32xf32, #tpu.memory_space<vmem>>, vector<24x32xf32>
    tpu.vector_store %arg24[%c0_58, %c0_59], %114 {strides = array<i32>} : memref<48x32xf32, #tpu.memory_space<vmem>>, vector<24x32xf32>,
    %116 = vector.extract_strided_slice %64 {offsets = [24, 0], sizes = [24, 96], strides = [1, 1]} : vector<48x96xbf16> to vector<24x96xbf16>
    %117 = vector.extract_strided_slice %116 {offsets = [0, 0], sizes = [24, 16], strides = [1, 1]} : vector<24x96xbf16> to vector<24x16xbf16>
    %118 = vector.extract_strided_slice %116 {offsets = [0, 32], sizes = [24, 16], strides = [1, 1]} : vector<24x96xbf16> to vector<24x16xbf16>
    %119 = vector.extract_strided_slice %116 {offsets = [0, 64], sizes = [24, 16], strides = [1, 1]} : vector<24x96xbf16> to vector<24x16xbf16>
    %cst_60 = arith.constant dense<0.000000e+00> : vector<24x24xf32>
    %120 = tpu.matmul %117, %118, %cst_60 {dimension_numbers = #tpu.dot_dimension_numbers<[1], [1], [0], [0], [0, 0, 1, 0], [], []>} : vector<24x16xbf16>, vector<24x16xbf16>, vector<24x24xf32> -> vector<24x24xf32>
    %cst_61 = arith.constant 2.500000e-01 : f32
    %121 = vector.broadcast %cst_61 : f32 to vector<24x24xf32>
    %122 = arith.mulf %120, %121 : vector<24x24xf32>
    %123 = vector.broadcast %20 : vector<1x24xf32> to vector<24x24xf32>
    %124 = arith.addf %122, %123 : vector<24x24xf32>
    %cst_62 = arith.constant dense<0xFF800000> : vector<24xf32>
    %125 = vector.multi_reduction <maximumf>, %124, %cst_62 [1] : vector<24x24xf32> to vector<24xf32>
    %126 = vector.shape_cast %125 : vector<24xf32> to vector<24x1xf32>
    %127 = vector.broadcast %126 : vector<24x1xf32> to vector<24x24xf32>
    %128 = arith.subf %124, %127 : vector<24x24xf32>
    %129 = math.exp %128 : vector<24x24xf32>
    %cst_63 = arith.constant dense<0.000000e+00> : vector<24xf32>
    %130 = vector.multi_reduction <add>, %129, %cst_63 [1] : vector<24x24xf32> to vector<24xf32>
    %131 = vector.shape_cast %130 : vector<24xf32> to vector<24x1xf32>
    %132 = vector.broadcast %131 : vector<24x1xf32> to vector<24x24xf32>
    %133 = arith.divf %129, %132 : vector<24x24xf32>
    %134 = arith.truncf %133 : vector<24x24xf32> to vector<24x24xbf16>
    %cst_64 = arith.constant dense<0.000000e+00> : vector<24x16xf32>
    %135 = tpu.matmul %134, %119, %cst_64 {dimension_numbers = #tpu.dot_dimension_numbers<[1], [0], [0], [1], [0, 0, 1, 1], [], []>} : vector<24x24xbf16>, vector<24x16xbf16>, vector<24x16xf32> -> vector<24x16xf32>
    %136 = arith.truncf %135 : vector<24x16xf32> to vector<24x16xbf16>
    %137 = vector.extract_strided_slice %34 {offsets = [0, 0], sizes = [16, 32], strides = [1, 1]} : vector<32x32xbf16> to vector<16x32xbf16>
    %cst_65 = arith.constant dense<0.000000e+00> : vector<24x32xf32>
    %138 = tpu.matmul %136, %137, %cst_65 {dimension_numbers = #tpu.dot_dimension_numbers<[1], [0], [0], [1], [0, 0, 1, 1], [], []>} : vector<24x16xbf16>, vector<16x32xbf16>, vector<24x32xf32> -> vector<24x32xf32>
    %139 = vector.extract_strided_slice %116 {offsets = [0, 16], sizes = [24, 16], strides = [1, 1]} : vector<24x96xbf16> to vector<24x16xbf16>
    %140 = vector.extract_strided_slice %116 {offsets = [0, 48], sizes = [24, 16], strides = [1, 1]} : vector<24x96xbf16> to vector<24x16xbf16>
    %141 = vector.extract_strided_slice %116 {offsets = [0, 80], sizes = [24, 16], strides = [1, 1]} : vector<24x96xbf16> to vector<24x16xbf16>
    %cst_66 = arith.constant dense<0.000000e+00> : vector<24x24xf32>
    %142 = tpu.matmul %139, %140, %cst_66 {dimension_numbers = #tpu.dot_dimension_numbers<[1], [1], [0], [0], [0, 0, 1, 0], [], []>} : vector<24x16xbf16>, vector<24x16xbf16>, vector<24x24xf32> -> vector<24x24xf32>
    %cst_67 = arith.constant 2.500000e-01 : f32
    %143 = vector.broadcast %cst_67 : f32 to vector<24x24xf32>
    %144 = arith.mulf %142, %143 : vector<24x24xf32>
    %145 = vector.broadcast %20 : vector<1x24xf32> to vector<24x24xf32>
    %146 = arith.addf %144, %145 : vector<24x24xf32>
    %cst_68 = arith.constant dense<0xFF800000> : vector<24xf32>
    %147 = vector.multi_reduction <maximumf>, %146, %cst_68 [1] : vector<24x24xf32> to vector<24xf32>
    %148 = vector.shape_cast %147 : vector<24xf32> to vector<24x1xf32>
    %149 = vector.broadcast %148 : vector<24x1xf32> to vector<24x24xf32>
    %150 = arith.subf %146, %149 : vector<24x24xf32>
    %151 = math.exp %150 : vector<24x24xf32>
    %cst_69 = arith.constant dense<0.000000e+00> : vector<24xf32>
    %152 = vector.multi_reduction <add>, %151, %cst_69 [1] : vector<24x24xf32> to vector<24xf32>
    %153 = vector.shape_cast %152 : vector<24xf32> to vector<24x1xf32>
    %154 = vector.broadcast %153 : vector<24x1xf32> to vector<24x24xf32>
    %155 = arith.divf %151, %154 : vector<24x24xf32>
    %156 = arith.truncf %155 : vector<24x24xf32> to vector<24x24xbf16>
    %cst_70 = arith.constant dense<0.000000e+00> : vector<24x16xf32>
    %157 = tpu.matmul %156, %141, %cst_70 {dimension_numbers = #tpu.dot_dimension_numbers<[1], [0], [0], [1], [0, 0, 1, 1], [], []>} : vector<24x24xbf16>, vector<24x16xbf16>, vector<24x16xf32> -> vector<24x16xf32>
    %158 = arith.truncf %157 : vector<24x16xf32> to vector<24x16xbf16>
    %159 = vector.extract_strided_slice %34 {offsets = [16, 0], sizes = [16, 32], strides = [1, 1]} : vector<32x32xbf16> to vector<16x32xbf16>
    %cst_71 = arith.constant dense<0.000000e+00> : vector<24x32xf32>
    %160 = tpu.matmul %158, %159, %cst_71 {dimension_numbers = #tpu.dot_dimension_numbers<[1], [0], [0], [1], [0, 0, 1, 1], [], []>} : vector<24x16xbf16>, vector<16x32xbf16>, vector<24x32xf32> -> vector<24x32xf32>
    %161 = arith.addf %138, %160 : vector<24x32xf32>
    %162 = vector.extract_strided_slice %35 {offsets = [24, 0], sizes = [24, 32], strides = [1, 1]} : vector<48x32xf32> to vector<24x32xf32>
    %163 = arith.addf %162, %161 : vector<24x32xf32>
    %164 = vector.broadcast %28 : vector<1x32xf32> to vector<24x32xf32>
    %165 = arith.addf %163, %164 : vector<24x32xf32>
    %c24_72 = arith.constant 24 : index
    %c0_73 = arith.constant 0 : index
    %166 = vector.load %arg24[%c24_72, %c0_73] : memref<48x32xf32, #tpu.memory_space<vmem>>, vector<24x32xf32>
    tpu.vector_store %arg24[%c24_72, %c0_73], %165 {strides = array<i32>} : memref<48x32xf32, #tpu.memory_space<vmem>>, vector<24x32xf32>,
    %c0_74 = arith.constant 0 : index
    %c0_75 = arith.constant 0 : index
    %c0_76 = arith.constant 0 : index
    %167 = vector.load %arg15[%c0_74, %c0_75, %c0_76] : memref<2x32x64xf32, #tpu.memory_space<vmem>>, vector<1x32x64xf32>
    %168 = vector.shape_cast %167 : vector<1x32x64xf32> to vector<32x64xf32>
    %169 = arith.truncf %168 : vector<32x64xf32> to vector<32x64xbf16>
    %c0_77 = arith.constant 0 : index
    %c0_78 = arith.constant 0 : index
    %c0_79 = arith.constant 0 : index
    %170 = vector.load %arg17[%c0_77, %c0_78, %c0_79] : memref<2x64x32xf32, #tpu.memory_space<vmem>>, vector<1x64x32xf32>
    %171 = vector.shape_cast %170 : vector<1x64x32xf32> to vector<64x32xf32>
    %172 = arith.truncf %171 : vector<64x32xf32> to vector<64x32xbf16>
    %c0_80 = arith.constant 0 : index
    %c0_81 = arith.constant 0 : index
    %173 = vector.load %arg24[%c0_80, %c0_81] : memref<48x32xf32, #tpu.memory_space<vmem>>, vector<48x32xf32>
    %c0_82 = arith.constant 0 : index
    %c0_83 = arith.constant 0 : index
    %c0_84 = arith.constant 0 : index
    %174 = vector.load %arg13[%c0_82, %c0_83, %c0_84] : memref<2x1x32xf32, #tpu.memory_space<vmem>>, vector<1x1x32xf32>
    %175 = vector.shape_cast %174 : vector<1x1x32xf32> to vector<1x32xf32>
    %c0_85 = arith.constant 0 : index
    %c0_86 = arith.constant 0 : index
    %c0_87 = arith.constant 0 : index
    %176 = vector.load %arg14[%c0_85, %c0_86, %c0_87] : memref<2x1x32xf32, #tpu.memory_space<vmem>>, vector<1x1x32xf32>
    %177 = vector.shape_cast %176 : vector<1x1x32xf32> to vector<1x32xf32>
    %cst_88 = arith.constant dense<0.000000e+00> : vector<48xf32>
    %178 = vector.multi_reduction <add>, %173, %cst_88 [1] : vector<48x32xf32> to vector<48xf32>
    %179 = vector.shape_cast %178 : vector<48xf32> to vector<48x1xf32>
    %cst_89 = arith.constant 3.200000e+01 : f32
    %180 = vector.broadcast %cst_89 : f32 to vector<48x1xf32>
    %181 = arith.divf %179, %180 : vector<48x1xf32>
    %182 = arith.mulf %173, %173 : vector<48x32xf32>
    %cst_90 = arith.constant dense<0.000000e+00> : vector<48xf32>
    %183 = vector.multi_reduction <add>, %182, %cst_90 [1] : vector<48x32xf32> to vector<48xf32>
    %184 = vector.shape_cast %183 : vector<48xf32> to vector<48x1xf32>
    %cst_91 = arith.constant 3.200000e+01 : f32
    %185 = vector.broadcast %cst_91 : f32 to vector<48x1xf32>
    %186 = arith.divf %184, %185 : vector<48x1xf32>
    %187 = arith.mulf %181, %181 : vector<48x1xf32>
    %188 = arith.subf %186, %187 : vector<48x1xf32>
    %cst_92 = arith.constant 0.000000e+00 : f32
    %189 = vector.broadcast %cst_92 : f32 to vector<48x1xf32>
    %190 = arith.maximumf %188, %189 : vector<48x1xf32>
    %191 = vector.broadcast %181 : vector<48x1xf32> to vector<48x32xf32>
    %192 = arith.subf %173, %191 : vector<48x32xf32>
    %cst_93 = arith.constant 9.99999996E-13 : f32
    %193 = vector.broadcast %cst_93 : f32 to vector<48x1xf32>
    %194 = arith.addf %190, %193 : vector<48x1xf32>
    %195 = math.rsqrt %194 : vector<48x1xf32>
    %196 = vector.broadcast %195 : vector<48x1xf32> to vector<48x32xf32>
    %197 = arith.mulf %192, %196 : vector<48x32xf32>
    %198 = vector.broadcast %175 : vector<1x32xf32> to vector<48x32xf32>
    %199 = arith.mulf %197, %198 : vector<48x32xf32>
    %200 = vector.broadcast %177 : vector<1x32xf32> to vector<48x32xf32>
    %201 = arith.addf %199, %200 : vector<48x32xf32>
    %202 = arith.truncf %201 : vector<48x32xf32> to vector<48x32xbf16>
    %cst_94 = arith.constant dense<0.000000e+00> : vector<48x64xf32>
    %203 = tpu.matmul %202, %169, %cst_94 {dimension_numbers = #tpu.dot_dimension_numbers<[1], [0], [0], [1], [0, 0, 1, 1], [], []>} : vector<48x32xbf16>, vector<32x64xbf16>, vector<48x64xf32> -> vector<48x64xf32>
    %c0_95 = arith.constant 0 : index
    %c0_96 = arith.constant 0 : index
    %c0_97 = arith.constant 0 : index
    %204 = vector.load %arg16[%c0_95, %c0_96, %c0_97] : memref<2x1x64xf32, #tpu.memory_space<vmem>>, vector<1x1x64xf32>
    %205 = vector.shape_cast %204 : vector<1x1x64xf32> to vector<1x64xf32>
    %206 = vector.broadcast %205 : vector<1x64xf32> to vector<48x64xf32>
    %207 = arith.addf %203, %206 : vector<48x64xf32>
    %208 = arith.mulf %207, %207 : vector<48x64xf32>
    %209 = arith.mulf %207, %208 : vector<48x64xf32>
    %cst_98 = arith.constant 4.471500e-02 : f32
    %210 = vector.broadcast %cst_98 : f32 to vector<48x64xf32>
    %211 = arith.mulf %210, %209 : vector<48x64xf32>
    %212 = arith.addf %207, %211 : vector<48x64xf32>
    %cst_99 = arith.constant 0.797884583 : f32
    %213 = vector.broadcast %cst_99 : f32 to vector<48x64xf32>
    %214 = arith.mulf %213, %212 : vector<48x64xf32>
    %215 = math.tanh %214 : vector<48x64xf32>
    %cst_100 = arith.constant 1.000000e+00 : f32
    %216 = vector.broadcast %cst_100 : f32 to vector<48x64xf32>
    %217 = arith.addf %216, %215 : vector<48x64xf32>
    %cst_101 = arith.constant 5.000000e-01 : f32
    %218 = vector.broadcast %cst_101 : f32 to vector<48x64xf32>
    %219 = arith.mulf %218, %217 : vector<48x64xf32>
    %220 = arith.mulf %207, %219 : vector<48x64xf32>
    %221 = arith.truncf %220 : vector<48x64xf32> to vector<48x64xbf16>
    %cst_102 = arith.constant dense<0.000000e+00> : vector<48x32xf32>
    %222 = tpu.matmul %221, %172, %cst_102 {dimension_numbers = #tpu.dot_dimension_numbers<[1], [0], [0], [1], [0, 0, 1, 1], [], []>} : vector<48x64xbf16>, vector<64x32xbf16>, vector<48x32xf32> -> vector<48x32xf32>
    %223 = arith.addf %173, %222 : vector<48x32xf32>
    %c0_103 = arith.constant 0 : index
    %c0_104 = arith.constant 0 : index
    %c0_105 = arith.constant 0 : index
    %224 = vector.load %arg18[%c0_103, %c0_104, %c0_105] : memref<2x1x32xf32, #tpu.memory_space<vmem>>, vector<1x1x32xf32>
    %225 = vector.shape_cast %224 : vector<1x1x32xf32> to vector<1x32xf32>
    %226 = vector.broadcast %225 : vector<1x32xf32> to vector<48x32xf32>
    %227 = arith.addf %223, %226 : vector<48x32xf32>
    %c0_106 = arith.constant 0 : index
    %c0_107 = arith.constant 0 : index
    %228 = vector.load %arg24[%c0_106, %c0_107] : memref<48x32xf32, #tpu.memory_space<vmem>>, vector<48x32xf32>
    tpu.vector_store %arg24[%c0_106, %c0_107], %227 {strides = array<i32>} : memref<48x32xf32, #tpu.memory_space<vmem>>, vector<48x32xf32>,
    %c1_108 = arith.constant 1 : index
    %c0_109 = arith.constant 0 : index
    %c0_110 = arith.constant 0 : index
    %229 = vector.load %arg7[%c1_108, %c0_109, %c0_110] : memref<2x1x32xf32, #tpu.memory_space<vmem>>, vector<1x1x32xf32>
    %230 = vector.shape_cast %229 : vector<1x1x32xf32> to vector<1x32xf32>
    %c1_111 = arith.constant 1 : index
    %c0_112 = arith.constant 0 : index
    %c0_113 = arith.constant 0 : index
    %231 = vector.load %arg8[%c1_111, %c0_112, %c0_113] : memref<2x1x32xf32, #tpu.memory_space<vmem>>, vector<1x1x32xf32>
    %232 = vector.shape_cast %231 : vector<1x1x32xf32> to vector<1x32xf32>
    %c1_114 = arith.constant 1 : index
    %c0_115 = arith.constant 0 : index
    %c0_116 = arith.constant 0 : index
    %233 = vector.load %arg10[%c1_114, %c0_115, %c0_116] : memref<2x1x96xf32, #tpu.memory_space<vmem>>, vector<1x1x96xf32>
    %234 = vector.shape_cast %233 : vector<1x1x96xf32> to vector<1x96xf32>
    %c1_117 = arith.constant 1 : index
    %c0_118 = arith.constant 0 : index
    %c0_119 = arith.constant 0 : index
    %235 = vector.load %arg12[%c1_117, %c0_118, %c0_119] : memref<2x1x32xf32, #tpu.memory_space<vmem>>, vector<1x1x32xf32>
    %236 = vector.shape_cast %235 : vector<1x1x32xf32> to vector<1x32xf32>
    %c1_120 = arith.constant 1 : index
    %c0_121 = arith.constant 0 : index
    %c0_122 = arith.constant 0 : index
    %237 = vector.load %arg9[%c1_120, %c0_121, %c0_122] : memref<2x32x96xf32, #tpu.memory_space<vmem>>, vector<1x32x96xf32>
    %238 = vector.shape_cast %237 : vector<1x32x96xf32> to vector<32x96xf32>
    %239 = arith.truncf %238 : vector<32x96xf32> to vector<32x96xbf16>
    %c1_123 = arith.constant 1 : index
    %c0_124 = arith.constant 0 : index
    %c0_125 = arith.constant 0 : index
    %240 = vector.load %arg11[%c1_123, %c0_124, %c0_125] : memref<2x32x32xf32, #tpu.memory_space<vmem>>, vector<1x32x32xf32>
    %241 = vector.shape_cast %240 : vector<1x32x32xf32> to vector<32x32xf32>
    %242 = arith.truncf %241 : vector<32x32xf32> to vector<32x32xbf16>
    %c0_126 = arith.constant 0 : index
    %c0_127 = arith.constant 0 : index
    %243 = vector.load %arg24[%c0_126, %c0_127] : memref<48x32xf32, #tpu.memory_space<vmem>>, vector<48x32xf32>
    %cst_128 = arith.constant dense<0.000000e+00> : vector<48xf32>
    %244 = vector.multi_reduction <add>, %243, %cst_128 [1] : vector<48x32xf32> to vector<48xf32>
    %245 = vector.shape_cast %244 : vector<48xf32> to vector<48x1xf32>
    %cst_129 = arith.constant 3.200000e+01 : f32
    %246 = vector.broadcast %cst_129 : f32 to vector<48x1xf32>
    %247 = arith.divf %245, %246 : vector<48x1xf32>
    %248 = arith.mulf %243, %243 : vector<48x32xf32>
    %cst_130 = arith.constant dense<0.000000e+00> : vector<48xf32>
    %249 = vector.multi_reduction <add>, %248, %cst_130 [1] : vector<48x32xf32> to vector<48xf32>
    %250 = vector.shape_cast %249 : vector<48xf32> to vector<48x1xf32>
    %cst_131 = arith.constant 3.200000e+01 : f32
    %251 = vector.broadcast %cst_131 : f32 to vector<48x1xf32>
    %252 = arith.divf %250, %251 : vector<48x1xf32>
    %253 = arith.mulf %247, %247 : vector<48x1xf32>
    %254 = arith.subf %252, %253 : vector<48x1xf32>
    %cst_132 = arith.constant 0.000000e+00 : f32
    %255 = vector.broadcast %cst_132 : f32 to vector<48x1xf32>
    %256 = arith.maximumf %254, %255 : vector<48x1xf32>
    %257 = vector.broadcast %247 : vector<48x1xf32> to vector<48x32xf32>
    %258 = arith.subf %243, %257 : vector<48x32xf32>
    %cst_133 = arith.constant 9.99999996E-13 : f32
    %259 = vector.broadcast %cst_133 : f32 to vector<48x1xf32>
    %260 = arith.addf %256, %259 : vector<48x1xf32>
    %261 = math.rsqrt %260 : vector<48x1xf32>
    %262 = vector.broadcast %261 : vector<48x1xf32> to vector<48x32xf32>
    %263 = arith.mulf %258, %262 : vector<48x32xf32>
    %264 = vector.broadcast %230 : vector<1x32xf32> to vector<48x32xf32>
    %265 = arith.mulf %263, %264 : vector<48x32xf32>
    %266 = vector.broadcast %232 : vector<1x32xf32> to vector<48x32xf32>
    %267 = arith.addf %265, %266 : vector<48x32xf32>
    %268 = arith.truncf %267 : vector<48x32xf32> to vector<48x32xbf16>
    %cst_134 = arith.constant dense<0.000000e+00> : vector<48x96xf32>
    %269 = tpu.matmul %268, %239, %cst_134 {dimension_numbers = #tpu.dot_dimension_numbers<[1], [0], [0], [1], [0, 0, 1, 1], [], []>} : vector<48x32xbf16>, vector<32x96xbf16>, vector<48x96xf32> -> vector<48x96xf32>
    %270 = vector.broadcast %234 : vector<1x96xf32> to vector<48x96xf32>
    %271 = arith.addf %269, %270 : vector<48x96xf32>
    %272 = arith.truncf %271 : vector<48x96xf32> to vector<48x96xbf16>
    %273 = vector.extract_strided_slice %272 {offsets = [0, 0], sizes = [24, 96], strides = [1, 1]} : vector<48x96xbf16> to vector<24x96xbf16>
    %274 = vector.extract_strided_slice %273 {offsets = [0, 0], sizes = [24, 16], strides = [1, 1]} : vector<24x96xbf16> to vector<24x16xbf16>
    %275 = vector.extract_strided_slice %273 {offsets = [0, 32], sizes = [24, 16], strides = [1, 1]} : vector<24x96xbf16> to vector<24x16xbf16>
    %276 = vector.extract_strided_slice %273 {offsets = [0, 64], sizes = [24, 16], strides = [1, 1]} : vector<24x96xbf16> to vector<24x16xbf16>
    %cst_135 = arith.constant dense<0.000000e+00> : vector<24x24xf32>
    %277 = tpu.matmul %274, %275, %cst_135 {dimension_numbers = #tpu.dot_dimension_numbers<[1], [1], [0], [0], [0, 0, 1, 0], [], []>} : vector<24x16xbf16>, vector<24x16xbf16>, vector<24x24xf32> -> vector<24x24xf32>
    %cst_136 = arith.constant 2.500000e-01 : f32
    %278 = vector.broadcast %cst_136 : f32 to vector<24x24xf32>
    %279 = arith.mulf %277, %278 : vector<24x24xf32>
    %280 = vector.broadcast %20 : vector<1x24xf32> to vector<24x24xf32>
    %281 = arith.addf %279, %280 : vector<24x24xf32>
    %cst_137 = arith.constant dense<0xFF800000> : vector<24xf32>
    %282 = vector.multi_reduction <maximumf>, %281, %cst_137 [1] : vector<24x24xf32> to vector<24xf32>
    %283 = vector.shape_cast %282 : vector<24xf32> to vector<24x1xf32>
    %284 = vector.broadcast %283 : vector<24x1xf32> to vector<24x24xf32>
    %285 = arith.subf %281, %284 : vector<24x24xf32>
    %286 = math.exp %285 : vector<24x24xf32>
    %cst_138 = arith.constant dense<0.000000e+00> : vector<24xf32>
    %287 = vector.multi_reduction <add>, %286, %cst_138 [1] : vector<24x24xf32> to vector<24xf32>
    %288 = vector.shape_cast %287 : vector<24xf32> to vector<24x1xf32>
    %289 = vector.broadcast %288 : vector<24x1xf32> to vector<24x24xf32>
    %290 = arith.divf %286, %289 : vector<24x24xf32>
    %291 = arith.truncf %290 : vector<24x24xf32> to vector<24x24xbf16>
    %cst_139 = arith.constant dense<0.000000e+00> : vector<24x16xf32>
    %292 = tpu.matmul %291, %276, %cst_139 {dimension_numbers = #tpu.dot_dimension_numbers<[1], [0], [0], [1], [0, 0, 1, 1], [], []>} : vector<24x24xbf16>, vector<24x16xbf16>, vector<24x16xf32> -> vector<24x16xf32>
    %293 = arith.truncf %292 : vector<24x16xf32> to vector<24x16xbf16>
    %294 = vector.extract_strided_slice %242 {offsets = [0, 0], sizes = [16, 32], strides = [1, 1]} : vector<32x32xbf16> to vector<16x32xbf16>
    %cst_140 = arith.constant dense<0.000000e+00> : vector<24x32xf32>
    %295 = tpu.matmul %293, %294, %cst_140 {dimension_numbers = #tpu.dot_dimension_numbers<[1], [0], [0], [1], [0, 0, 1, 1], [], []>} : vector<24x16xbf16>, vector<16x32xbf16>, vector<24x32xf32> -> vector<24x32xf32>
    %296 = vector.extract_strided_slice %273 {offsets = [0, 16], sizes = [24, 16], strides = [1, 1]} : vector<24x96xbf16> to vector<24x16xbf16>
    %297 = vector.extract_strided_slice %273 {offsets = [0, 48], sizes = [24, 16], strides = [1, 1]} : vector<24x96xbf16> to vector<24x16xbf16>
    %298 = vector.extract_strided_slice %273 {offsets = [0, 80], sizes = [24, 16], strides = [1, 1]} : vector<24x96xbf16> to vector<24x16xbf16>
    %cst_141 = arith.constant dense<0.000000e+00> : vector<24x24xf32>
    %299 = tpu.matmul %296, %297, %cst_141 {dimension_numbers = #tpu.dot_dimension_numbers<[1], [1], [0], [0], [0, 0, 1, 0], [], []>} : vector<24x16xbf16>, vector<24x16xbf16>, vector<24x24xf32> -> vector<24x24xf32>
    %cst_142 = arith.constant 2.500000e-01 : f32
    %300 = vector.broadcast %cst_142 : f32 to vector<24x24xf32>
    %301 = arith.mulf %299, %300 : vector<24x24xf32>
    %302 = vector.broadcast %20 : vector<1x24xf32> to vector<24x24xf32>
    %303 = arith.addf %301, %302 : vector<24x24xf32>
    %cst_143 = arith.constant dense<0xFF800000> : vector<24xf32>
    %304 = vector.multi_reduction <maximumf>, %303, %cst_143 [1] : vector<24x24xf32> to vector<24xf32>
    %305 = vector.shape_cast %304 : vector<24xf32> to vector<24x1xf32>
    %306 = vector.broadcast %305 : vector<24x1xf32> to vector<24x24xf32>
    %307 = arith.subf %303, %306 : vector<24x24xf32>
    %308 = math.exp %307 : vector<24x24xf32>
    %cst_144 = arith.constant dense<0.000000e+00> : vector<24xf32>
    %309 = vector.multi_reduction <add>, %308, %cst_144 [1] : vector<24x24xf32> to vector<24xf32>
    %310 = vector.shape_cast %309 : vector<24xf32> to vector<24x1xf32>
    %311 = vector.broadcast %310 : vector<24x1xf32> to vector<24x24xf32>
    %312 = arith.divf %308, %311 : vector<24x24xf32>
    %313 = arith.truncf %312 : vector<24x24xf32> to vector<24x24xbf16>
    %cst_145 = arith.constant dense<0.000000e+00> : vector<24x16xf32>
    %314 = tpu.matmul %313, %298, %cst_145 {dimension_numbers = #tpu.dot_dimension_numbers<[1], [0], [0], [1], [0, 0, 1, 1], [], []>} : vector<24x24xbf16>, vector<24x16xbf16>, vector<24x16xf32> -> vector<24x16xf32>
    %315 = arith.truncf %314 : vector<24x16xf32> to vector<24x16xbf16>
    %316 = vector.extract_strided_slice %242 {offsets = [16, 0], sizes = [16, 32], strides = [1, 1]} : vector<32x32xbf16> to vector<16x32xbf16>
    %cst_146 = arith.constant dense<0.000000e+00> : vector<24x32xf32>
    %317 = tpu.matmul %315, %316, %cst_146 {dimension_numbers = #tpu.dot_dimension_numbers<[1], [0], [0], [1], [0, 0, 1, 1], [], []>} : vector<24x16xbf16>, vector<16x32xbf16>, vector<24x32xf32> -> vector<24x32xf32>
    %318 = arith.addf %295, %317 : vector<24x32xf32>
    %319 = vector.extract_strided_slice %243 {offsets = [0, 0], sizes = [24, 32], strides = [1, 1]} : vector<48x32xf32> to vector<24x32xf32>
    %320 = arith.addf %319, %318 : vector<24x32xf32>
    %321 = vector.broadcast %236 : vector<1x32xf32> to vector<24x32xf32>
    %322 = arith.addf %320, %321 : vector<24x32xf32>
    %c0_147 = arith.constant 0 : index
    %c0_148 = arith.constant 0 : index
    %323 = vector.load %arg24[%c0_147, %c0_148] : memref<48x32xf32, #tpu.memory_space<vmem>>, vector<24x32xf32>
    tpu.vector_store %arg24[%c0_147, %c0_148], %322 {strides = array<i32>} : memref<48x32xf32, #tpu.memory_space<vmem>>, vector<24x32xf32>,
    %324 = vector.extract_strided_slice %272 {offsets = [24, 0], sizes = [24, 96], strides = [1, 1]} : vector<48x96xbf16> to vector<24x96xbf16>
    %325 = vector.extract_strided_slice %324 {offsets = [0, 0], sizes = [24, 16], strides = [1, 1]} : vector<24x96xbf16> to vector<24x16xbf16>
    %326 = vector.extract_strided_slice %324 {offsets = [0, 32], sizes = [24, 16], strides = [1, 1]} : vector<24x96xbf16> to vector<24x16xbf16>
    %327 = vector.extract_strided_slice %324 {offsets = [0, 64], sizes = [24, 16], strides = [1, 1]} : vector<24x96xbf16> to vector<24x16xbf16>
    %cst_149 = arith.constant dense<0.000000e+00> : vector<24x24xf32>
    %328 = tpu.matmul %325, %326, %cst_149 {dimension_numbers = #tpu.dot_dimension_numbers<[1], [1], [0], [0], [0, 0, 1, 0], [], []>} : vector<24x16xbf16>, vector<24x16xbf16>, vector<24x24xf32> -> vector<24x24xf32>
    %cst_150 = arith.constant 2.500000e-01 : f32
    %329 = vector.broadcast %cst_150 : f32 to vector<24x24xf32>
    %330 = arith.mulf %328, %329 : vector<24x24xf32>
    %331 = vector.broadcast %20 : vector<1x24xf32> to vector<24x24xf32>
    %332 = arith.addf %330, %331 : vector<24x24xf32>
    %cst_151 = arith.constant dense<0xFF800000> : vector<24xf32>
    %333 = vector.multi_reduction <maximumf>, %332, %cst_151 [1] : vector<24x24xf32> to vector<24xf32>
    %334 = vector.shape_cast %333 : vector<24xf32> to vector<24x1xf32>
    %335 = vector.broadcast %334 : vector<24x1xf32> to vector<24x24xf32>
    %336 = arith.subf %332, %335 : vector<24x24xf32>
    %337 = math.exp %336 : vector<24x24xf32>
    %cst_152 = arith.constant dense<0.000000e+00> : vector<24xf32>
    %338 = vector.multi_reduction <add>, %337, %cst_152 [1] : vector<24x24xf32> to vector<24xf32>
    %339 = vector.shape_cast %338 : vector<24xf32> to vector<24x1xf32>
    %340 = vector.broadcast %339 : vector<24x1xf32> to vector<24x24xf32>
    %341 = arith.divf %337, %340 : vector<24x24xf32>
    %342 = arith.truncf %341 : vector<24x24xf32> to vector<24x24xbf16>
    %cst_153 = arith.constant dense<0.000000e+00> : vector<24x16xf32>
    %343 = tpu.matmul %342, %327, %cst_153 {dimension_numbers = #tpu.dot_dimension_numbers<[1], [0], [0], [1], [0, 0, 1, 1], [], []>} : vector<24x24xbf16>, vector<24x16xbf16>, vector<24x16xf32> -> vector<24x16xf32>
    %344 = arith.truncf %343 : vector<24x16xf32> to vector<24x16xbf16>
    %345 = vector.extract_strided_slice %242 {offsets = [0, 0], sizes = [16, 32], strides = [1, 1]} : vector<32x32xbf16> to vector<16x32xbf16>
    %cst_154 = arith.constant dense<0.000000e+00> : vector<24x32xf32>
    %346 = tpu.matmul %344, %345, %cst_154 {dimension_numbers = #tpu.dot_dimension_numbers<[1], [0], [0], [1], [0, 0, 1, 1], [], []>} : vector<24x16xbf16>, vector<16x32xbf16>, vector<24x32xf32> -> vector<24x32xf32>
    %347 = vector.extract_strided_slice %324 {offsets = [0, 16], sizes = [24, 16], strides = [1, 1]} : vector<24x96xbf16> to vector<24x16xbf16>
    %348 = vector.extract_strided_slice %324 {offsets = [0, 48], sizes = [24, 16], strides = [1, 1]} : vector<24x96xbf16> to vector<24x16xbf16>
    %349 = vector.extract_strided_slice %324 {offsets = [0, 80], sizes = [24, 16], strides = [1, 1]} : vector<24x96xbf16> to vector<24x16xbf16>
    %cst_155 = arith.constant dense<0.000000e+00> : vector<24x24xf32>
    %350 = tpu.matmul %347, %348, %cst_155 {dimension_numbers = #tpu.dot_dimension_numbers<[1], [1], [0], [0], [0, 0, 1, 0], [], []>} : vector<24x16xbf16>, vector<24x16xbf16>, vector<24x24xf32> -> vector<24x24xf32>
    %cst_156 = arith.constant 2.500000e-01 : f32
    %351 = vector.broadcast %cst_156 : f32 to vector<24x24xf32>
    %352 = arith.mulf %350, %351 : vector<24x24xf32>
    %353 = vector.broadcast %20 : vector<1x24xf32> to vector<24x24xf32>
    %354 = arith.addf %352, %353 : vector<24x24xf32>
    %cst_157 = arith.constant dense<0xFF800000> : vector<24xf32>
    %355 = vector.multi_reduction <maximumf>, %354, %cst_157 [1] : vector<24x24xf32> to vector<24xf32>
    %356 = vector.shape_cast %355 : vector<24xf32> to vector<24x1xf32>
    %357 = vector.broadcast %356 : vector<24x1xf32> to vector<24x24xf32>
    %358 = arith.subf %354, %357 : vector<24x24xf32>
    %359 = math.exp %358 : vector<24x24xf32>
    %cst_158 = arith.constant dense<0.000000e+00> : vector<24xf32>
    %360 = vector.multi_reduction <add>, %359, %cst_158 [1] : vector<24x24xf32> to vector<24xf32>
    %361 = vector.shape_cast %360 : vector<24xf32> to vector<24x1xf32>
    %362 = vector.broadcast %361 : vector<24x1xf32> to vector<24x24xf32>
    %363 = arith.divf %359, %362 : vector<24x24xf32>
    %364 = arith.truncf %363 : vector<24x24xf32> to vector<24x24xbf16>
    %cst_159 = arith.constant dense<0.000000e+00> : vector<24x16xf32>
    %365 = tpu.matmul %364, %349, %cst_159 {dimension_numbers = #tpu.dot_dimension_numbers<[1], [0], [0], [1], [0, 0, 1, 1], [], []>} : vector<24x24xbf16>, vector<24x16xbf16>, vector<24x16xf32> -> vector<24x16xf32>
    %366 = arith.truncf %365 : vector<24x16xf32> to vector<24x16xbf16>
    %367 = vector.extract_strided_slice %242 {offsets = [16, 0], sizes = [16, 32], strides = [1, 1]} : vector<32x32xbf16> to vector<16x32xbf16>
    %cst_160 = arith.constant dense<0.000000e+00> : vector<24x32xf32>
    %368 = tpu.matmul %366, %367, %cst_160 {dimension_numbers = #tpu.dot_dimension_numbers<[1], [0], [0], [1], [0, 0, 1, 1], [], []>} : vector<24x16xbf16>, vector<16x32xbf16>, vector<24x32xf32> -> vector<24x32xf32>
    %369 = arith.addf %346, %368 : vector<24x32xf32>
    %370 = vector.extract_strided_slice %243 {offsets = [24, 0], sizes = [24, 32], strides = [1, 1]} : vector<48x32xf32> to vector<24x32xf32>
    %371 = arith.addf %370, %369 : vector<24x32xf32>
    %372 = vector.broadcast %236 : vector<1x32xf32> to vector<24x32xf32>
    %373 = arith.addf %371, %372 : vector<24x32xf32>
    %c24_161 = arith.constant 24 : index
    %c0_162 = arith.constant 0 : index
    %374 = vector.load %arg24[%c24_161, %c0_162] : memref<48x32xf32, #tpu.memory_space<vmem>>, vector<24x32xf32>
    tpu.vector_store %arg24[%c24_161, %c0_162], %373 {strides = array<i32>} : memref<48x32xf32, #tpu.memory_space<vmem>>, vector<24x32xf32>,
    %c1_163 = arith.constant 1 : index
    %c0_164 = arith.constant 0 : index
    %c0_165 = arith.constant 0 : index
    %375 = vector.load %arg15[%c1_163, %c0_164, %c0_165] : memref<2x32x64xf32, #tpu.memory_space<vmem>>, vector<1x32x64xf32>
    %376 = vector.shape_cast %375 : vector<1x32x64xf32> to vector<32x64xf32>
    %377 = arith.truncf %376 : vector<32x64xf32> to vector<32x64xbf16>
    %c1_166 = arith.constant 1 : index
    %c0_167 = arith.constant 0 : index
    %c0_168 = arith.constant 0 : index
    %378 = vector.load %arg17[%c1_166, %c0_167, %c0_168] : memref<2x64x32xf32, #tpu.memory_space<vmem>>, vector<1x64x32xf32>
    %379 = vector.shape_cast %378 : vector<1x64x32xf32> to vector<64x32xf32>
    %380 = arith.truncf %379 : vector<64x32xf32> to vector<64x32xbf16>
    %c0_169 = arith.constant 0 : index
    %c0_170 = arith.constant 0 : index
    %381 = vector.load %arg24[%c0_169, %c0_170] : memref<48x32xf32, #tpu.memory_space<vmem>>, vector<48x32xf32>
    %c1_171 = arith.constant 1 : index
    %c0_172 = arith.constant 0 : index
    %c0_173 = arith.constant 0 : index
    %382 = vector.load %arg13[%c1_171, %c0_172, %c0_173] : memref<2x1x32xf32, #tpu.memory_space<vmem>>, vector<1x1x32xf32>
    %383 = vector.shape_cast %382 : vector<1x1x32xf32> to vector<1x32xf32>
    %c1_174 = arith.constant 1 : index
    %c0_175 = arith.constant 0 : index
    %c0_176 = arith.constant 0 : index
    %384 = vector.load %arg14[%c1_174, %c0_175, %c0_176] : memref<2x1x32xf32, #tpu.memory_space<vmem>>, vector<1x1x32xf32>
    %385 = vector.shape_cast %384 : vector<1x1x32xf32> to vector<1x32xf32>
    %cst_177 = arith.constant dense<0.000000e+00> : vector<48xf32>
    %386 = vector.multi_reduction <add>, %381, %cst_177 [1] : vector<48x32xf32> to vector<48xf32>
    %387 = vector.shape_cast %386 : vector<48xf32> to vector<48x1xf32>
    %cst_178 = arith.constant 3.200000e+01 : f32
    %388 = vector.broadcast %cst_178 : f32 to vector<48x1xf32>
    %389 = arith.divf %387, %388 : vector<48x1xf32>
    %390 = arith.mulf %381, %381 : vector<48x32xf32>
    %cst_179 = arith.constant dense<0.000000e+00> : vector<48xf32>
    %391 = vector.multi_reduction <add>, %390, %cst_179 [1] : vector<48x32xf32> to vector<48xf32>
    %392 = vector.shape_cast %391 : vector<48xf32> to vector<48x1xf32>
    %cst_180 = arith.constant 3.200000e+01 : f32
    %393 = vector.broadcast %cst_180 : f32 to vector<48x1xf32>
    %394 = arith.divf %392, %393 : vector<48x1xf32>
    %395 = arith.mulf %389, %389 : vector<48x1xf32>
    %396 = arith.subf %394, %395 : vector<48x1xf32>
    %cst_181 = arith.constant 0.000000e+00 : f32
    %397 = vector.broadcast %cst_181 : f32 to vector<48x1xf32>
    %398 = arith.maximumf %396, %397 : vector<48x1xf32>
    %399 = vector.broadcast %389 : vector<48x1xf32> to vector<48x32xf32>
    %400 = arith.subf %381, %399 : vector<48x32xf32>
    %cst_182 = arith.constant 9.99999996E-13 : f32
    %401 = vector.broadcast %cst_182 : f32 to vector<48x1xf32>
    %402 = arith.addf %398, %401 : vector<48x1xf32>
    %403 = math.rsqrt %402 : vector<48x1xf32>
    %404 = vector.broadcast %403 : vector<48x1xf32> to vector<48x32xf32>
    %405 = arith.mulf %400, %404 : vector<48x32xf32>
    %406 = vector.broadcast %383 : vector<1x32xf32> to vector<48x32xf32>
    %407 = arith.mulf %405, %406 : vector<48x32xf32>
    %408 = vector.broadcast %385 : vector<1x32xf32> to vector<48x32xf32>
    %409 = arith.addf %407, %408 : vector<48x32xf32>
    %410 = arith.truncf %409 : vector<48x32xf32> to vector<48x32xbf16>
    %cst_183 = arith.constant dense<0.000000e+00> : vector<48x64xf32>
    %411 = tpu.matmul %410, %377, %cst_183 {dimension_numbers = #tpu.dot_dimension_numbers<[1], [0], [0], [1], [0, 0, 1, 1], [], []>} : vector<48x32xbf16>, vector<32x64xbf16>, vector<48x64xf32> -> vector<48x64xf32>
    %c1_184 = arith.constant 1 : index
    %c0_185 = arith.constant 0 : index
    %c0_186 = arith.constant 0 : index
    %412 = vector.load %arg16[%c1_184, %c0_185, %c0_186] : memref<2x1x64xf32, #tpu.memory_space<vmem>>, vector<1x1x64xf32>
    %413 = vector.shape_cast %412 : vector<1x1x64xf32> to vector<1x64xf32>
    %414 = vector.broadcast %413 : vector<1x64xf32> to vector<48x64xf32>
    %415 = arith.addf %411, %414 : vector<48x64xf32>
    %416 = arith.mulf %415, %415 : vector<48x64xf32>
    %417 = arith.mulf %415, %416 : vector<48x64xf32>
    %cst_187 = arith.constant 4.471500e-02 : f32
    %418 = vector.broadcast %cst_187 : f32 to vector<48x64xf32>
    %419 = arith.mulf %418, %417 : vector<48x64xf32>
    %420 = arith.addf %415, %419 : vector<48x64xf32>
    %cst_188 = arith.constant 0.797884583 : f32
    %421 = vector.broadcast %cst_188 : f32 to vector<48x64xf32>
    %422 = arith.mulf %421, %420 : vector<48x64xf32>
    %423 = math.tanh %422 : vector<48x64xf32>
    %cst_189 = arith.constant 1.000000e+00 : f32
    %424 = vector.broadcast %cst_189 : f32 to vector<48x64xf32>
    %425 = arith.addf %424, %423 : vector<48x64xf32>
    %cst_190 = arith.constant 5.000000e-01 : f32
    %426 = vector.broadcast %cst_190 : f32 to vector<48x64xf32>
    %427 = arith.mulf %426, %425 : vector<48x64xf32>
    %428 = arith.mulf %415, %427 : vector<48x64xf32>
    %429 = arith.truncf %428 : vector<48x64xf32> to vector<48x64xbf16>
    %cst_191 = arith.constant dense<0.000000e+00> : vector<48x32xf32>
    %430 = tpu.matmul %429, %380, %cst_191 {dimension_numbers = #tpu.dot_dimension_numbers<[1], [0], [0], [1], [0, 0, 1, 1], [], []>} : vector<48x64xbf16>, vector<64x32xbf16>, vector<48x32xf32> -> vector<48x32xf32>
    %431 = arith.addf %381, %430 : vector<48x32xf32>
    %c1_192 = arith.constant 1 : index
    %c0_193 = arith.constant 0 : index
    %c0_194 = arith.constant 0 : index
    %432 = vector.load %arg18[%c1_192, %c0_193, %c0_194] : memref<2x1x32xf32, #tpu.memory_space<vmem>>, vector<1x1x32xf32>
    %433 = vector.shape_cast %432 : vector<1x1x32xf32> to vector<1x32xf32>
    %434 = vector.broadcast %433 : vector<1x32xf32> to vector<48x32xf32>
    %435 = arith.addf %431, %434 : vector<48x32xf32>
    %c0_195 = arith.constant 0 : index
    %c0_196 = arith.constant 0 : index
    %436 = vector.load %arg24[%c0_195, %c0_196] : memref<48x32xf32, #tpu.memory_space<vmem>>, vector<48x32xf32>
    tpu.vector_store %arg24[%c0_195, %c0_196], %435 {strides = array<i32>} : memref<48x32xf32, #tpu.memory_space<vmem>>, vector<48x32xf32>,
    %c0_197 = arith.constant 0 : index
    %c0_198 = arith.constant 0 : index
    %437 = vector.load %arg24[%c0_197, %c0_198] : memref<48x32xf32, #tpu.memory_space<vmem>>, vector<1x32xf32>
    %c24_199 = arith.constant 24 : index
    %c0_200 = arith.constant 0 : index
    %438 = vector.load %arg24[%c24_199, %c0_200] : memref<48x32xf32, #tpu.memory_space<vmem>>, vector<1x32xf32>
    %439 = tpu.concatenate %437, %438 in 0 : vector<1x32xf32>, vector<1x32xf32> -> vector<2x32xf32>
    %c0_201 = arith.constant 0 : index
    %c0_202 = arith.constant 0 : index
    %440 = vector.load %arg19[%c0_201, %c0_202] : memref<1x32xf32, #tpu.memory_space<vmem>>, vector<1x32xf32>
    %c0_203 = arith.constant 0 : index
    %c0_204 = arith.constant 0 : index
    %441 = vector.load %arg20[%c0_203, %c0_204] : memref<1x32xf32, #tpu.memory_space<vmem>>, vector<1x32xf32>
    %cst_205 = arith.constant dense<0.000000e+00> : vector<2xf32>
    %442 = vector.multi_reduction <add>, %439, %cst_205 [1] : vector<2x32xf32> to vector<2xf32>
    %443 = vector.shape_cast %442 : vector<2xf32> to vector<2x1xf32>
    %cst_206 = arith.constant 3.200000e+01 : f32
    %444 = vector.broadcast %cst_206 : f32 to vector<2x1xf32>
    %445 = arith.divf %443, %444 : vector<2x1xf32>
    %446 = arith.mulf %439, %439 : vector<2x32xf32>
    %cst_207 = arith.constant dense<0.000000e+00> : vector<2xf32>
    %447 = vector.multi_reduction <add>, %446, %cst_207 [1] : vector<2x32xf32> to vector<2xf32>
    %448 = vector.shape_cast %447 : vector<2xf32> to vector<2x1xf32>
    %cst_208 = arith.constant 3.200000e+01 : f32
    %449 = vector.broadcast %cst_208 : f32 to vector<2x1xf32>
    %450 = arith.divf %448, %449 : vector<2x1xf32>
    %451 = arith.mulf %445, %445 : vector<2x1xf32>
    %452 = arith.subf %450, %451 : vector<2x1xf32>
    %cst_209 = arith.constant 0.000000e+00 : f32
    %453 = vector.broadcast %cst_209 : f32 to vector<2x1xf32>
    %454 = arith.maximumf %452, %453 : vector<2x1xf32>
    %455 = vector.broadcast %445 : vector<2x1xf32> to vector<2x32xf32>
    %456 = arith.subf %439, %455 : vector<2x32xf32>
    %cst_210 = arith.constant 9.99999996E-13 : f32
    %457 = vector.broadcast %cst_210 : f32 to vector<2x1xf32>
    %458 = arith.addf %454, %457 : vector<2x1xf32>
    %459 = math.rsqrt %458 : vector<2x1xf32>
    %460 = vector.broadcast %459 : vector<2x1xf32> to vector<2x32xf32>
    %461 = arith.mulf %456, %460 : vector<2x32xf32>
    %462 = vector.broadcast %440 : vector<1x32xf32> to vector<2x32xf32>
    %463 = arith.mulf %461, %462 : vector<2x32xf32>
    %464 = vector.broadcast %441 : vector<1x32xf32> to vector<2x32xf32>
    %465 = arith.addf %463, %464 : vector<2x32xf32>
    %466 = arith.truncf %465 : vector<2x32xf32> to vector<2x32xbf16>
    %c0_211 = arith.constant 0 : index
    %c0_212 = arith.constant 0 : index
    %467 = vector.load %arg21[%c0_211, %c0_212] : memref<32x128xf32, #tpu.memory_space<vmem>>, vector<32x128xf32>
    %468 = arith.truncf %467 : vector<32x128xf32> to vector<32x128xbf16>
    %cst_213 = arith.constant dense<0.000000e+00> : vector<2x128xf32>
    %469 = tpu.matmul %466, %468, %cst_213 {dimension_numbers = #tpu.dot_dimension_numbers<[1], [0], [0], [1], [0, 0, 1, 1], [], []>} : vector<2x32xbf16>, vector<32x128xbf16>, vector<2x128xf32> -> vector<2x128xf32>
    %c0_214 = arith.constant 0 : index
    %c0_215 = arith.constant 0 : index
    %470 = vector.load %arg22[%c0_214, %c0_215] : memref<1x128xf32, #tpu.memory_space<vmem>>, vector<1x128xf32>
    %471 = vector.broadcast %470 : vector<1x128xf32> to vector<2x128xf32>
    %472 = arith.addf %469, %471 : vector<2x128xf32>
    %cst_216 = arith.constant dense<0xFF800000> : vector<2xf32>
    %473 = vector.multi_reduction <maximumf>, %472, %cst_216 [1] : vector<2x128xf32> to vector<2xf32>
    %474 = vector.shape_cast %473 : vector<2xf32> to vector<2x1xf32>
    %475 = vector.broadcast %474 : vector<2x1xf32> to vector<2x128xf32>
    %476 = arith.subf %472, %475 : vector<2x128xf32>
    %477 = math.exp %476 : vector<2x128xf32>
    %cst_217 = arith.constant dense<0.000000e+00> : vector<2xf32>
    %478 = vector.multi_reduction <add>, %477, %cst_217 [1] : vector<2x128xf32> to vector<2xf32>
    %479 = vector.shape_cast %478 : vector<2xf32> to vector<2x1xf32>
    %480 = vector.broadcast %479 : vector<2x1xf32> to vector<2x128xf32>
    %481 = arith.divf %477, %480 : vector<2x128xf32>
    %c0_218 = arith.constant 0 : index
    %c0_219 = arith.constant 0 : index
    %482 = vector.load %arg23[%c0_218, %c0_219] : memref<2x128xf32, #tpu.memory_space<vmem>>, vector<2x128xf32>
    tpu.vector_store %arg23[%c0_218, %c0_219], %481 {strides = array<i32>} : memref<2x128xf32, #tpu.memory_space<vmem>>, vector<2x128xf32>,
    return
  }
  func.func @transform_0(%arg0: i32) -> (i32, i32) {
    %c0_i32 = arith.constant 0 : i32
    %c0_i32_0 = arith.constant 0 : i32
    %c0_i32_1 = arith.constant 0 : i32
    return %c0_i32, %c0_i32_0 : i32, i32
  }
  func.func @transform_1(%arg0: i32) -> (i32, i32) {
    %c0_i32 = arith.constant 0 : i32
    %c0_i32_0 = arith.constant 0 : i32
    %c0_i32_1 = arith.constant 0 : i32
    return %c0_i32, %c0_i32_0 : i32, i32
  }
  func.func @transform_2(%arg0: i32) -> (i32, i32) {
    %c0_i32 = arith.constant 0 : i32
    %c0_i32_0 = arith.constant 0 : i32
    %c0_i32_1 = arith.constant 0 : i32
    return %c0_i32, %c0_i32_0 : i32, i32
  }
  func.func @transform_3(%arg0: i32) -> (i32, i32) {
    %c0_i32 = arith.constant 0 : i32
    %c0_i32_0 = arith.constant 0 : i32
    %c0_i32_1 = arith.constant 0 : i32
    return %c0_i32, %c0_i32_0 : i32, i32
  }
  func.func @transform_4(%arg0: i32) -> (i32, i32) {
    %c0_i32 = arith.constant 0 : i32
    %c0_i32_0 = arith.constant 0 : i32
    %c0_i32_1 = arith.constant 0 : i32
    return %c0_i32, %c0_i32_0 : i32, i32
  }
  func.func @transform_5(%arg0: i32) -> (i32, i32) {
    %c0_i32 = arith.constant 0 : i32
    %c0_i32_0 = arith.constant 0 : i32
    %c0_i32_1 = arith.constant 0 : i32
    return %c0_i32, %c0_i32_0 : i32, i32
  }
  func.func @transform_6(%arg0: i32) -> (i32, i32, i32) {
    %c0_i32 = arith.constant 0 : i32
    %c0_i32_0 = arith.constant 0 : i32
    %c0_i32_1 = arith.constant 0 : i32
    %c0_i32_2 = arith.constant 0 : i32
    return %c0_i32, %c0_i32_0, %c0_i32_1 : i32, i32, i32
  }
  func.func @transform_7(%arg0: i32) -> (i32, i32, i32) {
    %c0_i32 = arith.constant 0 : i32
    %c0_i32_0 = arith.constant 0 : i32
    %c0_i32_1 = arith.constant 0 : i32
    %c0_i32_2 = arith.constant 0 : i32
    return %c0_i32, %c0_i32_0, %c0_i32_1 : i32, i32, i32
  }
  func.func @transform_8(%arg0: i32) -> (i32, i32, i32) {
    %c0_i32 = arith.constant 0 : i32
    %c0_i32_0 = arith.constant 0 : i32
    %c0_i32_1 = arith.constant 0 : i32
    %c0_i32_2 = arith.constant 0 : i32
    return %c0_i32, %c0_i32_0, %c0_i32_1 : i32, i32, i32
  }
  func.func @transform_9(%arg0: i32) -> (i32, i32, i32) {
    %c0_i32 = arith.constant 0 : i32
    %c0_i32_0 = arith.constant 0 : i32
    %c0_i32_1 = arith.constant 0 : i32
    %c0_i32_2 = arith.constant 0 : i32
    return %c0_i32, %c0_i32_0, %c0_i32_1 : i32, i32, i32
  }
  func.func @transform_10(%arg0: i32) -> (i32, i32, i32) {
    %c0_i32 = arith.constant 0 : i32
    %c0_i32_0 = arith.constant 0 : i32
    %c0_i32_1 = arith.constant 0 : i32
    %c0_i32_2 = arith.constant 0 : i32
    return %c0_i32, %c0_i32_0, %c0_i32_1 : i32, i32, i32
  }
  func.func @transform_11(%arg0: i32) -> (i32, i32, i32) {
    %c0_i32 = arith.constant 0 : i32
    %c0_i32_0 = arith.constant 0 : i32
    %c0_i32_1 = arith.constant 0 : i32
    %c0_i32_2 = arith.constant 0 : i32
    return %c0_i32, %c0_i32_0, %c0_i32_1 : i32, i32, i32
  }
  func.func @transform_12(%arg0: i32) -> (i32, i32, i32) {
    %c0_i32 = arith.constant 0 : i32
    %c0_i32_0 = arith.constant 0 : i32
    %c0_i32_1 = arith.constant 0 : i32
    %c0_i32_2 = arith.constant 0 : i32
    return %c0_i32, %c0_i32_0, %c0_i32_1 : i32, i32, i32
  }
  func.func @transform_13(%arg0: i32) -> (i32, i32, i32) {
    %c0_i32 = arith.constant 0 : i32
    %c0_i32_0 = arith.constant 0 : i32
    %c0_i32_1 = arith.constant 0 : i32
    %c0_i32_2 = arith.constant 0 : i32
    return %c0_i32, %c0_i32_0, %c0_i32_1 : i32, i32, i32
  }
  func.func @transform_14(%arg0: i32) -> (i32, i32, i32) {
    %c0_i32 = arith.constant 0 : i32
    %c0_i32_0 = arith.constant 0 : i32
    %c0_i32_1 = arith.constant 0 : i32
    %c0_i32_2 = arith.constant 0 : i32
    return %c0_i32, %c0_i32_0, %c0_i32_1 : i32, i32, i32
  }
  func.func @transform_15(%arg0: i32) -> (i32, i32, i32) {
    %c0_i32 = arith.constant 0 : i32
    %c0_i32_0 = arith.constant 0 : i32
    %c0_i32_1 = arith.constant 0 : i32
    %c0_i32_2 = arith.constant 0 : i32
    return %c0_i32, %c0_i32_0, %c0_i32_1 : i32, i32, i32
  }
  func.func @transform_16(%arg0: i32) -> (i32, i32, i32) {
    %c0_i32 = arith.constant 0 : i32
    %c0_i32_0 = arith.constant 0 : i32
    %c0_i32_1 = arith.constant 0 : i32
    %c0_i32_2 = arith.constant 0 : i32
    return %c0_i32, %c0_i32_0, %c0_i32_1 : i32, i32, i32
  }
  func.func @transform_17(%arg0: i32) -> (i32, i32, i32) {
    %c0_i32 = arith.constant 0 : i32
    %c0_i32_0 = arith.constant 0 : i32
    %c0_i32_1 = arith.constant 0 : i32
    %c0_i32_2 = arith.constant 0 : i32
    return %c0_i32, %c0_i32_0, %c0_i32_1 : i32, i32, i32
  }
  func.func @transform_18(%arg0: i32) -> (i32, i32) {
    %c0_i32 = arith.constant 0 : i32
    %c0_i32_0 = arith.constant 0 : i32
    %c0_i32_1 = arith.constant 0 : i32
    return %c0_i32, %c0_i32_0 : i32, i32
  }
  func.func @transform_19(%arg0: i32) -> (i32, i32) {
    %c0_i32 = arith.constant 0 : i32
    %c0_i32_0 = arith.constant 0 : i32
    %c0_i32_1 = arith.constant 0 : i32
    return %c0_i32, %c0_i32_0 : i32, i32
  }
  func.func @transform_20(%arg0: i32) -> (i32, i32) {
    %c0_i32 = arith.constant 0 : i32
    %c0_i32_0 = arith.constant 0 : i32
    %c0_i32_1 = arith.constant 0 : i32
    return %c0_i32, %c0_i32_0 : i32, i32
  }
  func.func @transform_21(%arg0: i32) -> (i32, i32) {
    %c0_i32 = arith.constant 0 : i32
    %c0_i32_0 = arith.constant 0 : i32
    %c0_i32_1 = arith.constant 0 : i32
    return %c0_i32, %c0_i32_0 : i32, i32
  }
  func.func @transform_22(%arg0: i32) -> (i32, i32) {
    %c0_i32 = arith.constant 0 : i32
    %c0_i32_0 = arith.constant 0 : i32
    %c0_i32_1 = arith.constant 0 : i32
    return %c0_i32, %c0_i32_0 : i32, i32
  }
}

</mosaic_0001>

<bundles_post_ra>
// kernel: view_mode_forward.1
= control target key start
LH: loop header
LB: loop body
LE: loop exit
PB: predicated region body
PF: predicated region fallthrough
CT: control target
= control target key end

     0   :  { %s5333_s0 = inlined_call_operand.vmem [shape: f32[32,48], index: 0, kind: input, shape index: {}]   ;;  %s5334_s1 = inlined_call_operand.vmem [shape: f32[48,32], index: 1, kind: input, shape index: {}]   ;;  %s5335_s2 = inlined_call_operand.vmem [shape: f32[1,32], index: 2, kind: input, shape index: {}]   ;;  %s5336_s3 = inlined_call_operand.vmem [shape: f32[1,32], index: 3, kind: input, shape index: {}]   ;;  %s5337_s4 = inlined_call_operand.vmem [shape: f32[16,32], index: 4, kind: input, shape index: {}]   ;;  %s5338_s5 = inlined_call_operand.vmem [shape: f32[1,24], index: 5, kind: input, shape index: {}]   ;;  %s5339_s6 = inlined_call_operand.vmem [shape: f32[2,1,32], index: 6, kind: input, shape index: {}]   ;;  %s5340_s7 = inlined_call_operand.vmem [shape: f32[2,1,32], index: 7, kind: input, shape index: {}]   ;;  %s5341_s8 = inlined_call_operand.vmem [shape: f32[2,32,96], index: 8, kind: input, shape index: {}]   ;;  %s5342_s9 = inlined_call_operand.vmem [shape: f32[2,1,96], index: 9, kind: input, shape index: {}]   ;;  %s5343_s10 = inlined_call_operand.vmem [shape: f32[2,32,32], index: 10, kind: input, shape index: {}]   ;;  %s5344_s11 = inlined_call_operand.vmem [shape: f32[2,1,32], index: 11, kind: input, shape index: {}]   ;;  %s5345_s12 = inlined_call_operand.vmem [shape: f32[2,1,32], index: 12, kind: input, shape index: {}]   ;;  %s5346_s13 = inlined_call_operand.vmem [shape: f32[2,1,32], index: 13, kind: input, shape index: {}]   ;;  %s5347_s14 = inlined_call_operand.vmem [shape: f32[2,32,64], index: 14, kind: input, shape index: {}]   ;;  %s5348_s15 = inlined_call_operand.vmem [shape: f32[2,1,64], index: 15, kind: input, shape index: {}]   ;;  %s5349_s16 = inlined_call_operand.vmem [shape: f32[2,64,32], index: 16, kind: input, shape index: {}]   ;;  %s5350_s17 = inlined_call_operand.vmem [shape: f32[2,1,32], index: 17, kind: input, shape index: {}]   ;;  %s5351_s18 = inlined_call_operand.vmem [shape: f32[1,32], index: 18, kind: input, shape index: {}]   ;;  %s5352_s19 = inlined_call_operand.vmem [shape: f32[1,32], index: 19, kind: input, shape index: {}]   ;;  %s5353_s20 = inlined_call_operand.vmem [shape: f32[32,128], index: 20, kind: input, shape index: {}]   ;;  %s5354_s21 = inlined_call_operand.vmem [shape: f32[1,128], index: 21, kind: input, shape index: {}]   ;;  %s5355_s22 = inlined_call_operand.hbm [shape: f32[2,128], index: 22, kind: output, shape index: {}]  }
   0x1   :  { %5361 = sst [smem:[#allocation6_spill]] %s5333_s0 }
   0x2   :  { %5362 = sst [smem:[#allocation7_spill]] %s5334_s1 }
   0x3   :  { %5363 = sst [smem:[#allocation8_spill]] %s5335_s2 }
   0x4   :  { %5364 = sst [smem:[#allocation9_spill]] %s5336_s3 }
   0x5   :  { %5365 = sst [smem:[#allocation10_spill]] %s5337_s4 }
   0x6   :  { %5366 = sst [smem:[#allocation11_spill]] %s5338_s5 }
   0x7   :  { %5367 = sst [smem:[#allocation12_spill]] %s5339_s6 }
   0x8   :  { %s5368_s29 = sld [smem:[#allocation7_spill]]  ;;  %s5369_s3 = sld [smem:[#allocation6_spill]]  ;;  %vm95_vm0 = vcmask 392192  }
   0xe   :  { %v79_v0 = vld [vmem:[%s5368_s29] sm:$0xff]  ;;  %v80_v1 = vld [vmem:[%s5368_s29 + $0x8] sm:$0xff]  ;;  %v81_v2 = vld [vmem:[%s5368_s29 + $0x10] sm:$0xff] }
   0xf   :  { %v85_v3 = vpack.c.bf16 %v80_v1, %v79_v0  ;;  %v82_v4 = vld [vmem:[%s5368_s29 + $0x18] sm:$0xff]  ;;  %v83_v5 = vld [vmem:[%s5368_s29 + $0x20] sm:$0xff]  ;;  %v84_v7 = vld [vmem:[%s5368_s29 + $0x28] sm:$0xff] }
  0x10   :  { %v86_v6 = vpack.c.bf16 %v82_v4, %v81_v2  ;;  %v73_v8 = vld [vmem:[%s5369_s3] sm:$0xff]  ;;  %v74_v9 = vld [vmem:[%s5369_s3 + $0x8] sm:$0xff] }
  0x11   :  { %3609 = vmatprep.subr.bf16.mxu0 %v85_v3  ;;  %v77_v10 = vpack.c.bf16 %v74_v9, %v73_v8 }
  0x12   :  { %27 = vsyncpa [#allocation4], 0  ;;  %3610 = vmatpush3.bf16.msra.mxu0 %v85_v3  ;;  %v87_v11 = vpack.c.bf16 %v84_v7, %v83_v5  ;;  %v75_v12 = vld [vmem:[%s5369_s3 + $0x10] sm:$0xff]  ;;  %v76_v13 = vld [vmem:[%s5369_s3 + $0x18] sm:$0xff]  ;;  %s5370_s24 = sld [smem:[#allocation9_spill]]  ;;  %vm154_vm1 = vcmask 261120  }
  0x13   :  { %3611 = vmatprep.subr.bf16.mxu0 %v86_v6  ;;  %3615 = vmatprep.mubr.msk.bf16.mxu0 %vm95_vm0, %v77_v10  ;;  %v78_v14 = vpack.c.bf16 %v76_v13, %v75_v12  ;;  %vm161_vm2 = vcmask 253952   ;;  %v4142_v16 = vmov 0.0   ;;  %s5371_s26 = sld [smem:[#allocation8_spill]]  ;;  %s5372_s3 = sld [smem:[#allocation10_spill]]  ;;  %v177_v48 = vld [vmem:[%s5341_s8] sm:$0xff]  ;;  %v178_v49 = vld [vmem:[%s5341_s8 + $0x8] sm:$0xff] }
  0x14   :  { %158 = vst.msk [vmem:[#allocation2 + $0x18] sm:$0xff] %vm154_vm1, %v4142_v16  ;;  %159 = vst.msk [vmem:[#allocation2 + $0x20] sm:$0xff] %vm154_vm1, %v4142_v16  ;;  %3619 = vmatprep.subr.bf16.mxu1 %v4142_v16  ;;  %v179_v50 = vld [vmem:[%s5341_s8 + $0x10] sm:$0xff]  ;;  %v181_v51 = vpack.c.bf16 %v178_v49, %v177_v48  ;;  %v180_v52 = vld [vmem:[%s5341_s8 + $0x18] sm:$0xff]  ;;  %vm4143_vm3 = vmmov 0   ;;  %s5373_s2 = sld [smem:[#allocation12_spill]] }
  0x15   :  { %155 = vst.msk [vmem:[#allocation2] sm:$0xff] %vm154_vm1, %v4142_v16  ;;  %156 = vst.msk [vmem:[#allocation2 + $0x8] sm:$0xff] %vm154_vm1, %v4142_v16  ;;  %3623 = vmatprep.mubr.msk.bf16.mxu1 %vm4143_vm3, %v4142_v16  ;;  %v182_v53 = vpack.c.bf16 %v180_v52, %v179_v50  ;;  %vm400_vm4 = vcmask 130048   ;;  %s4144_s4 = smov 96   ;;  %s4145_s0 = smov 112   ;;  %vm473_vm5 = vcmask 195584  }
  0x16   :  { %3612 = vmatpush3.bf16.msra.mxu0 %v86_v6  ;;  %157 = vst.msk [vmem:[#allocation2 + $0x10] sm:$0xff] %vm154_vm1, %v4142_v16  ;;  %160 = vst.msk [vmem:[#allocation2 + $0x28] sm:$0xff] %vm154_vm1, %v4142_v16  ;;  %3620 = vmatpush3.bf16.msra.mxu1 %v181_v51  ;;  %s4146_s29 = smov 80   ;;  %s5374_s5 = sld [smem:[#allocation11_spill]]  ;;  %vm520_vm6 = vcmask 1043456   ;;  %vm1613_vm7 = vcmask 523264  }
  0x17   :  { %3613 = vmatprep.subr.bf16.mxu0 %v87_v11  ;;  %3621 = vmatprep.subr.bf16.mxu1 %v4142_v16  ;;  %s4148_s6 = smov 48   ;;  %vm3242_vm8 = vcmask 1040384   ;;  %vm3246_vm9 = vcmask 254976   ;;  %vm3334_vm10 = vcmask 1041408  }
  0x18   :  { %v151_v15 = vld [vmem:[%s5370_s24] sm:$0x1]  ;;  %s4147_s24 = smov 64  }
  0x19   :  { %167 = vst.msk [vmem:[#allocation2 + $0x18] sm:$0x1] %vm161_vm2, %v151_v15  ;;  %162 = vst.msk [vmem:[#allocation2] sm:$0x1] %vm161_vm2, %v151_v15  ;;  %v3361_v17 = vld [vmem:[%s5371_s26] ss:$0 sm:$0xff] }
  0x1a   :  { %3614 = vmatpush3.bf16.msra.mxu0 %v87_v11  ;;  %v152_v19 = vld [vmem:[%s5372_s3] sm:$0xff]  ;;  %v153_v24 = vld [vmem:[%s5372_s3 + $0x8] sm:$0xff]  ;;  %3622 = vmatpush3.bf16.msra.mxu1 %v182_v53 }
  0x1d   :  { %3616 = vmatmul.mubr.msk.bf16.vlgmr.msra.gmra.mrb[0].mxu0 %vm95_vm0, %v78_v14 }
  0xf0   :  { %v3617_v18 = vpop.f32.mrb[0].mxu0 }
  0xf1   :  { %v145_v20 = vadd.f32 %v3617_v18, %v3361_v17  ;;  %v136_v21 = vpop.f32.mrb[1].mxu0 }
  0xf2   :  { %v137_v22 = vadd.f32 %v3361_v17, %v136_v21  ;;  %v3618_v23 = vpop.f32.mrb[2].mxu0 }
  0xf3   :  { %v168_v25 = vadd.f32 %v152_v19, %v145_v20  ;;  %v148_v26 = vadd.f32 %v3618_v23, %v3361_v17  ;;  %v139_v27 = vpop.f32.mrb[3].mxu0 }
  0xf4   :  { %v163_v28 = vadd.f32 %v152_v19, %v137_v22  ;;  %v140_v29 = vadd.f32 %v3361_v17, %v139_v27 }
  0xf5   :  { %170 = vst.msk [vmem:[#allocation2 + $0x19] sm:$0xff] %vm154_vm1, %v168_v25  ;;  %v169_v30 = vadd.f32 %v153_v24, %v148_v26  ;;  %v4371_v26 = vld [vmem:[%s5373_s2] ss:$0 sm:$0xff] }
  0xf6   :  { %165 = vst.msk [vmem:[#allocation2 + $0x1] sm:$0xff] %vm154_vm1, %v163_v28  ;;  %v164_v31 = vadd.f32 %v153_v24, %v140_v29 }
  0xf7   :  { %171 = vst.msk [vmem:[#allocation2 + $0x21] sm:$0xff] %vm154_vm1, %v169_v30 }
  0xf8   :  { %166 = vst.msk [vmem:[#allocation2 + $0x9] sm:$0xff] %vm154_vm1, %v164_v31  ;;  %v4378_v31 = vld [vmem:[%s5340_s7] ss:$0 sm:$0xff] }
  0xfc   :  { %v4340_v41 = vld [vmem:[#allocation2 + $0x18] sm:$0xff] }
  0xfd   :  { %v4324_v32 = vld [vmem:[#allocation2] sm:$0xff]  ;;  %v204_v44 = vsel %vm154_vm1, %v4340_v41, 0.0  ;;  %v223_v45 = vmul.f32 %v4340_v41, %v4340_v41 }
  0xfe   :  { %v195_v33 = vsel %vm154_vm1, %v4324_v32, 0.0  ;;  %v220_v34 = vmul.f32 %v4324_v32, %v4324_v32 }
  0xff   :  { %196 = vadd.xlane.f32.xlu0 %v195_v33  ;;  %v4330_v35 = vld [vmem:[#allocation2 + $0x8] sm:$0xff]  ;;  %v4337_v39 = vld [vmem:[#allocation2 + $0x10] sm:$0xff]  ;;  %v235_v47 = vsel %vm154_vm1, %v223_v45, 0.0 }
 0x100   :  { %v226_v36 = vsel %vm154_vm1, %v220_v34, 0.0  ;;  %v221_v37 = vmul.f32 %v4330_v35, %v4330_v35  ;;  %v198_v38 = vsel %vm154_vm1, %v4330_v35, 0.0  ;;  %v201_v42 = vsel %vm154_vm1, %v4337_v39, 0.0 }
 0x101   :  { %227 = vadd.xlane.f32.xlu1 %v226_v36  ;;  %v222_v43 = vmul.f32 %v4337_v39, %v4337_v39 }
 0x102   :  { %v229_v40 = vsel %vm154_vm1, %v221_v37, 0.0 }
 0x103   :  { %199 = vadd.xlane.f32.xlu0 %v198_v38  ;;  %v232_v46 = vsel %vm154_vm1, %v222_v43, 0.0 }
 0x105   :  { %230 = vadd.xlane.f32.xlu1 %v229_v40 }
 0x107   :  { %202 = vadd.xlane.f32.xlu0 %v201_v42 }
 0x109   :  { %205 = vadd.xlane.f32.xlu1 %v204_v44 }
 0x10b   :  { %233 = vadd.xlane.f32.xlu0 %v232_v46 }
 0x10d   :  { %236 = vadd.xlane.f32.xlu1 %v235_v47 }
 0x18c   :  { %v197_v54 = vpop.xlane.xlu0 %196 }
 0x18d   :  { %v214_v55 = vmul.f32 0.03125, %v197_v54 }
 0x18e   :  { %v228_v56 = vpop.xlane.xlu1 %227 }
 0x18f   :  { %v250_v57 = vmul.f32 %v214_v55, %v214_v55  ;;  %v244_v58 = vmul.f32 0.03125, %v228_v56  ;;  %v268_v22 = vsub.f32 %v4324_v32, %v214_v55 }
 0x190   :  { %v200_v59 = vpop.xlane.xlu0 %199 }
 0x191   :  { %v256_v60 = vsub.f32 %v244_v58, %v250_v57  ;;  %v215_v61 = vmul.f32 0.03125, %v200_v59 }
 0x192   :  { %v231_v62 = vpop.xlane.xlu1 %230 }
 0x193   :  { %v262_v63 = vmax.f32 %v256_v60, 0.0  ;;  %v251_v0 = vmul.f32 %v215_v61, %v215_v61  ;;  %v245_v1 = vmul.f32 0.03125, %v231_v62  ;;  %v269_v27 = vsub.f32 %v4330_v35, %v215_v61 }
 0x194   :  { %v203_v2 = vpop.xlane.xlu0 %202 }
 0x195   :  { %v274_v3 = vadd.f32 1e-12, %v262_v63  ;;  %v257_v4 = vsub.f32 %v245_v1, %v251_v0  ;;  %v216_v5 = vmul.f32 0.03125, %v203_v2 }
 0x196   :  { %v206_v6 = vpop.xlane.xlu1 %205 }
 0x197   :  { %3939 = vrsqrt.f32 %v274_v3  ;;  %v263_v7 = vmax.f32 %v257_v4, 0.0  ;;  %v217_v8 = vmul.f32 0.03125, %v206_v6  ;;  %v252_v11 = vmul.f32 %v216_v5, %v216_v5 }
 0x198   :  { %v234_v9 = vpop.xlane.xlu0 %233  ;;  %v270_v34 = vsub.f32 %v4337_v39, %v216_v5 }
 0x199   :  { %v275_v10 = vadd.f32 1e-12, %v263_v7  ;;  %v246_v12 = vmul.f32 0.03125, %v234_v9  ;;  %v253_v14 = vmul.f32 %v217_v8, %v217_v8  ;;  %v271_v40 = vsub.f32 %v4340_v41, %v217_v8  ;;  %v4398_v41 = vld [vmem:[%s5342_s9] ss:$0 sm:$0xff] }
 0x19a   :  { %v237_v13 = vpop.xlane.xlu1 %236 }
 0x19b   :  { %3941 = vrsqrt.f32 %v275_v10  ;;  %v258_v15 = vsub.f32 %v246_v12, %v252_v11  ;;  %v247_v17 = vmul.f32 0.03125, %v237_v13  ;;  %v4437_v13 = vld [vmem:[%s5374_s5] ss:$0 sm:$0xff] }
 0x19d   :  { %v264_v18 = vmax.f32 %v258_v15, 0.0  ;;  %v259_v19 = vsub.f32 %v247_v17, %v253_v14 }
 0x19f   :  { %v276_v20 = vadd.f32 1e-12, %v264_v18  ;;  %v265_v21 = vmax.f32 %v259_v19, 0.0 }
 0x1a1   :  { %v3940_v23 = vpop.eup %3939  ;;  %3943 = vrsqrt.f32 %v276_v20  ;;  %v277_v24 = vadd.f32 1e-12, %v265_v21 }
 0x1a2   :  { %v286_v25 = vmul.f32 %v3940_v23, %v268_v22 }
 0x1a3   :  { %3945 = vrsqrt.f32 %v277_v24 }
 0x1a4   :  { %v298_v30 = vmul.f32 %v4371_v26, %v286_v25 }
 0x1a5   :  { %v3942_v28 = vpop.eup %3941 }
 0x1a6   :  { %v287_v29 = vmul.f32 %v3942_v28, %v269_v27  ;;  %v310_v36 = vadd.f32 %v4378_v31, %v298_v30 }
 0x1a8   :  { %v299_v33 = vmul.f32 %v4371_v26, %v287_v29 }
 0x1aa   :  { %v311_v37 = vadd.f32 %v4378_v31, %v299_v33 }
 0x1ab   :  { %v3944_v38 = vpop.eup %3943 }
 0x1ac   :  { %v316_v42 = vpack.c.bf16 %v311_v37, %v310_v36  ;;  %v288_v43 = vmul.f32 %v3944_v38, %v270_v34 }
 0x1ad   :  { %v3946_v44 = vpop.eup %3945 }
 0x1ae   :  { %3624 = vmatmul.mubr.msk.bf16.vlgmr.msra.gmra.mrb[0].mxu1 %vm154_vm1, %v316_v42  ;;  %v289_v45 = vmul.f32 %v3946_v44, %v271_v40  ;;  %v300_v46 = vmul.f32 %v4371_v26, %v288_v43  ;;  %v4449_v43 = vld [vmem:[#allocation2 + $0x28] sm:$0xff] }
 0x1af   :  { %3627 = vmatprep.mubr.msk.bf16.mxu1 %vm4143_vm3, %v4142_v16 }
 0x1b0   :  { %v301_v47 = vmul.f32 %v4371_v26, %v289_v45  ;;  %v312_v48 = vadd.f32 %v4378_v31, %v300_v46  ;;  %v210_v45 = vsel %vm154_vm1, %v4449_v43, 0.0  ;;  %v225_v46 = vmul.f32 %v4449_v43, %v4449_v43 }
 0x1b2   :  { %v313_v49 = vadd.f32 %v4378_v31, %v301_v47 }
 0x1b4   :  { %v317_v50 = vpack.c.bf16 %v313_v49, %v312_v48  ;;  %v4457_v48 = vld [vmem:[#allocation2 + $0x20] sm:$0xff]  ;;  %v241_v49 = vsel %vm154_vm1, %v225_v46, 0.0 }
 0x1b6   :  { %3628 = vmatmul.mubr.msk.bf16.gmra.mrb[4].mxu1 %vm154_vm1, %v317_v50  ;;  %v207_v50 = vsel %vm154_vm1, %v4457_v48, 0.0 }
 0x1b7   :  { %3631 = vmatprep.mubr.msk.bf16.mxu1 %vm4143_vm3, %v4142_v16 }
 0x281   :  { %v368_v51 = vpop.f32.mrb[0].mxu1 }
 0x282   :  { %v3625_v52 = vpop.f32.mrb[1].mxu1  ;;  %v369_v54 = vadd.f32 %v4398_v41, %v368_v51  ;;  %v224_v51 = vmul.f32 %v4457_v48, %v4457_v48 }
 0x283   :  { %v371_v53 = vpop.f32.mrb[2].mxu1 }
 0x284   :  { %v372_v55 = vadd.f32 %v4398_v41, %v371_v53  ;;  %v3626_v56 = vpop.f32.mrb[3].mxu1  ;;  %v238_v52 = vsel %vm154_vm1, %v224_v51, 0.0 }
 0x286   :  { %v4402_v57 = vpack.c.bf16 %v372_v55, %v369_v54 }
 0x288   :  { %396 = vrot.lane.b32.xlu0 %v4402_v57, %s4144_s4  ;;  %3639 = vmatprep.mubr.msk.bf16.mxu0 %vm400_vm4, %v4402_v57 }
 0x289   :  { %v376_v58 = vpop.f32.mrb[4].mxu1 }
 0x28a   :  { %v3629_v59 = vpop.f32.mrb[5].mxu1  ;;  %v377_v61 = vadd.f32 %v4398_v41, %v376_v58 }
 0x28b   :  { %v379_v60 = vpop.f32.mrb[6].mxu1 }
 0x28c   :  { %v380_v62 = vadd.f32 %v4398_v41, %v379_v60  ;;  %574 = vrot.lane.b32.xlu0 %v4402_v57, %s4145_s0  ;;  %v3630_v63 = vpop.f32.mrb[7].mxu1 }
 0x28e   :  { %v4412_v0 = vpack.c.bf16 %v380_v62, %v377_v61 }
 0x290   :  { %398 = vrot.lane.b32.xlu1 %v4412_v0, %s4144_s4 }
 0x294   :  { %578 = vrot.lane.b32.xlu1 %v4402_v57, %s4146_s29 }
 0x298   :  { %580 = vrot.lane.b32.xlu1 %v4412_v0, %s4146_s29 }
 0x29c   :  { %576 = vrot.lane.b32.xlu1 %v4412_v0, %s4145_s0 }
 0x2fa   :  { %v397_v1 = vpop.permute.xlu0 %396 }
 0x2fb   :  { %3907 = vmatprep.subr.msk.bf16.mxu0 %vm400_vm4, %v397_v1  ;;  %v408_v2 = vsel %vm400_vm4, %v397_v1, 0 }
 0x2fc   :  { %3636 = vmatpush3.bf16.xpose.msra.mxu0 %v408_v2 }
 0x2fe   :  { %v575_v6 = vpop.permute.xlu0 %574 }
 0x302   :  { %v399_v3 = vpop.permute.xlu1 %398 }
 0x303   :  { %3908 = vmatprep.subr.msk.bf16.mxu0 %vm400_vm4, %v399_v3  ;;  %v411_v4 = vsel %vm400_vm4, %v399_v3, 0 }
 0x304   :  { %3638 = vmatpush3.bf16.xpose.msra.mxu0 %v411_v4 }
 0x306   :  { %v579_v5 = vpop.permute.xlu1 %578 }
 0x307   :  { %3910 = vmatprep.subr.msk.bf16.mxu0 %vm400_vm4, %v579_v5  ;;  %v589_v7 = vsel %vm400_vm4, %v579_v5, 0 }
 0x30a   :  { %v581_v8 = vpop.permute.xlu1 %580 }
 0x30b   :  { %3640 = vmatmul.mubr.msk.bf16.vlgmr.msra.gmra.mrb[4].mxu0 %vm400_vm4, %v4412_v0  ;;  %v592_v9 = vsel %vm400_vm4, %v581_v8, 0 }
 0x30c   :  { %3652 = vmatpush3.bf16.xpose.msra.mxu0 %v589_v7  ;;  %3655 = vmatprep.mubr.msk.bf16.mxu0 %vm400_vm4, %v575_v6 }
 0x30d   :  { %3911 = vmatprep.subr.msk.bf16.mxu0 %vm400_vm4, %v581_v8 }
 0x30e   :  { %v577_v10 = vpop.permute.xlu1 %576 }
 0x314   :  { %3654 = vmatpush3.bf16.xpose.msra.mxu0 %v592_v9 }
 0x31b   :  { %3656 = vmatmul.mubr.msk.bf16.vlgmr.msra.gmra.mrb[8].mxu0 %vm400_vm4, %v577_v10 }
 0x3de   :  { %v3641_v11 = vpop.f32.mrb[4].mxu0 }
 0x3df   :  { %v447_v12 = vpop.f32.mrb[5].mxu0  ;;  %v463_v14 = vmul.f32 0.25, %v3641_v11 }
 0x3e0   :  { %v461_v15 = vmul.f32 0.25, %v447_v12  ;;  %v3642_v17 = vpop.f32.mrb[6].mxu0 }
 0x3e1   :  { %v450_v18 = vpop.f32.mrb[7].mxu0  ;;  %v472_v23 = vadd.f32 %v4437_v13, %v463_v14 }
 0x3e2   :  { %v462_v19 = vmul.f32 0.25, %v450_v18  ;;  %v470_v20 = vadd.f32 %v4437_v13, %v461_v15 }
 0x3e3   :  { %v480_v25 = vsel %vm473_vm5, %v472_v23, -inf }
 0x3e4   :  { %v474_v21 = vsel %vm473_vm5, %v470_v20, -inf  ;;  %v471_v22 = vadd.f32 %v4437_v13, %v462_v19 }
 0x3e5   :  { %475 = vmax.xlane.f32.xlu0 %v474_v21 }
 0x3e6   :  { %v477_v24 = vsel %vm473_vm5, %v471_v22, -inf }
 0x3e7   :  { %478 = vmax.xlane.f32.xlu1 %v477_v24 }
 0x3e9   :  { %481 = vmax.xlane.f32.xlu0 %v480_v25 }
 0x3ee   :  { %v3657_v27 = vpop.f32.mrb[8].mxu0 }
 0x3ef   :  { %v644_v28 = vmul.f32 0.25, %v3657_v27  ;;  %v628_v29 = vpop.f32.mrb[9].mxu0 }
 0x3f0   :  { %v642_v30 = vmul.f32 0.25, %v628_v29  ;;  %v3658_v33 = vpop.f32.mrb[10].mxu0 }
 0x3f1   :  { %v631_v34 = vpop.f32.mrb[11].mxu0  ;;  %v647_v36 = vadd.f32 %v4437_v13, %v644_v28 }
 0x3f2   :  { %v643_v37 = vmul.f32 0.25, %v631_v34  ;;  %v645_v38 = vadd.f32 %v4437_v13, %v642_v30 }
 0x3f3   :  { %v654_v40 = vsel %vm473_vm5, %v647_v36, -inf }
 0x3f4   :  { %655 = vmax.xlane.f32.xlu1 %v654_v40  ;;  %v648_v42 = vsel %vm473_vm5, %v645_v38, -inf  ;;  %v646_v44 = vadd.f32 %v4437_v13, %v643_v37 }
 0x3f5   :  { %649 = vmax.xlane.f32.xlu0 %v648_v42 }
 0x3f6   :  { %v651_v47 = vsel %vm473_vm5, %v646_v44, -inf }
 0x3f8   :  { %211 = vadd.xlane.f32.xlu1 %v210_v45 }
 0x3f9   :  { %652 = vmax.xlane.f32.xlu0 %v651_v47 }
 0x3fc   :  { %242 = vadd.xlane.f32.xlu1 %v241_v49 }
 0x3fd   :  { %208 = vadd.xlane.f32.xlu0 %v207_v50 }
 0x401   :  { %239 = vadd.xlane.f32.xlu0 %v238_v52 }
 0x472   :  { %v476_v53 = vpop.xlane.xlu0 %475 }
 0x473   :  { %v483_v55 = vsub.f32 %v470_v20, %v476_v53 }
 0x474   :  { %v479_v54 = vpop.xlane.xlu1 %478 }
 0x475   :  { %v484_v56 = vsub.f32 %v471_v22, %v479_v54  ;;  %v486_v61 = vmul.f32 1.442695, %v483_v55 }
 0x476   :  { %v482_v58 = vpop.xlane.xlu0 %481 }
 0x477   :  { %v488_v59 = vmul.f32 1.442695, %v484_v56  ;;  %v485_v60 = vsub.f32 %v472_v23, %v482_v58 }
 0x479   :  { %3947 = vpow2.f32 %v488_v59  ;;  %v490_v62 = vmul.f32 1.442695, %v485_v60 }
 0x47b   :  { %3949 = vpow2.f32 %v490_v62 }
 0x47c   :  { %3951 = vpow2.f32 %v486_v61 }
 0x481   :  { %v656_v63 = vpop.xlane.xlu1 %655 }
 0x482   :  { %v659_v1 = vsub.f32 %v647_v36, %v656_v63  ;;  %v650_v2 = vpop.xlane.xlu0 %649 }
 0x483   :  { %v4465_v3 = vpop.eup %3947  ;;  %v657_v4 = vsub.f32 %v645_v38, %v650_v2 }
 0x484   :  { %v664_v5 = vmul.f32 1.442695, %v659_v1  ;;  %v495_v6 = vsel %vm473_vm5, %v4465_v3, 0.0 }
 0x485   :  { %v4469_v7 = vpop.eup %3949  ;;  %v660_v8 = vmul.f32 1.442695, %v657_v4  ;;  %496 = vadd.xlane.f32.xlu1 %v495_v6  ;;  %v212_v9 = vpop.xlane.xlu1 %211 }
 0x486   :  { %3953 = vpow2.f32 %v664_v5  ;;  %v219_v10 = vmul.f32 0.03125, %v212_v9  ;;  %v653_v11 = vpop.xlane.xlu0 %652  ;;  %v498_v12 = vsel %vm473_vm5, %v4469_v7, 0.0  ;;  %v4473_v14 = vpop.eup %3951 }
 0x487   :  { %v658_v15 = vsub.f32 %v646_v44, %v653_v11  ;;  %499 = vadd.xlane.f32.xlu0 %v498_v12  ;;  %3955 = vpow2.f32 %v660_v8  ;;  %v492_v22 = vsel %vm473_vm5, %v4473_v14, 0.0 }
 0x488   :  { %v255_v19 = vmul.f32 %v219_v10, %v219_v10  ;;  %v273_v47 = vsub.f32 %v4449_v43, %v219_v10 }
 0x489   :  { %v662_v17 = vmul.f32 1.442695, %v658_v15  ;;  %v243_v18 = vpop.xlane.xlu1 %242 }
 0x48a   :  { %v249_v20 = vmul.f32 0.03125, %v243_v18  ;;  %v209_v21 = vpop.xlane.xlu0 %208 }
 0x48b   :  { %3957 = vpow2.f32 %v662_v17  ;;  %v218_v23 = vmul.f32 0.03125, %v209_v21  ;;  %493 = vadd.xlane.f32.xlu0 %v492_v22 }
 0x48c   :  { %v261_v24 = vsub.f32 %v249_v20, %v255_v19 }
 0x48d   :  { %v254_v28 = vmul.f32 %v218_v23, %v218_v23  ;;  %v272_v50 = vsub.f32 %v4457_v48, %v218_v23  ;;  %v185_v23 = vld [vmem:[%s5343_s10 + $0x10] sm:$0xff] }
 0x48e   :  { %v267_v25 = vmax.f32 %v261_v24, 0.0  ;;  %v240_v27 = vpop.xlane.xlu0 %239  ;;  %v186_v24 = vld [vmem:[%s5343_s10 + $0x18] sm:$0xff] }
 0x48f   :  { %v248_v29 = vmul.f32 0.03125, %v240_v27 }
 0x490   :  { %v4477_v30 = vpop.eup %3953  ;;  %v279_v33 = vadd.f32 1e-12, %v267_v25  ;;  %v4516_v25 = vpack.c.bf16 %v186_v24, %v185_v23 }
 0x491   :  { %v260_v34 = vsub.f32 %v248_v29, %v254_v28  ;;  %v672_v36 = vsel %vm473_vm5, %v4477_v30, 0.0  ;;  %v3956_v37 = vpop.eup %3955 }
 0x492   :  { %3959 = vrsqrt.f32 %v279_v33  ;;  %673 = vadd.xlane.f32.xlu1 %v672_v36  ;;  %v666_v44 = vsel %vm473_vm5, %v3956_v37, 0.0 }
 0x493   :  { %v266_v38 = vmax.f32 %v260_v34, 0.0 }
 0x495   :  { %v3958_v40 = vpop.eup %3957  ;;  %v278_v42 = vadd.f32 1e-12, %v266_v38  ;;  %v872_v38 = vrot.slane %v4412_v0, 4 }
 0x496   :  { %667 = vadd.xlane.f32.xlu1 %v666_v44  ;;  %v669_v45 = vsel %vm473_vm5, %v3958_v40, 0.0 }
 0x497   :  { %3961 = vrsqrt.f32 %v278_v42  ;;  %670 = vadd.xlane.f32.xlu0 %v669_v45  ;;  %v183_v42 = vld [vmem:[%s5343_s10] sm:$0xff] }
 0x49c   :  { %v3960_v46 = vpop.eup %3959 }
 0x49d   :  { %v291_v49 = vmul.f32 %v3960_v46, %v273_v47 }
 0x49f   :  { %v303_v53 = vmul.f32 %v4371_v26, %v291_v49 }
 0x4a1   :  { %v3962_v51 = vpop.eup %3961  ;;  %v315_v56 = vadd.f32 %v4378_v31, %v303_v53 }
 0x4a2   :  { %v290_v52 = vmul.f32 %v3962_v51, %v272_v50 }
 0x4a4   :  { %v302_v54 = vmul.f32 %v4371_v26, %v290_v52 }
 0x4a6   :  { %v314_v55 = vadd.f32 %v4378_v31, %v302_v54 }
 0x4a7   :  { %511 = vrot.lane.b32.xlu1 %v4412_v0, %s4147_s24 }
 0x4a8   :  { %v318_v58 = vpack.c.bf16 %v315_v56, %v314_v55 }
 0x4aa   :  { %3632 = vmatmul.mubr.msk.bf16.gmra.mrb[8].mxu1 %vm154_vm1, %v318_v58 }
 0x4ab   :  { %683 = vrot.lane.b32.xlu1 %v4402_v57, %s4148_s6 }
 0x4ad   :  { %509 = vrot.lane.b32.xlu0 %v4402_v57, %s4147_s24 }
 0x4af   :  { %685 = vrot.lane.b32.xlu1 %v4412_v0, %s4148_s6 }
 0x512   :  { %v497_v26 = vpop.xlane.xlu1 %496 }
 0x513   :  { %3963 = vrcp.f32 %v497_v26 }
 0x514   :  { %v500_v59 = vpop.xlane.xlu0 %499 }
 0x518   :  { %v494_v31 = vpop.xlane.xlu0 %493 }
 0x519   :  { %3965 = vrcp.f32 %v494_v31 }
 0x51a   :  { %3967 = vrcp.f32 %v500_v59 }
 0x51d   :  { %v3964_v61 = vpop.eup %3963 }
 0x51e   :  { %v504_v4 = vmul.f32 %v3964_v61, %v4465_v3 }
 0x51f   :  { %v674_v60 = vpop.xlane.xlu1 %673 }
 0x523   :  { %v3966_v62 = vpop.eup %3965  ;;  %v668_v63 = vpop.xlane.xlu1 %667 }
 0x524   :  { %3969 = vrcp.f32 %v668_v63  ;;  %v671_v1 = vpop.xlane.xlu0 %670  ;;  %v502_v2 = vmul.f32 %v3966_v62, %v4473_v14  ;;  %v3968_v6 = vpop.eup %3967 }
 0x525   :  { %3971 = vrcp.f32 %v671_v1  ;;  %v506_v9 = vmul.f32 %v3968_v6, %v4469_v7 }
 0x526   :  { %3973 = vrcp.f32 %v674_v60  ;;  %v507_v57 = vpack.c.bf16 %v504_v4, %v502_v2 }
 0x527   :  { %v512_v5 = vpop.permute.xlu1 %511  ;;  %v508_v14 = vpack.c.bf16 %v506_v9, %v506_v9 }
 0x528   :  { %3647 = vmatprep.mubr.msk.bf16.mxu1 %vm473_vm5, %v507_v57  ;;  %v510_v8 = vpop.permute.xlu0 %509  ;;  %v522_v11 = vsel %vm520_vm6, %v512_v5, 0  ;;  %v4558_v57 = vld [vmem:[%s5344_s11] ss:$0 sm:$0xff] }
 0x529   :  { %3643 = vmatprep.subr.bf16.mxu1 %v510_v8 }
 0x52a   :  { %3644 = vmatpush3.bf16.msra.mxu1 %v510_v8 }
 0x52b   :  { %3909 = vmatprep.subr.msk.bf16.mxu1 %vm520_vm6, %v512_v5  ;;  %v684_v10 = vpop.permute.xlu1 %683 }
 0x52e   :  { %v3970_v12 = vpop.eup %3969  ;;  %3646 = vmatpush3.bf16.msra.mxu1 %v522_v11 }
 0x52f   :  { %v3972_v3 = vpop.eup %3971  ;;  %3659 = vmatprep.subr.bf16.mxu1 %v684_v10  ;;  %v676_v15 = vmul.f32 %v3970_v12, %v3956_v37  ;;  %v686_v19 = vpop.permute.xlu1 %685 }
 0x530   :  { %v3974_v17 = vpop.eup %3973  ;;  %v678_v18 = vmul.f32 %v3972_v3, %v3958_v40  ;;  %v695_v21 = vsel %vm520_vm6, %v686_v19, 0 }
 0x531   :  { %3648 = vmatmul.mubr.msk.bf16.vlgmr.msra.gmra.mrb[12].mxu1 %vm473_vm5, %v508_v14  ;;  %v680_v7 = vmul.f32 %v3974_v17, %v4477_v30 }
 0x532   :  { %3660 = vmatpush3.bf16.msra.mxu1 %v684_v10  ;;  %v681_v20 = vpack.c.bf16 %v678_v18, %v676_v15 }
 0x533   :  { %3912 = vmatprep.subr.msk.bf16.mxu1 %vm520_vm6, %v686_v19  ;;  %v682_v22 = vpack.c.bf16 %v680_v7, %v680_v7 }
 0x534   :  { %3663 = vmatprep.mubr.msk.bf16.mxu1 %vm473_vm5, %v681_v20 }
 0x536   :  { %3662 = vmatpush3.bf16.msra.mxu1 %v695_v21 }
 0x537   :  { %3667 = vmatprep.subr.bf16.mxu1 %v4516_v25 }
 0x539   :  { %3664 = vmatmul.mubr.msk.bf16.vlgmr.msra.gmra.mrb[16].mxu1 %vm473_vm5, %v682_v22 }
 0x53a   :  { %3668 = vmatpush3.bf16.msra.mxu1 %v4516_v25 }
 0x57d   :  { %v384_v27 = vpop.f32.mrb[8].mxu1 }
 0x57e   :  { %v3633_v28 = vpop.f32.mrb[9].mxu1  ;;  %v385_v30 = vadd.f32 %v4398_v41, %v384_v27 }
 0x57f   :  { %v387_v29 = vpop.f32.mrb[10].mxu1 }
 0x580   :  { %v388_v33 = vadd.f32 %v4398_v41, %v387_v29  ;;  %v3634_v34 = vpop.f32.mrb[11].mxu1  ;;  %v184_v41 = vld [vmem:[%s5343_s10 + $0x8] sm:$0xff] }
 0x581   :  { %v4539_v44 = vpack.c.bf16 %v184_v41, %v183_v42 }
 0x582   :  { %v393_v36 = vpack.c.bf16 %v388_v33, %v385_v30 }
 0x583   :  { %3673 = vmatprep.subr.bf16.mxu0 %v4539_v44 }
 0x584   :  { %v4522_v37 = vrot.slane %v393_v36, 4  ;;  %3674 = vmatpush3.bf16.msra.mxu0 %v4539_v44 }
 0x586   :  { %877 = vrot.lane.b32.xlu1 %v4522_v37, %s4144_s4  ;;  %v4529_v40 = vsel %vm520_vm6, %v872_v38, %v4522_v37 }
 0x587   :  { %875 = vrot.lane.b32.xlu0 %v4529_v40, %s4144_s4 }
 0x5f8   :  { %v878_v59 = vpop.permute.xlu1 %877 }
 0x5f9   :  { %v876_v0 = vpop.permute.xlu0 %875  ;;  %v889_v31 = vsel %vm400_vm4, %v878_v59, 0 }
 0x5fa   :  { %3913 = vmatprep.subr.msk.bf16.mxu1 %vm400_vm4, %v876_v0  ;;  %v886_v26 = vsel %vm400_vm4, %v876_v0, 0 }
 0x604   :  { %v3649_v45 = vpop.f32.mrb[12].mxu1 }
 0x605   :  { %v558_v46 = vpop.f32.mrb[13].mxu1  ;;  %v573_v51 = vpack.c.bf16 %v3649_v45, %v3649_v45 }
 0x606   :  { %v3650_v47 = vpop.f32.mrb[14].mxu1 }
 0x607   :  { %v561_v49 = vpop.f32.mrb[15].mxu1 }
 0x608   :  { %v572_v50 = vpack.c.bf16 %v561_v49, %v558_v46 }
 0x60a   :  { %3675 = vmatprep.mubr.msk.bf16.mxu0 %vm400_vm4, %v572_v50 }
 0x60b   :  { %3676 = vmatmul.mubr.msk.bf16.vlgmr.msra.gmra.mrb[12].mxu0 %vm400_vm4, %v573_v51 }
 0x60c   :  { %v3665_v52 = vpop.f32.mrb[16].mxu1 }
 0x60d   :  { %v731_v53 = vpop.f32.mrb[17].mxu1  ;;  %v746_v58 = vpack.c.bf16 %v3665_v52, %v3665_v52 }
 0x60e   :  { %v3666_v54 = vpop.f32.mrb[18].mxu1 }
 0x60f   :  { %v734_v55 = vpop.f32.mrb[19].mxu1 }
 0x610   :  { %v745_v56 = vpack.c.bf16 %v734_v55, %v731_v53 }
 0x612   :  { %3669 = vmatprep.mubr.msk.bf16.mxu1 %vm400_vm4, %v745_v56 }
 0x613   :  { %3670 = vmatmul.mubr.msk.bf16.vlgmr.msra.gmra.mrb[20].mxu1 %vm400_vm4, %v746_v58 }
 0x614   :  { %3680 = vmatpush3.bf16.xpose.msra.mxu1 %v886_v26  ;;  %3683 = vmatprep.mubr.msk.bf16.mxu1 %vm400_vm4, %v4529_v40 }
 0x615   :  { %3914 = vmatprep.subr.msk.bf16.mxu1 %vm400_vm4, %v878_v59 }
 0x61c   :  { %3682 = vmatpush3.bf16.xpose.msra.mxu1 %v889_v31 }
 0x623   :  { %3684 = vmatmul.mubr.msk.bf16.vlgmr.msra.gmra.mrb[24].mxu1 %vm400_vm4, %v4522_v37 }
 0x6de   :  { %v3677_v60 = vpop.f32.mrb[12].mxu0 }
 0x6df   :  { %v841_v61 = vpop.f32.mrb[13].mxu0 }
 0x6e0   :  { %v3678_v62 = vpop.f32.mrb[14].mxu0 }
 0x6e1   :  { %v844_v63 = vpop.f32.mrb[15].mxu0 }
 0x6e6   :  { %v3671_v1 = vpop.f32.mrb[20].mxu1 }
 0x6e7   :  { %v850_v2 = vadd.f32 %v3677_v60, %v3671_v1  ;;  %v787_v4 = vpop.f32.mrb[21].mxu1 }
 0x6e8   :  { %v842_v5 = vadd.f32 %v841_v61, %v787_v4  ;;  %v3672_v6 = vpop.f32.mrb[22].mxu1 }
 0x6e9   :  { %v857_v8 = vadd.f32 %v850_v2, %v4337_v39  ;;  %v790_v9 = vpop.f32.mrb[23].mxu1 }
 0x6ea   :  { %v855_v10 = vadd.f32 %v842_v5, %v4324_v32  ;;  %v845_v11 = vadd.f32 %v844_v63, %v790_v9 }
 0x6eb   :  { %v866_v12 = vadd.f32 %v4558_v57, %v857_v8 }
 0x6ec   :  { %v864_v3 = vadd.f32 %v4558_v57, %v855_v10  ;;  %v856_v14 = vadd.f32 %v845_v11, %v4330_v35 }
 0x6ed   :  { %869 = vst.msk [vmem:[#allocation2 + $0x10] sm:$0xff] %vm154_vm1, %v866_v12 }
 0x6ee   :  { %867 = vst.msk [vmem:[#allocation2] sm:$0xff] %vm154_vm1, %v864_v3  ;;  %v865_v15 = vadd.f32 %v4558_v57, %v856_v14 }
 0x6f0   :  { %868 = vst.msk [vmem:[#allocation2 + $0x8] sm:$0xff] %vm154_vm1, %v865_v15 }
 0x6f6   :  { %v3685_v17 = vpop.f32.mrb[24].mxu1 }
 0x6f7   :  { %v925_v39 = vpop.f32.mrb[25].mxu1  ;;  %v941_v18 = vmul.f32 0.25, %v3685_v17 }
 0x6f8   :  { %v939_v19 = vmul.f32 0.25, %v925_v39  ;;  %v3686_v32 = vpop.f32.mrb[26].mxu1 }
 0x6f9   :  { %v928_v20 = vpop.f32.mrb[27].mxu1  ;;  %v944_v23 = vadd.f32 %v4437_v13, %v941_v18 }
 0x6fa   :  { %v940_v7 = vmul.f32 0.25, %v928_v20  ;;  %v942_v21 = vadd.f32 %v4437_v13, %v939_v19 }
 0x6fb   :  { %v951_v27 = vsel %vm473_vm5, %v944_v23, -inf }
 0x6fc   :  { %v945_v22 = vsel %vm473_vm5, %v942_v21, -inf  ;;  %v943_v35 = vadd.f32 %v4437_v13, %v940_v7 }
 0x6fd   :  { %946 = vmax.xlane.f32.xlu0 %v945_v22 }
 0x6fe   :  { %v948_v24 = vsel %vm473_vm5, %v943_v35, -inf }
 0x6ff   :  { %949 = vmax.xlane.f32.xlu1 %v948_v24 }
 0x701   :  { %952 = vmax.xlane.f32.xlu0 %v951_v27 }
 0x78a   :  { %v947_v28 = vpop.xlane.xlu0 %946 }
 0x78b   :  { %v954_v29 = vsub.f32 %v942_v21, %v947_v28 }
 0x78c   :  { %v950_v30 = vpop.xlane.xlu1 %949 }
 0x78d   :  { %v957_v33 = vmul.f32 1.442695, %v954_v29  ;;  %v955_v34 = vsub.f32 %v943_v35, %v950_v30 }
 0x78e   :  { %v953_v36 = vpop.xlane.xlu0 %952 }
 0x78f   :  { %3975 = vpow2.f32 %v957_v33  ;;  %v959_v38 = vmul.f32 1.442695, %v955_v34  ;;  %v956_v42 = vsub.f32 %v944_v23, %v953_v36 }
 0x791   :  { %3977 = vpow2.f32 %v959_v38  ;;  %v961_v41 = vmul.f32 1.442695, %v956_v42 }
 0x793   :  { %3979 = vpow2.f32 %v961_v41 }
 0x799   :  { %v3976_v0 = vpop.eup %3975 }
 0x79a   :  { %v963_v45 = vsel %vm473_vm5, %v3976_v0, 0.0 }
 0x79b   :  { %v3978_v46 = vpop.eup %3977  ;;  %964 = vadd.xlane.f32.xlu0 %v963_v45 }
 0x79c   :  { %v966_v50 = vsel %vm473_vm5, %v3978_v46, 0.0 }
 0x79d   :  { %v3980_v47 = vpop.eup %3979 }
 0x79e   :  { %v969_v49 = vsel %vm473_vm5, %v3980_v47, 0.0 }
 0x79f   :  { %970 = vadd.xlane.f32.xlu1 %v969_v49  ;;  %967 = vadd.xlane.f32.xlu0 %v966_v50 }
 0x7b0   :  { %982 = vrot.lane.b32.xlu1 %v4522_v37, %s4147_s24 }
 0x7b4   :  { %1048 = vrot.lane.b32.xlu1 %v4529_v40, %s4146_s29 }
 0x7b5   :  { %980 = vrot.lane.b32.xlu0 %v4529_v40, %s4147_s24 }
 0x7b8   :  { %1050 = vrot.lane.b32.xlu1 %v4522_v37, %s4146_s29 }
 0x7b9   :  { %1044 = vrot.lane.b32.xlu0 %v4529_v40, %s4145_s0 }
 0x7bc   :  { %1046 = vrot.lane.b32.xlu1 %v4522_v37, %s4145_s0 }
 0x828   :  { %v965_v51 = vpop.xlane.xlu0 %964 }
 0x829   :  { %3981 = vrcp.f32 %v965_v51 }
 0x82c   :  { %v968_v52 = vpop.xlane.xlu0 %967  ;;  %v971_v53 = vpop.xlane.xlu1 %970 }
 0x82d   :  { %3983 = vrcp.f32 %v968_v52  ;;  %v4626_v52 = vld [vmem:[#allocation2] sm:$0xff] }
 0x82e   :  { %3985 = vrcp.f32 %v971_v53  ;;  %v4628_v53 = vld [vmem:[#allocation2 + $0x8] sm:$0xff] }
 0x830   :  { %v981_v54 = vpop.permute.xlu0 %980  ;;  %v983_v55 = vpop.permute.xlu1 %982 }
 0x831   :  { %3687 = vmatprep.subr.bf16.mxu0 %v981_v54  ;;  %v992_v58 = vsel %vm520_vm6, %v983_v55, 0 }
 0x832   :  { %3688 = vmatpush3.bf16.msra.mxu0 %v981_v54  ;;  %v1360_v54 = vsel %vm154_vm1, %v4626_v52, 0.0 }
 0x833   :  { %3915 = vmatprep.subr.msk.bf16.mxu0 %vm520_vm6, %v983_v55  ;;  %v3982_v56 = vpop.eup %3981  ;;  %v1384_v55 = vmul.f32 %v4626_v52, %v4626_v52 }
 0x834   :  { %v1049_v26 = vpop.permute.xlu1 %1048  ;;  %v973_v60 = vmul.f32 %v3982_v56, %v3976_v0  ;;  %v1045_v2 = vpop.permute.xlu0 %1044 }
 0x835   :  { %v1059_v4 = vsel %vm400_vm4, %v1049_v26, 0 }
 0x836   :  { %3690 = vmatpush3.bf16.msra.mxu0 %v992_v58  ;;  %v1390_v58 = vsel %vm154_vm1, %v1384_v55, 0.0 }
 0x837   :  { %v3984_v59 = vpop.eup %3983  ;;  %3916 = vmatprep.subr.msk.bf16.mxu0 %vm400_vm4, %v1049_v26  ;;  %v4640_v26 = vld [vmem:[#allocation2 + $0x10] sm:$0xff] }
 0x838   :  { %v3986_v31 = vpop.eup %3985  ;;  %v975_v61 = vmul.f32 %v3984_v59, %v3978_v46  ;;  %v1051_v5 = vpop.permute.xlu1 %1050  ;;  %v1366_v59 = vsel %vm154_vm1, %v4640_v26, 0.0 }
 0x839   :  { %v977_v62 = vmul.f32 %v3986_v31, %v3980_v47  ;;  %v1062_v6 = vsel %vm400_vm4, %v1051_v5, 0  ;;  %v1386_v31 = vmul.f32 %v4640_v26, %v4640_v26 }
 0x83a   :  { %v978_v63 = vpack.c.bf16 %v975_v61, %v973_v60 }
 0x83b   :  { %v979_v1 = vpack.c.bf16 %v977_v62, %v977_v62  ;;  %v1396_v60 = vsel %vm154_vm1, %v1386_v31, 0.0 }
 0x83c   :  { %3691 = vmatprep.mubr.msk.bf16.mxu0 %vm473_vm5, %v978_v63  ;;  %v1047_v8 = vpop.permute.xlu1 %1046 }
 0x83d   :  { %3692 = vmatmul.mubr.msk.bf16.vlgmr.msra.gmra.mrb[16].mxu0 %vm473_vm5, %v979_v1 }
 0x83e   :  { %3699 = vmatprep.mubr.msk.bf16.mxu0 %vm400_vm4, %v1045_v2 }
 0x83f   :  { %3696 = vmatpush3.bf16.xpose.msra.mxu0 %v1059_v4 }
 0x840   :  { %3917 = vmatprep.subr.msk.bf16.mxu0 %vm400_vm4, %v1051_v5 }
 0x847   :  { %3698 = vmatpush3.bf16.xpose.msra.mxu0 %v1062_v6 }
 0x848   :  { %3717 = vmatprep.subr.bf16.mxu0 %v4539_v44 }
 0x84e   :  { %3700 = vmatmul.mubr.msk.bf16.vlgmr.msra.gmra.mrb[20].mxu0 %vm400_vm4, %v1047_v8 }
 0x84f   :  { %3718 = vmatpush3.bf16.msra.mxu0 %v4539_v44 }
 0x850   :  { %3739 = vmatprep.subr.bf16.mxu0 %v4142_v16 }
 0x910   :  { %v3693_v9 = vpop.f32.mrb[16].mxu0 }
 0x911   :  { %v1028_v10 = vpop.f32.mrb[17].mxu0  ;;  %v1043_v14 = vpack.c.bf16 %v3693_v9, %v3693_v9 }
 0x912   :  { %v3694_v11 = vpop.f32.mrb[18].mxu0 }
 0x913   :  { %v1031_v12 = vpop.f32.mrb[19].mxu0 }
 0x914   :  { %v1042_v3 = vpack.c.bf16 %v1031_v12, %v1028_v10 }
 0x916   :  { %3719 = vmatprep.mubr.msk.bf16.mxu0 %vm400_vm4, %v1042_v3 }
 0x917   :  { %3720 = vmatmul.mubr.msk.bf16.vlgmr.msra.gmra.mrb[24].mxu0 %vm400_vm4, %v1043_v14 }
 0x918   :  { %3747 = vmatprep.mubr.msk.bf16.mxu0 %vm4143_vm3, %v4142_v16 }
 0x921   :  { %v3701_v15 = vpop.f32.mrb[20].mxu0 }
 0x922   :  { %v1098_v17 = vpop.f32.mrb[21].mxu0  ;;  %v1114_v39 = vmul.f32 0.25, %v3701_v15 }
 0x923   :  { %v1112_v18 = vmul.f32 0.25, %v1098_v17  ;;  %v3702_v44 = vpop.f32.mrb[22].mxu0 }
 0x924   :  { %v1101_v19 = vpop.f32.mrb[23].mxu0  ;;  %v1117_v22 = vadd.f32 %v4437_v13, %v1114_v39 }
 0x925   :  { %v1113_v32 = vmul.f32 0.25, %v1101_v19  ;;  %v1115_v20 = vadd.f32 %v4437_v13, %v1112_v18 }
 0x926   :  { %v1124_v23 = vsel %vm473_vm5, %v1117_v22, -inf }
 0x927   :  { %v1118_v7 = vsel %vm473_vm5, %v1115_v20, -inf  ;;  %v1116_v21 = vadd.f32 %v4437_v13, %v1113_v32 }
 0x928   :  { %1119 = vmax.xlane.f32.xlu0 %v1118_v7 }
 0x929   :  { %v1121_v35 = vsel %vm473_vm5, %v1116_v21, -inf }
 0x92a   :  { %1122 = vmax.xlane.f32.xlu1 %v1121_v35 }
 0x92c   :  { %1125 = vmax.xlane.f32.xlu0 %v1124_v23 }
 0x9b5   :  { %v1120_v24 = vpop.xlane.xlu0 %1119 }
 0x9b6   :  { %v1127_v27 = vsub.f32 %v1115_v20, %v1120_v24 }
 0x9b7   :  { %v1123_v28 = vpop.xlane.xlu1 %1122 }
 0x9b8   :  { %v1130_v29 = vmul.f32 1.442695, %v1127_v27  ;;  %v1128_v30 = vsub.f32 %v1116_v21, %v1123_v28 }
 0x9b9   :  { %v1126_v33 = vpop.xlane.xlu0 %1125 }
 0x9ba   :  { %3987 = vpow2.f32 %v1130_v29  ;;  %v1132_v34 = vmul.f32 1.442695, %v1128_v30  ;;  %v1129_v36 = vsub.f32 %v1117_v22, %v1126_v33 }
 0x9bc   :  { %3989 = vpow2.f32 %v1132_v34  ;;  %v1134_v38 = vmul.f32 1.442695, %v1129_v36 }
 0x9be   :  { %3991 = vpow2.f32 %v1134_v38 }
 0x9c4   :  { %v3988_v13 = vpop.eup %3987 }
 0x9c5   :  { %v1136_v42 = vsel %vm473_vm5, %v3988_v13, 0.0 }
 0x9c6   :  { %v3990_v41 = vpop.eup %3989  ;;  %1137 = vadd.xlane.f32.xlu0 %v1136_v42  ;;  %v1335_v42 = vld [vmem:[%s5347_s14 + $0x8] sm:$0xff] }
 0x9c7   :  { %v1139_v46 = vsel %vm473_vm5, %v3990_v41, 0.0 }
 0x9c8   :  { %v3992_v0 = vpop.eup %3991 }
 0x9c9   :  { %v1142_v45 = vsel %vm473_vm5, %v3992_v0, 0.0 }
 0x9ca   :  { %1143 = vadd.xlane.f32.xlu1 %v1142_v45  ;;  %1140 = vadd.xlane.f32.xlu0 %v1139_v46 }
 0x9db   :  { %1155 = vrot.lane.b32.xlu1 %v4522_v37, %s4148_s6  ;;  %v1363_v37 = vsel %vm154_vm1, %v4628_v53, 0.0 }
 0x9e0   :  { %1153 = vrot.lane.b32.xlu0 %v4529_v40, %s4148_s6  ;;  %v1385_v40 = vmul.f32 %v4628_v53, %v4628_v53 }
 0x9e2   :  { %v1393_v56 = vsel %vm154_vm1, %v1385_v40, 0.0  ;;  %v1337_v40 = vld [vmem:[%s5347_s14 + $0x18] sm:$0xff] }
 0x9ea   :  { %v4620_v47 = vpop.f32.mrb[24].mxu0 }
 0x9eb   :  { %v4622_v49 = vpop.f32.mrb[25].mxu0 }
 0x9ec   :  { %v3722_v50 = vpop.f32.mrb[26].mxu0 }
 0x9ed   :  { %v4624_v51 = vpop.f32.mrb[27].mxu0 }
 0x9ff   :  { %1361 = vadd.xlane.f32.xlu1 %v1360_v54  ;;  %1364 = vadd.xlane.f32.xlu0 %v1363_v37  ;;  %v1336_v37 = vld [vmem:[%s5347_s14 + $0x10] sm:$0xff] }
 0xa03   :  { %1394 = vadd.xlane.f32.xlu1 %v1393_v56  ;;  %1391 = vadd.xlane.f32.xlu0 %v1390_v58  ;;  %v4679_v58 = vld [vmem:[%s5346_s13] ss:$0 sm:$0xff] }
 0xa07   :  { %1367 = vadd.xlane.f32.xlu0 %v1366_v59  ;;  %v1339_v59 = vpack.c.bf16 %v1337_v40, %v1336_v37 }
 0xa0b   :  { %1397 = vadd.xlane.f32.xlu0 %v1396_v60 }
 0xa53   :  { %v1138_v61 = vpop.xlane.xlu0 %1137 }
 0xa54   :  { %3993 = vrcp.f32 %v1138_v61 }
 0xa57   :  { %v1141_v62 = vpop.xlane.xlu0 %1140  ;;  %v1144_v63 = vpop.xlane.xlu1 %1143 }
 0xa58   :  { %3995 = vrcp.f32 %v1141_v62  ;;  %v1340_v62 = vld [vmem:[%s5349_s16] sm:$0xff] }
 0xa59   :  { %3997 = vrcp.f32 %v1144_v63  ;;  %v1341_v63 = vld [vmem:[%s5349_s16 + $0x8] sm:$0xff] }
 0xa5b   :  { %v1154_v1 = vpop.permute.xlu0 %1153  ;;  %v1156_v2 = vpop.permute.xlu1 %1155 }
 0xa5c   :  { %3703 = vmatprep.subr.bf16.mxu1 %v1154_v1  ;;  %v1165_v5 = vsel %vm520_vm6, %v1156_v2, 0 }
 0xa5d   :  { %3704 = vmatpush3.bf16.msra.mxu1 %v1154_v1  ;;  %v1348_v1 = vpack.c.bf16 %v1341_v63, %v1340_v62 }
 0xa5e   :  { %3918 = vmatprep.subr.msk.bf16.mxu1 %vm520_vm6, %v1156_v2  ;;  %v3994_v4 = vpop.eup %3993  ;;  %v1342_v2 = vld [vmem:[%s5349_s16 + $0x10] sm:$0xff] }
 0xa5f   :  { %v1146_v9 = vmul.f32 %v3994_v4, %v3988_v13  ;;  %v1334_v13 = vld [vmem:[%s5347_s14] sm:$0xff]  ;;  %3740 = vmatpush3.bf16.msra.mxu0 %v1348_v1  ;;  %v1343_v4 = vld [vmem:[%s5349_s16 + $0x18] sm:$0xff] }
 0xa60   :  { %v1338_v50 = vpack.c.bf16 %v1335_v42, %v1334_v13  ;;  %3741 = vmatprep.subr.bf16.mxu0 %v4142_v16 }
 0xa61   :  { %3706 = vmatpush3.bf16.msra.mxu1 %v1165_v5  ;;  %v1349_v5 = vpack.c.bf16 %v1343_v4, %v1342_v2 }
 0xa62   :  { %v3996_v6 = vpop.eup %3995  ;;  %3711 = vmatprep.subr.bf16.mxu1 %v4516_v25 }
 0xa63   :  { %v3998_v8 = vpop.eup %3997  ;;  %v1148_v10 = vmul.f32 %v3996_v6, %v3990_v41  ;;  %3742 = vmatpush3.bf16.msra.mxu0 %v1349_v5  ;;  %v1344_v6 = vld [vmem:[%s5349_s16 + $0x20] sm:$0xff] }
 0xa64   :  { %v1150_v11 = vmul.f32 %v3998_v8, %v3992_v0  ;;  %v4665_v0 = vld [vmem:[%s5345_s12] ss:$0 sm:$0xff]  ;;  %3743 = vmatprep.subr.bf16.mxu0 %v4142_v16  ;;  %v1345_v8 = vld [vmem:[%s5349_s16 + $0x28] sm:$0xff] }
 0xa65   :  { %v1151_v12 = vpack.c.bf16 %v1148_v10, %v1146_v9  ;;  %v1350_v9 = vpack.c.bf16 %v1345_v8, %v1344_v6  ;;  %v1346_v10 = vld [vmem:[%s5349_s16 + $0x30] sm:$0xff] }
 0xa66   :  { %v1152_v3 = vpack.c.bf16 %v1150_v11, %v1150_v11  ;;  %v1347_v11 = vld [vmem:[%s5349_s16 + $0x38] sm:$0xff] }
 0xa67   :  { %3707 = vmatprep.mubr.msk.bf16.mxu1 %vm473_vm5, %v1151_v12  ;;  %3744 = vmatpush3.bf16.msra.mxu0 %v1350_v9  ;;  %v1351_v12 = vpack.c.bf16 %v1347_v11, %v1346_v10 }
 0xa68   :  { %3708 = vmatmul.mubr.msk.bf16.vlgmr.msra.gmra.mrb[28].mxu1 %vm473_vm5, %v1152_v3  ;;  %3745 = vmatprep.subr.bf16.mxu0 %v4142_v16 }
 0xa69   :  { %3712 = vmatpush3.bf16.msra.mxu1 %v4516_v25 }
 0xa6a   :  { %3723 = vmatprep.subr.bf16.mxu1 %v4142_v16 }
 0xa6b   :  { %3746 = vmatpush3.bf16.msra.mxu0 %v1351_v12 }
 0xa8c   :  { %v1365_v14 = vpop.xlane.xlu0 %1364  ;;  %v1362_v15 = vpop.xlane.xlu1 %1361 }
 0xa8d   :  { %v1378_v39 = vmul.f32 0.03125, %v1362_v15  ;;  %v1379_v44 = vmul.f32 0.03125, %v1365_v14 }
 0xa8f   :  { %v1414_v20 = vmul.f32 %v1378_v39, %v1378_v39  ;;  %v1415_v7 = vmul.f32 %v1379_v44, %v1379_v44  ;;  %v1433_v29 = vsub.f32 %v4628_v53, %v1379_v44  ;;  %v1432_v30 = vsub.f32 %v4626_v52, %v1378_v39 }
 0xa90   :  { %v1392_v17 = vpop.xlane.xlu0 %1391  ;;  %v1395_v18 = vpop.xlane.xlu1 %1394 }
 0xa91   :  { %v1408_v19 = vmul.f32 0.03125, %v1392_v17  ;;  %v1409_v32 = vmul.f32 0.03125, %v1395_v18 }
 0xa93   :  { %v1420_v21 = vsub.f32 %v1408_v19, %v1414_v20  ;;  %v1421_v22 = vsub.f32 %v1409_v32, %v1415_v7  ;;  %v4113_v19 = vld [vmem:[#allocation2 + $0x18] sm:$0xff] }
 0xa94   :  { %v1368_v6 = vpop.xlane.xlu0 %1367 }
 0xa95   :  { %v1426_v35 = vmax.f32 %v1420_v21, 0.0  ;;  %v1427_v23 = vmax.f32 %v1421_v22, 0.0  ;;  %v1380_v9 = vmul.f32 0.03125, %v1368_v6 }
 0xa97   :  { %v1438_v24 = vadd.f32 1e-12, %v1426_v35  ;;  %v1439_v27 = vadd.f32 1e-12, %v1427_v23  ;;  %v1416_v11 = vmul.f32 %v1380_v9, %v1380_v9 }
 0xa98   :  { %v1398_v8 = vpop.xlane.xlu0 %1397 }
 0xa99   :  { %3999 = vrsqrt.f32 %v1438_v24  ;;  %v1410_v10 = vmul.f32 0.03125, %v1398_v8  ;;  %v4781_v8 = vld [vmem:[%s5350_s17] ss:$0 sm:$0xff] }
 0xa9a   :  { %4001 = vrsqrt.f32 %v1439_v27 }
 0xa9b   :  { %v1422_v12 = vsub.f32 %v1410_v10, %v1416_v11 }
 0xaa3   :  { %v4000_v25 = vpop.eup %3999 }
 0xaa4   :  { %v4002_v28 = vpop.eup %4001  ;;  %v1450_v34 = vmul.f32 %v4000_v25, %v1432_v30 }
 0xaa5   :  { %v1451_v36 = vmul.f32 %v4002_v28, %v1433_v29 }
 0xaa6   :  { %v1462_v55 = vmul.f32 %v4665_v0, %v1450_v34 }
 0xaa7   :  { %v1463_v56 = vmul.f32 %v4665_v0, %v1451_v36 }
 0xaa8   :  { %v1474_v31 = vadd.f32 %v4679_v58, %v1462_v55 }
 0xaa9   :  { %v1475_v60 = vadd.f32 %v4679_v58, %v1463_v56 }
 0xaab   :  { %v1480_v61 = vpack.c.bf16 %v1475_v60, %v1474_v31 }
 0xb3b   :  { %v3709_v33 = vpop.f32.mrb[28].mxu1 }
 0xb3c   :  { %v1201_v38 = vpop.f32.mrb[29].mxu1  ;;  %v1216_v54 = vpack.c.bf16 %v3709_v33, %v3709_v33 }
 0xb3d   :  { %v3710_v41 = vpop.f32.mrb[30].mxu1 }
 0xb3e   :  { %v1204_v45 = vpop.f32.mrb[31].mxu1 }
 0xb3f   :  { %v1215_v46 = vpack.c.bf16 %v1204_v45, %v1201_v38 }
 0xb41   :  { %3713 = vmatprep.mubr.msk.bf16.mxu1 %vm400_vm4, %v1215_v46 }
 0xb42   :  { %3714 = vmatmul.mubr.msk.bf16.vlgmr.msra.gmra.mrb[32].mxu1 %vm400_vm4, %v1216_v54 }
 0xb43   :  { %3724 = vmatpush3.bf16.msra.mxu1 %v1338_v50  ;;  %3727 = vmatprep.mubr.msk.bf16.mxu1 %vm4143_vm3, %v4142_v16 }
 0xb44   :  { %3725 = vmatprep.subr.bf16.mxu1 %v4142_v16 }
 0xb47   :  { %3726 = vmatpush3.bf16.msra.mxu1 %v1339_v59 }
 0xb48   :  { %3759 = vmatprep.subr.bf16.mxu1 %v4142_v16 }
 0xb4a   :  { %3728 = vmatmul.mubr.msk.bf16.vlgmr.msra.gmra.mrb[36].mxu1 %vm154_vm1, %v1480_v61 }
 0xb4b   :  { %3731 = vmatprep.mubr.msk.bf16.mxu1 %vm4143_vm3, %v4142_v16 }
 0xc15   :  { %v3715_v3 = vpop.f32.mrb[32].mxu1 }
 0xc16   :  { %v1320_v14 = vadd.f32 %v4620_v47, %v3715_v3  ;;  %v1257_v15 = vpop.f32.mrb[33].mxu1  ;;  %v4728_v47 = vld [vmem:[%s5348_s15] ss:$0 sm:$0xff]  ;;  %v1428_v3 = vmax.f32 %v1422_v12, 0.0 }
 0xc17   :  { %v1312_v17 = vadd.f32 %v4622_v49, %v1257_v15  ;;  %v3716_v39 = vpop.f32.mrb[34].mxu1 }
 0xc18   :  { %v1327_v18 = vadd.f32 %v1320_v14, %v4449_v43  ;;  %v1260_v44 = vpop.f32.mrb[35].mxu1  ;;  %v1440_v39 = vadd.f32 1e-12, %v1428_v3 }
 0xc19   :  { %v1325_v32 = vadd.f32 %v4113_v19, %v1312_v17  ;;  %v1315_v20 = vadd.f32 %v4624_v51, %v1260_v44 }
 0xc1a   :  { %v1330_v7 = vadd.f32 %v4558_v57, %v1327_v18 }
 0xc1b   :  { %v1328_v21 = vadd.f32 %v4558_v57, %v1325_v32  ;;  %v1326_v22 = vadd.f32 %v1315_v20, %v4457_v48 }
 0xc1c   :  { %1333 = vst.msk [vmem:[#allocation2 + $0x28] sm:$0xff] %vm154_vm1, %v1330_v7 }
 0xc1d   :  { %1331 = vst.msk [vmem:[#allocation2 + $0x18] sm:$0xff] %vm154_vm1, %v1328_v21  ;;  %v1329_v43 = vadd.f32 %v4558_v57, %v1326_v22  ;;  %v1533_v49 = vpop.f32.mrb[36].mxu1 }
 0xc1e   :  { %v1534_v51 = vadd.f32 %v4728_v47, %v1533_v49  ;;  %v3729_v35 = vpop.f32.mrb[37].mxu1 }
 0xc1f   :  { %1332 = vst.msk [vmem:[#allocation2 + $0x20] sm:$0xff] %vm154_vm1, %v1329_v43  ;;  %v1536_v23 = vpop.f32.mrb[38].mxu1 }
 0xc20   :  { %v1556_v24 = vmul.f32 %v1534_v51, %v1534_v51  ;;  %v1537_v48 = vadd.f32 %v4728_v47, %v1536_v23  ;;  %v3730_v27 = vpop.f32.mrb[39].mxu1 }
 0xc22   :  { %v1562_v25 = vmul.f32 %v1556_v24, %v1534_v51  ;;  %v1557_v28 = vmul.f32 %v1537_v48, %v1537_v48 }
 0xc23   :  { %v4749_v37 = vld [vmem:[#allocation2 + $0x28] sm:$0xff] }
 0xc24   :  { %v1568_v29 = vmul.f32 0.044715, %v1562_v25  ;;  %v1563_v30 = vmul.f32 %v1557_v28, %v1537_v48  ;;  %v4736_v33 = vld [vmem:[#allocation2 + $0x18] sm:$0xff]  ;;  %v1375_v55 = vsel %vm154_vm1, %v4749_v37, 0.0  ;;  %v1389_v56 = vmul.f32 %v4749_v37, %v4749_v37 }
 0xc25   :  { %v1369_v57 = vsel %vm154_vm1, %v4736_v33, 0.0  ;;  %v1387_v34 = vmul.f32 %v4736_v33, %v4736_v33 }
 0xc26   :  { %v1574_v36 = vadd.f32 %v1568_v29, %v1534_v51  ;;  %v1569_v38 = vmul.f32 0.044715, %v1563_v30  ;;  %1370 = vadd.xlane.f32.xlu1 %v1369_v57  ;;  %v4742_v13 = vld [vmem:[#allocation2 + $0x20] sm:$0xff]  ;;  %v1405_v59 = vsel %vm154_vm1, %v1389_v56, 0.0 }
 0xc27   :  { %v1372_v42 = vsel %vm154_vm1, %v4742_v13, 0.0  ;;  %v1388_v41 = vmul.f32 %v4742_v13, %v4742_v13  ;;  %v1399_v50 = vsel %vm154_vm1, %v1387_v34, 0.0  ;;  %v1434_v34 = vsub.f32 %v4640_v26, %v1380_v9 }
 0xc28   :  { %v1580_v45 = vmul.f32 0.7978846, %v1574_v36  ;;  %v1575_v46 = vadd.f32 %v1569_v38, %v1537_v48  ;;  %1373 = vadd.xlane.f32.xlu0 %v1372_v42 }
 0xc29   :  { %v1402_v40 = vsel %vm154_vm1, %v1388_v41, 0.0 }
 0xc2a   :  { %4003 = vtanh.f32 %v1580_v45  ;;  %v1581_v54 = vmul.f32 0.7978846, %v1575_v46  ;;  %1400 = vadd.xlane.f32.xlu1 %v1399_v50 }
 0xc2c   :  { %4005 = vtanh.f32 %v1581_v54  ;;  %1403 = vadd.xlane.f32.xlu0 %v1402_v40 }
 0xc2d   :  { %4007 = vrsqrt.f32 %v1440_v39 }
 0xc2e   :  { %1376 = vadd.xlane.f32.xlu1 %v1375_v55 }
 0xc32   :  { %1406 = vadd.xlane.f32.xlu1 %v1405_v59 }
 0xc34   :  { %v4004_v31 = vpop.eup %4003 }
 0xc35   :  { %v1592_v60 = vadd.f32 1.0, %v4004_v31 }
 0xc36   :  { %v4006_v61 = vpop.eup %4005 }
 0xc37   :  { %v1598_v62 = vmul.f32 0.5, %v1592_v60  ;;  %v1593_v63 = vadd.f32 1.0, %v4006_v61  ;;  %v4008_v30 = vpop.eup %4007 }
 0xc38   :  { %v1452_v38 = vmul.f32 %v4008_v30, %v1434_v34 }
 0xc39   :  { %v1599_v1 = vmul.f32 0.5, %v1593_v63  ;;  %v1604_v2 = vmul.f32 %v1598_v62, %v1534_v51 }
 0xc3a   :  { %v1464_v46 = vmul.f32 %v4665_v0, %v1452_v38 }
 0xc3b   :  { %v1605_v4 = vmul.f32 %v1599_v1, %v1537_v48 }
 0xc3c   :  { %v1476_v55 = vadd.f32 %v4679_v58, %v1464_v46 }
 0xc3d   :  { %v1610_v5 = vpack.c.bf16 %v1605_v4, %v1604_v2 }
 0xc3f   :  { %3748 = vmatmul.mubr.msk.bf16.vlgmr.msra.gmra.mrb[28].mxu0 %vm1613_vm7, %v1610_v5 }
 0xc40   :  { %3751 = vmatprep.mubr.msk.bf16.mxu0 %vm4143_vm3, %v4142_v16 }
 0xcb3   :  { %v1371_v14 = vpop.xlane.xlu1 %1370 }
 0xcb4   :  { %v1381_v15 = vmul.f32 0.03125, %v1371_v14 }
 0xcb5   :  { %v1374_v17 = vpop.xlane.xlu0 %1373 }
 0xcb6   :  { %v1382_v18 = vmul.f32 0.03125, %v1374_v17  ;;  %v1417_v19 = vmul.f32 %v1381_v15, %v1381_v15  ;;  %v1435_v42 = vsub.f32 %v4736_v33, %v1381_v15 }
 0xcb7   :  { %v1401_v44 = vpop.xlane.xlu1 %1400 }
 0xcb8   :  { %v1411_v32 = vmul.f32 0.03125, %v1401_v44  ;;  %v1418_v7 = vmul.f32 %v1382_v18, %v1382_v18  ;;  %v1436_v54 = vsub.f32 %v4742_v13, %v1382_v18 }
 0xcb9   :  { %v1404_v20 = vpop.xlane.xlu0 %1403 }
 0xcba   :  { %v1423_v21 = vsub.f32 %v1411_v32, %v1417_v19  ;;  %v1412_v22 = vmul.f32 0.03125, %v1404_v20  ;;  %v3410_v19 = vld [vmem:[%s5341_s8 + $0x20] sm:$0xff]  ;;  %v3411_v32 = vld [vmem:[%s5341_s8 + $0x28] sm:$0xff] }
 0xcbb   :  { %v1377_v43 = vpop.xlane.xlu1 %1376  ;;  %v1718_v20 = vpack.c.bf16 %v3411_v32, %v3410_v19 }
 0xcbc   :  { %v1429_v49 = vmax.f32 %v1423_v21, 0.0  ;;  %v1424_v51 = vsub.f32 %v1412_v22, %v1418_v7  ;;  %v1383_v35 = vmul.f32 0.03125, %v1377_v43  ;;  %v3412_v7 = vld [vmem:[%s5341_s8 + $0x30] sm:$0xff]  ;;  %v3413_v21 = vld [vmem:[%s5341_s8 + $0x38] sm:$0xff] }
 0xcbd   :  { %3760 = vmatpush3.bf16.msra.mxu1 %v1718_v20  ;;  %v1719_v22 = vpack.c.bf16 %v3413_v21, %v3412_v7 }
 0xcbe   :  { %v1441_v23 = vadd.f32 1e-12, %v1429_v49  ;;  %v1430_v24 = vmax.f32 %v1424_v51, 0.0  ;;  %v1419_v25 = vmul.f32 %v1383_v35, %v1383_v35  ;;  %v1437_v31 = vsub.f32 %v4749_v37, %v1383_v35  ;;  %3761 = vmatprep.subr.bf16.mxu1 %v4142_v16 }
 0xcbf   :  { %v1407_v48 = vpop.xlane.xlu1 %1406 }
 0xcc0   :  { %4009 = vrsqrt.f32 %v1441_v23  ;;  %v1442_v27 = vadd.f32 1e-12, %v1430_v24  ;;  %v1413_v28 = vmul.f32 0.03125, %v1407_v48 }
 0xcc1   :  { %3762 = vmatpush3.bf16.msra.mxu1 %v1719_v22 }
 0xcc2   :  { %4011 = vrsqrt.f32 %v1442_v27  ;;  %v1425_v29 = vsub.f32 %v1413_v28, %v1419_v25 }
 0xcc4   :  { %v1431_v57 = vmax.f32 %v1425_v29, 0.0 }
 0xcc6   :  { %v1443_v36 = vadd.f32 1e-12, %v1431_v57 }
 0xcc8   :  { %4013 = vrsqrt.f32 %v1443_v36 }
 0xcca   :  { %v4010_v41 = vpop.eup %4009 }
 0xccb   :  { %v1453_v45 = vmul.f32 %v4010_v41, %v1435_v42 }
 0xccc   :  { %v4012_v50 = vpop.eup %4011 }
 0xccd   :  { %v1465_v40 = vmul.f32 %v4665_v0, %v1453_v45  ;;  %v1454_v59 = vmul.f32 %v4012_v50, %v1436_v54 }
 0xccf   :  { %v1477_v56 = vadd.f32 %v4679_v58, %v1465_v40  ;;  %v1466_v63 = vmul.f32 %v4665_v0, %v1454_v59 }
 0xcd1   :  { %v1481_v60 = vpack.c.bf16 %v1477_v56, %v1476_v55  ;;  %v1478_v2 = vadd.f32 %v4679_v58, %v1466_v63 }
 0xcd2   :  { %v4014_v61 = vpop.eup %4013 }
 0xcd3   :  { %3732 = vmatmul.mubr.msk.bf16.gmra.mrb[40].mxu1 %vm154_vm1, %v1481_v60  ;;  %v1455_v62 = vmul.f32 %v4014_v61, %v1437_v31 }
 0xcd4   :  { %3735 = vmatprep.mubr.msk.bf16.mxu1 %vm4143_vm3, %v4142_v16 }
 0xcd5   :  { %v1467_v1 = vmul.f32 %v4665_v0, %v1455_v62 }
 0xcd7   :  { %v1479_v4 = vadd.f32 %v4679_v58, %v1467_v1 }
 0xcd9   :  { %v1482_v5 = vpack.c.bf16 %v1479_v4, %v1478_v2 }
 0xcdb   :  { %3736 = vmatmul.mubr.msk.bf16.gmra.mrb[44].mxu1 %vm154_vm1, %v1482_v5 }
 0xcdc   :  { %3763 = vmatprep.mubr.msk.bf16.mxu1 %vm4143_vm3, %v4142_v16 }
 0xd12   :  { %v1657_v6 = vpop.f32.mrb[28].mxu0 }
 0xd13   :  { %v1680_v9 = vadd.f32 %v1657_v6, %v4626_v52  ;;  %v3749_v10 = vpop.f32.mrb[29].mxu0 }
 0xd14   :  { %v1660_v0 = vpop.f32.mrb[30].mxu0 }
 0xd15   :  { %v1693_v11 = vadd.f32 %v4781_v8, %v1680_v9  ;;  %v1681_v58 = vadd.f32 %v1660_v0, %v4628_v53  ;;  %v3750_v12 = vpop.f32.mrb[31].mxu0 }
 0xd17   :  { %1699 = vst.msk [vmem:[#allocation2] sm:$0xff] %vm154_vm1, %v1693_v11  ;;  %v1694_v3 = vadd.f32 %v4781_v8, %v1681_v58 }
 0xd19   :  { %1700 = vst.msk [vmem:[#allocation2 + $0x8] sm:$0xff] %vm154_vm1, %v1694_v3 }
 0xd1e   :  { %v4789_v14 = vld [vmem:[#allocation2] sm:$0xff] }
 0xd1f   :  { %v1733_v15 = vsel %vm154_vm1, %v4789_v14, 0.0  ;;  %v1757_v52 = vmul.f32 %v4789_v14, %v4789_v14 }
 0xd20   :  { %1734 = vadd.xlane.f32.xlu0 %v1733_v15  ;;  %v4795_v17 = vld [vmem:[#allocation2 + $0x8] sm:$0xff] }
 0xd21   :  { %v1736_v53 = vsel %vm154_vm1, %v4795_v17, 0.0  ;;  %v1758_v39 = vmul.f32 %v4795_v17, %v4795_v17  ;;  %v1763_v18 = vsel %vm154_vm1, %v1757_v52, 0.0 }
 0xd22   :  { %1737 = vadd.xlane.f32.xlu1 %v1736_v53 }
 0xd23   :  { %v1766_v44 = vsel %vm154_vm1, %v1758_v39, 0.0 }
 0xd24   :  { %1764 = vadd.xlane.f32.xlu0 %v1763_v18 }
 0xd26   :  { %1767 = vadd.xlane.f32.xlu1 %v1766_v44 }
 0xda6   :  { %v1541_v43 = vpop.f32.mrb[40].mxu1 }
 0xda7   :  { %v1542_v49 = vadd.f32 %v4728_v47, %v1541_v43  ;;  %v3733_v51 = vpop.f32.mrb[41].mxu1 }
 0xda8   :  { %v1544_v35 = vpop.f32.mrb[42].mxu1 }
 0xda9   :  { %v1558_v23 = vmul.f32 %v1542_v49, %v1542_v49  ;;  %v1545_v24 = vadd.f32 %v4728_v47, %v1544_v35  ;;  %v3734_v48 = vpop.f32.mrb[43].mxu1  ;;  %v4830_v35 = vld [vmem:[%s5373_s2 + $0x1] ss:$0 sm:$0xff] }
 0xdab   :  { %v1564_v27 = vmul.f32 %v1558_v23, %v1542_v49  ;;  %v1559_v25 = vmul.f32 %v1545_v24, %v1545_v24 }
 0xdad   :  { %v1570_v28 = vmul.f32 0.044715, %v1564_v27  ;;  %v1565_v29 = vmul.f32 %v1559_v25, %v1545_v24  ;;  %v1735_v30 = vpop.xlane.xlu0 %1734 }
 0xdae   :  { %v1751_v57 = vmul.f32 0.03125, %v1735_v30  ;;  %v1549_v34 = vpop.f32.mrb[44].mxu1 }
 0xdaf   :  { %v1576_v36 = vadd.f32 %v1570_v28, %v1542_v49  ;;  %v1571_v38 = vmul.f32 0.044715, %v1565_v29  ;;  %v4819_v42 = vadd.f32 %v4728_v47, %v1549_v34  ;;  %v3737_v41 = vpop.f32.mrb[45].mxu1  ;;  %v1738_v45 = vpop.xlane.xlu1 %1737 }
 0xdb0   :  { %v1752_v46 = vmul.f32 0.03125, %v1738_v45  ;;  %v1552_v50 = vpop.f32.mrb[46].mxu1  ;;  %v1787_v60 = vmul.f32 %v1751_v57, %v1751_v57  ;;  %v1805_v21 = vsub.f32 %v4789_v14, %v1751_v57 }
 0xdb1   :  { %v1582_v54 = vmul.f32 0.7978846, %v1576_v36  ;;  %v1577_v40 = vadd.f32 %v1571_v38, %v1545_v24  ;;  %v1560_v55 = vmul.f32 %v4819_v42, %v4819_v42  ;;  %v1553_v56 = vadd.f32 %v4728_v47, %v1552_v50  ;;  %v1765_v59 = vpop.xlane.xlu0 %1764  ;;  %v3738_v31 = vpop.f32.mrb[47].mxu1 }
 0xdb2   :  { %v1781_v61 = vmul.f32 0.03125, %v1765_v59  ;;  %v1788_v4 = vmul.f32 %v1752_v46, %v1752_v46  ;;  %v1806_v48 = vsub.f32 %v4795_v17, %v1752_v46 }
 0xdb3   :  { %4015 = vtanh.f32 %v1582_v54  ;;  %v1583_v62 = vmul.f32 0.7978846, %v1577_v40  ;;  %v1566_v63 = vmul.f32 %v1560_v55, %v4819_v42  ;;  %v1561_v1 = vmul.f32 %v1553_v56, %v1553_v56  ;;  %v1768_v2 = vpop.xlane.xlu1 %1767 }
 0xdb4   :  { %v1793_v5 = vsub.f32 %v1781_v61, %v1787_v60  ;;  %v1782_v6 = vmul.f32 0.03125, %v1768_v2 }
 0xdb5   :  { %4017 = vtanh.f32 %v1583_v62  ;;  %v1572_v9 = vmul.f32 0.044715, %v1566_v63  ;;  %v1567_v10 = vmul.f32 %v1561_v1, %v1553_v56  ;;  %v4859_v1 = vld [vmem:[%s5342_s9 + $0x1] ss:$0 sm:$0xff] }
 0xdb6   :  { %v1799_v0 = vmax.f32 %v1793_v5, 0.0  ;;  %v1794_v11 = vsub.f32 %v1782_v6, %v1788_v4 }
 0xdb7   :  { %v1578_v47 = vadd.f32 %v1572_v9, %v4819_v42  ;;  %v1573_v58 = vmul.f32 0.044715, %v1567_v10 }
 0xdb8   :  { %v1811_v12 = vadd.f32 1e-12, %v1799_v0  ;;  %v1800_v3 = vmax.f32 %v1794_v11, 0.0 }
 0xdb9   :  { %v1584_v15 = vmul.f32 0.7978846, %v1578_v47  ;;  %v1579_v52 = vadd.f32 %v1573_v58, %v1553_v56 }
 0xdba   :  { %4019 = vrsqrt.f32 %v1811_v12  ;;  %v1812_v53 = vadd.f32 1e-12, %v1800_v3 }
 0xdbb   :  { %4021 = vtanh.f32 %v1584_v15  ;;  %v1585_v39 = vmul.f32 0.7978846, %v1579_v52 }
 0xdbc   :  { %4023 = vrsqrt.f32 %v1812_v53 }
 0xdbd   :  { %v4016_v18 = vpop.eup %4015  ;;  %4025 = vtanh.f32 %v1585_v39 }
 0xdbe   :  { %v1594_v44 = vadd.f32 1.0, %v4016_v18 }
 0xdbf   :  { %v4018_v19 = vpop.eup %4017 }
 0xdc0   :  { %v1600_v32 = vmul.f32 0.5, %v1594_v44  ;;  %v1595_v20 = vadd.f32 1.0, %v4018_v19 }
 0xdc2   :  { %v1601_v7 = vmul.f32 0.5, %v1595_v20  ;;  %v1606_v43 = vmul.f32 %v1600_v32, %v1542_v49  ;;  %v4837_v49 = vld [vmem:[%s5340_s7 + $0x1] ss:$0 sm:$0xff] }
 0xdc4   :  { %v4020_v22 = vpop.eup %4019  ;;  %v1607_v51 = vmul.f32 %v1601_v7, %v1545_v24 }
 0xdc5   :  { %v4022_v23 = vpop.eup %4021  ;;  %v1823_v27 = vmul.f32 %v4020_v22, %v1805_v21 }
 0xdc6   :  { %v4024_v25 = vpop.eup %4023  ;;  %v1596_v28 = vadd.f32 1.0, %v4022_v23  ;;  %v1611_v29 = vpack.c.bf16 %v1607_v51, %v1606_v43 }
 0xdc7   :  { %v4026_v30 = vpop.eup %4025  ;;  %v1835_v34 = vmul.f32 %v4830_v35, %v1823_v27  ;;  %v1824_v36 = vmul.f32 %v4024_v25, %v1806_v48 }
 0xdc8   :  { %v1602_v57 = vmul.f32 0.5, %v1596_v28  ;;  %v1597_v38 = vadd.f32 1.0, %v4026_v30  ;;  %3752 = vmatmul.mubr.msk.bf16.gmra.mrb[32].mxu0 %vm1613_vm7, %v1611_v29 }
 0xdc9   :  { %v1836_v24 = vmul.f32 %v4830_v35, %v1824_v36  ;;  %3755 = vmatprep.mubr.msk.bf16.mxu0 %vm4143_vm3, %v4142_v16  ;;  %v1847_v45 = vadd.f32 %v4837_v49, %v1835_v34 }
 0xdca   :  { %v1603_v41 = vmul.f32 0.5, %v1597_v38  ;;  %v1608_v50 = vmul.f32 %v1602_v57, %v4819_v42 }
 0xdcb   :  { %v1848_v46 = vadd.f32 %v4837_v49, %v1836_v24 }
 0xdcc   :  { %v1609_v54 = vmul.f32 %v1603_v41, %v1553_v56 }
 0xdcd   :  { %v1853_v40 = vpack.c.bf16 %v1848_v46, %v1847_v45 }
 0xdce   :  { %v1612_v55 = vpack.c.bf16 %v1609_v54, %v1608_v50 }
 0xdcf   :  { %3764 = vmatmul.mubr.msk.bf16.vlgmr.msra.gmra.mrb[48].mxu1 %vm154_vm1, %v1853_v40 }
 0xdd0   :  { %3756 = vmatmul.mubr.msk.bf16.gmra.mrb[36].mxu0 %vm1613_vm7, %v1612_v55  ;;  %3767 = vmatprep.mubr.msk.bf16.mxu1 %vm4143_vm3, %v4142_v16 }
 0xe9b   :  { %v1665_v59 = vpop.f32.mrb[32].mxu0 }
 0xe9c   :  { %v1682_v31 = vadd.f32 %v1665_v59, %v4640_v26  ;;  %v3753_v60 = vpop.f32.mrb[33].mxu0 }
 0xe9d   :  { %v1668_v61 = vpop.f32.mrb[34].mxu0 }
 0xe9e   :  { %v1695_v62 = vadd.f32 %v4781_v8, %v1682_v31  ;;  %v1683_v63 = vadd.f32 %v1668_v61, %v4736_v33  ;;  %v3754_v42 = vpop.f32.mrb[35].mxu0 }
 0xea0   :  { %1701 = vst.msk [vmem:[#allocation2 + $0x10] sm:$0xff] %vm154_vm1, %v1695_v62  ;;  %v1696_v56 = vadd.f32 %v4781_v8, %v1683_v63 }
 0xea2   :  { %1702 = vst.msk [vmem:[#allocation2 + $0x18] sm:$0xff] %vm154_vm1, %v1696_v56  ;;  %v1905_v2 = vpop.f32.mrb[48].mxu1 }
 0xea3   :  { %v1673_v26 = vpop.f32.mrb[36].mxu0  ;;  %v3765_v4 = vpop.f32.mrb[49].mxu1  ;;  %v1906_v33 = vadd.f32 %v4859_v1, %v1905_v2 }
 0xea4   :  { %v1684_v5 = vadd.f32 %v1673_v26, %v4742_v13  ;;  %v3757_v6 = vpop.f32.mrb[37].mxu0  ;;  %v1908_v9 = vpop.f32.mrb[50].mxu1 }
 0xea5   :  { %v1909_v10 = vadd.f32 %v4859_v1, %v1908_v9  ;;  %v1676_v0 = vpop.f32.mrb[38].mxu0  ;;  %v3766_v11 = vpop.f32.mrb[51].mxu1 }
 0xea6   :  { %v1697_v47 = vadd.f32 %v4781_v8, %v1684_v5  ;;  %v1685_v58 = vadd.f32 %v1676_v0, %v4749_v37  ;;  %v3758_v12 = vpop.f32.mrb[39].mxu0 }
 0xea7   :  { %v4866_v3 = vpack.c.bf16 %v1909_v10, %v1906_v33  ;;  %v4868_v15 = vld [vmem:[#allocation2 + $0x10] sm:$0xff] }
 0xea8   :  { %1703 = vst.msk [vmem:[#allocation2 + $0x20] sm:$0xff] %vm154_vm1, %v1697_v47  ;;  %v1698_v13 = vadd.f32 %v4781_v8, %v1685_v58  ;;  %v1739_v52 = vsel %vm154_vm1, %v4868_v15, 0.0  ;;  %v1759_v53 = vmul.f32 %v4868_v15, %v4868_v15 }
 0xea9   :  { %1740 = vadd.xlane.f32.xlu0 %v1739_v52  ;;  %3779 = vmatprep.mubr.msk.bf16.mxu0 %vm400_vm4, %v4866_v3  ;;  %v4878_v37 = vld [vmem:[#allocation2 + $0x18] sm:$0xff] }
 0xeaa   :  { %1704 = vst.msk [vmem:[#allocation2 + $0x28] sm:$0xff] %vm154_vm1, %v1698_v13  ;;  %v1742_v39 = vsel %vm154_vm1, %v4878_v37, 0.0  ;;  %v1760_v8 = vmul.f32 %v4878_v37, %v4878_v37  ;;  %v1769_v18 = vsel %vm154_vm1, %v1759_v53, 0.0 }
 0xeab   :  { %1743 = vadd.xlane.f32.xlu1 %v1742_v39 }
 0xeac   :  { %v1772_v44 = vsel %vm154_vm1, %v1760_v8, 0.0 }
 0xead   :  { %1770 = vadd.xlane.f32.xlu0 %v1769_v18 }
 0xeaf   :  { %1773 = vadd.xlane.f32.xlu1 %v1772_v44  ;;  %v4887_v19 = vld [vmem:[#allocation2 + $0x20] sm:$0xff] }
 0xeb0   :  { %v1745_v32 = vsel %vm154_vm1, %v4887_v19, 0.0  ;;  %v1761_v20 = vmul.f32 %v4887_v19, %v4887_v19 }
 0xeb1   :  { %1746 = vadd.xlane.f32.xlu0 %v1745_v32  ;;  %v4893_v7 = vld [vmem:[#allocation2 + $0x28] sm:$0xff] }
 0xeb2   :  { %v1748_v21 = vsel %vm154_vm1, %v4893_v7, 0.0  ;;  %v1762_v22 = vmul.f32 %v4893_v7, %v4893_v7  ;;  %v1775_v43 = vsel %vm154_vm1, %v1761_v20, 0.0 }
 0xeb3   :  { %1749 = vadd.xlane.f32.xlu1 %v1748_v21 }
 0xeb4   :  { %v1778_v51 = vsel %vm154_vm1, %v1762_v22, 0.0 }
 0xeb5   :  { %1776 = vadd.xlane.f32.xlu0 %v1775_v43 }
 0xeb7   :  { %1779 = vadd.xlane.f32.xlu1 %v1778_v51 }
 0xecb   :  { %1933 = vrot.lane.b32.xlu0 %v4866_v3, %s4144_s4 }
 0xecf   :  { %2102 = vrot.lane.b32.xlu0 %v4866_v3, %s4145_s0 }
 0xf36   :  { %v1741_v23 = vpop.xlane.xlu0 %1740 }
 0xf37   :  { %v1753_v48 = vmul.f32 0.03125, %v1741_v23 }
 0xf38   :  { %v1744_v27 = vpop.xlane.xlu1 %1743 }
 0xf39   :  { %v1754_v25 = vmul.f32 0.03125, %v1744_v27  ;;  %v1789_v29 = vmul.f32 %v1753_v48, %v1753_v48  ;;  %v1807_v10 = vsub.f32 %v4868_v15, %v1753_v48 }
 0xf3a   :  { %v1771_v28 = vpop.xlane.xlu0 %1770 }
 0xf3b   :  { %v1783_v30 = vmul.f32 0.03125, %v1771_v28  ;;  %v1790_v36 = vmul.f32 %v1754_v25, %v1754_v25  ;;  %v1808_v11 = vsub.f32 %v4878_v37, %v1754_v25 }
 0xf3c   :  { %v1774_v34 = vpop.xlane.xlu1 %1773 }
 0xf3d   :  { %v1795_v57 = vsub.f32 %v1783_v30, %v1789_v29  ;;  %v1784_v38 = vmul.f32 0.03125, %v1774_v34 }
 0xf3e   :  { %v1747_v24 = vpop.xlane.xlu0 %1746 }
 0xf3f   :  { %v1801_v41 = vmax.f32 %v1795_v57, 0.0  ;;  %v1796_v45 = vsub.f32 %v1784_v38, %v1790_v36  ;;  %v1755_v46 = vmul.f32 0.03125, %v1747_v24 }
 0xf40   :  { %v1750_v50 = vpop.xlane.xlu1 %1749 }
 0xf41   :  { %v1813_v54 = vadd.f32 1e-12, %v1801_v41  ;;  %v1802_v40 = vmax.f32 %v1796_v45, 0.0  ;;  %v1756_v55 = vmul.f32 0.03125, %v1750_v50  ;;  %v1791_v60 = vmul.f32 %v1755_v46, %v1755_v46 }
 0xf42   :  { %v1777_v59 = vpop.xlane.xlu0 %1776  ;;  %v1809_v53 = vsub.f32 %v4887_v19, %v1755_v46 }
 0xf43   :  { %4027 = vrsqrt.f32 %v1813_v54  ;;  %v1814_v31 = vadd.f32 1e-12, %v1802_v40  ;;  %v1785_v61 = vmul.f32 0.03125, %v1777_v59  ;;  %v1792_v63 = vmul.f32 %v1756_v55, %v1756_v55 }
 0xf44   :  { %v1780_v62 = vpop.xlane.xlu1 %1779  ;;  %v1810_v44 = vsub.f32 %v4893_v7, %v1756_v55 }
 0xf45   :  { %4029 = vrsqrt.f32 %v1814_v31  ;;  %v1797_v42 = vsub.f32 %v1785_v61, %v1791_v60  ;;  %v1786_v56 = vmul.f32 0.03125, %v1780_v62 }
 0xf46   :  { %v1934_v2 = vpop.permute.xlu0 %1933 }
 0xf47   :  { %v1803_v26 = vmax.f32 %v1797_v42, 0.0  ;;  %v1798_v4 = vsub.f32 %v1786_v56, %v1792_v63  ;;  %v1944_v5 = vsel %vm400_vm4, %v1934_v2, 0  ;;  %3919 = vmatprep.subr.msk.bf16.mxu0 %vm400_vm4, %v1934_v2  ;;  %v4956_v56 = vld [vmem:[%s5374_s5] ss:$0 sm:$0xff] }
 0xf48   :  { %3776 = vmatpush3.bf16.xpose.msra.mxu0 %v1944_v5 }
 0xf49   :  { %v1815_v6 = vadd.f32 1e-12, %v1803_v26  ;;  %v1804_v9 = vmax.f32 %v1798_v4, 0.0 }
 0xf4a   :  { %v2103_v48 = vpop.permute.xlu0 %2102 }
 0xf4b   :  { %4031 = vrsqrt.f32 %v1815_v6  ;;  %v1816_v33 = vadd.f32 1e-12, %v1804_v9 }
 0xf4d   :  { %v4028_v0 = vpop.eup %4027  ;;  %4033 = vrsqrt.f32 %v1816_v33 }
 0xf4e   :  { %v1825_v47 = vmul.f32 %v4028_v0, %v1807_v10 }
 0xf4f   :  { %v4030_v58 = vpop.eup %4029 }
 0xf50   :  { %v1826_v12 = vmul.f32 %v4030_v58, %v1808_v11  ;;  %v1837_v13 = vmul.f32 %v4830_v35, %v1825_v47 }
 0xf52   :  { %v1838_v52 = vmul.f32 %v4830_v35, %v1826_v12  ;;  %v1849_v39 = vadd.f32 %v4837_v49, %v1837_v13 }
 0xf54   :  { %v1850_v8 = vadd.f32 %v4837_v49, %v1838_v52 }
 0xf55   :  { %v4032_v18 = vpop.eup %4031 }
 0xf56   :  { %v1854_v32 = vpack.c.bf16 %v1850_v8, %v1849_v39  ;;  %v1827_v20 = vmul.f32 %v4032_v18, %v1809_v53 }
 0xf57   :  { %v4034_v21 = vpop.eup %4033 }
 0xf58   :  { %3768 = vmatmul.mubr.msk.bf16.gmra.mrb[52].mxu1 %vm154_vm1, %v1854_v32  ;;  %v1828_v37 = vmul.f32 %v4034_v21, %v1810_v44  ;;  %v1839_v22 = vmul.f32 %v4830_v35, %v1827_v20 }
 0xf59   :  { %3771 = vmatprep.mubr.msk.bf16.mxu1 %vm4143_vm3, %v4142_v16 }
 0xf5a   :  { %v1840_v19 = vmul.f32 %v4830_v35, %v1828_v37  ;;  %v1851_v43 = vadd.f32 %v4837_v49, %v1839_v22 }
 0xf5c   :  { %v1852_v51 = vadd.f32 %v4837_v49, %v1840_v19 }
 0xf5e   :  { %v1855_v23 = vpack.c.bf16 %v1852_v51, %v1851_v43 }
 0xf60   :  { %3772 = vmatmul.mubr.msk.bf16.gmra.mrb[56].mxu1 %vm154_vm1, %v1855_v23 }
 0xf61   :  { %3795 = vmatprep.mubr.msk.bf16.mxu1 %vm400_vm4, %v2103_v48 }
0x102b   :  { %v1913_v7 = vpop.f32.mrb[52].mxu1 }
0x102c   :  { %v3769_v27 = vpop.f32.mrb[53].mxu1  ;;  %v1914_v28 = vadd.f32 %v4859_v1, %v1913_v7 }
0x102d   :  { %v1916_v25 = vpop.f32.mrb[54].mxu1 }
0x102e   :  { %v1917_v29 = vadd.f32 %v4859_v1, %v1916_v25  ;;  %v3770_v30 = vpop.f32.mrb[55].mxu1 }
0x1030   :  { %v4926_v34 = vpack.c.bf16 %v1917_v29, %v1914_v28 }
0x1032   :  { %1935 = vrot.lane.b32.xlu1 %v4926_v34, %s4144_s4 }
0x1033   :  { %v1921_v35 = vpop.f32.mrb[56].mxu1 }
0x1034   :  { %v3773_v49 = vpop.f32.mrb[57].mxu1  ;;  %v4931_v57 = vadd.f32 %v4859_v1, %v1921_v35 }
0x1035   :  { %v1924_v36 = vpop.f32.mrb[58].mxu1 }
0x1036   :  { %v4934_v38 = vadd.f32 %v4859_v1, %v1924_v36  ;;  %2106 = vrot.lane.b32.xlu1 %v4866_v3, %s4146_s29  ;;  %v3774_v24 = vpop.f32.mrb[59].mxu1 }
0x1038   :  { %v1930_v41 = vpack.c.bf16 %v4934_v38, %v4931_v57 }
0x103a   :  { %2108 = vrot.lane.b32.xlu1 %v4926_v34, %s4146_s29 }
0x103e   :  { %2104 = vrot.lane.b32.xlu1 %v4926_v34, %s4145_s0 }
0x10a4   :  { %v1936_v45 = vpop.permute.xlu1 %1935 }
0x10a5   :  { %v1947_v46 = vsel %vm400_vm4, %v1936_v45, 0  ;;  %3920 = vmatprep.subr.msk.bf16.mxu0 %vm400_vm4, %v1936_v45 }
0x10a6   :  { %3778 = vmatpush3.bf16.xpose.msra.mxu0 %v1947_v46 }
0x10a8   :  { %v2107_v1 = vpop.permute.xlu1 %2106 }
0x10a9   :  { %v2117_v50 = vsel %vm400_vm4, %v2107_v1, 0  ;;  %3922 = vmatprep.subr.msk.bf16.mxu1 %vm400_vm4, %v2107_v1 }
0x10aa   :  { %3792 = vmatpush3.bf16.xpose.msra.mxu1 %v2117_v50 }
0x10ac   :  { %v2109_v54 = vpop.permute.xlu1 %2108 }
0x10ad   :  { %3780 = vmatmul.mubr.msk.bf16.vlgmr.msra.gmra.mrb[40].mxu0 %vm400_vm4, %v4926_v34  ;;  %3923 = vmatprep.subr.msk.bf16.mxu1 %vm400_vm4, %v2109_v54  ;;  %v2120_v40 = vsel %vm400_vm4, %v2109_v54, 0 }
0x10b0   :  { %v2105_v55 = vpop.permute.xlu1 %2104 }
0x10b2   :  { %3794 = vmatpush3.bf16.xpose.msra.mxu1 %v2120_v40 }
0x10b9   :  { %3796 = vmatmul.mubr.msk.bf16.vlgmr.msra.gmra.mrb[60].mxu1 %vm400_vm4, %v2105_v55 }
0x1180   :  { %v3781_v59 = vpop.f32.mrb[40].mxu0 }
0x1181   :  { %v1983_v31 = vpop.f32.mrb[41].mxu0  ;;  %v1999_v60 = vmul.f32 0.25, %v3781_v59 }
0x1182   :  { %v1997_v61 = vmul.f32 0.25, %v1983_v31  ;;  %v3782_v62 = vpop.f32.mrb[42].mxu0 }
0x1183   :  { %v1986_v63 = vpop.f32.mrb[43].mxu0  ;;  %v2002_v5 = vadd.f32 %v4956_v56, %v1999_v60  ;;  %v3416_v60 = vld [vmem:[%s5343_s10 + $0x30] sm:$0xff] }
0x1184   :  { %v1998_v42 = vmul.f32 0.25, %v1986_v63  ;;  %v2000_v2 = vadd.f32 %v4956_v56, %v1997_v61  ;;  %v3417_v61 = vld [vmem:[%s5343_s10 + $0x38] sm:$0xff]  ;;  %v4995_v63 = vrot.slane %v1930_v41, 4 }
0x1185   :  { %v2009_v9 = vsel %vm473_vm5, %v2002_v5, -inf  ;;  %v4988_v62 = vpack.c.bf16 %v3417_v61, %v3416_v60  ;;  %v5049_v61 = vld [vmem:[%s5344_s11 + $0x1] ss:$0 sm:$0xff] }
0x1186   :  { %v2003_v26 = vsel %vm473_vm5, %v2000_v2, -inf  ;;  %v2001_v4 = vadd.f32 %v4956_v56, %v1998_v42  ;;  %v2399_v42 = vrot.slane %v4926_v34, 4 }
0x1187   :  { %2004 = vmax.xlane.f32.xlu0 %v2003_v26  ;;  %3807 = vmatprep.subr.bf16.mxu1 %v4988_v62 }
0x1188   :  { %v2006_v6 = vsel %vm473_vm5, %v2001_v4, -inf  ;;  %3808 = vmatpush3.bf16.msra.mxu1 %v4988_v62 }
0x1189   :  { %2007 = vmax.xlane.f32.xlu1 %v2006_v6 }
0x118b   :  { %2010 = vmax.xlane.f32.xlu0 %v2009_v9 }
0x118c   :  { %v3797_v33 = vpop.f32.mrb[60].mxu1 }
0x118d   :  { %v2172_v10 = vmul.f32 0.25, %v3797_v33  ;;  %v2156_v0 = vpop.f32.mrb[61].mxu1 }
0x118e   :  { %v2170_v11 = vmul.f32 0.25, %v2156_v0  ;;  %v3798_v47 = vpop.f32.mrb[62].mxu1 }
0x118f   :  { %v2159_v58 = vpop.f32.mrb[63].mxu1  ;;  %v2175_v12 = vadd.f32 %v4956_v56, %v2172_v10 }
0x1190   :  { %v2171_v13 = vmul.f32 0.25, %v2159_v58  ;;  %v2173_v52 = vadd.f32 %v4956_v56, %v2170_v11 }
0x1191   :  { %v2182_v53 = vsel %vm473_vm5, %v2175_v12, -inf }
0x1192   :  { %2183 = vmax.xlane.f32.xlu1 %v2182_v53  ;;  %v2176_v39 = vsel %vm473_vm5, %v2173_v52, -inf  ;;  %v2174_v8 = vadd.f32 %v4956_v56, %v2171_v13 }
0x1193   :  { %2177 = vmax.xlane.f32.xlu0 %v2176_v39 }
0x1194   :  { %v2179_v18 = vsel %vm473_vm5, %v2174_v8, -inf }
0x1197   :  { %2180 = vmax.xlane.f32.xlu0 %v2179_v18 }
0x1214   :  { %v2005_v44 = vpop.xlane.xlu0 %2004 }
0x1215   :  { %v2012_v32 = vsub.f32 %v2000_v2, %v2005_v44  ;;  %v5006_v2 = vsel %vm520_vm6, %v2399_v42, %v4995_v63 }
0x1216   :  { %v2008_v22 = vpop.xlane.xlu1 %2007 }
0x1217   :  { %v2015_v37 = vmul.f32 1.442695, %v2012_v32  ;;  %v2013_v7 = vsub.f32 %v2001_v4, %v2008_v22 }
0x1218   :  { %v2011_v20 = vpop.xlane.xlu0 %2010 }
0x1219   :  { %v2014_v21 = vsub.f32 %v2002_v5, %v2011_v20  ;;  %v2017_v30 = vmul.f32 1.442695, %v2013_v7 }
0x121b   :  { %v2019_v19 = vmul.f32 1.442695, %v2014_v21 }
0x121d   :  { %4035 = vpow2.f32 %v2019_v19  ;;  %v3414_v19 = vld [vmem:[%s5343_s10 + $0x20] sm:$0xff] }
0x121e   :  { %4037 = vpow2.f32 %v2015_v37 }
0x121f   :  { %v2184_v43 = vpop.xlane.xlu1 %2183 }
0x1220   :  { %v2187_v51 = vsub.f32 %v2175_v12, %v2184_v43  ;;  %v2178_v23 = vpop.xlane.xlu0 %2177  ;;  %v3415_v43 = vld [vmem:[%s5343_s10 + $0x28] sm:$0xff] }
0x1221   :  { %v2185_v48 = vsub.f32 %v2173_v52, %v2178_v23 }
0x1222   :  { %v2192_v27 = vmul.f32 1.442695, %v2187_v51  ;;  %v5031_v51 = vpack.c.bf16 %v3415_v43, %v3414_v19 }
0x1223   :  { %v2188_v25 = vmul.f32 1.442695, %v2185_v48 }
0x1224   :  { %4039 = vpow2.f32 %v2192_v27  ;;  %v2181_v28 = vpop.xlane.xlu0 %2180 }
0x1225   :  { %v2186_v29 = vsub.f32 %v2174_v8, %v2181_v28  ;;  %4041 = vpow2.f32 %v2188_v25 }
0x1227   :  { %v4970_v35 = vpop.eup %4035  ;;  %v2190_v49 = vmul.f32 1.442695, %v2186_v29 }
0x1228   :  { %v2027_v36 = vsel %vm473_vm5, %v4970_v35, 0.0  ;;  %v4038_v24 = vpop.eup %4037 }
0x1229   :  { %4043 = vpow2.f32 %v2190_v49  ;;  %2028 = vadd.xlane.f32.xlu0 %v2027_v36  ;;  %v2021_v45 = vsel %vm473_vm5, %v4038_v24, 0.0 }
0x122a   :  { %4045 = vpow2.f32 %v2017_v30 }
0x122d   :  { %2022 = vadd.xlane.f32.xlu0 %v2021_v45 }
0x122e   :  { %v4975_v46 = vpop.eup %4039 }
0x122f   :  { %v2200_v1 = vsel %vm473_vm5, %v4975_v46, 0.0  ;;  %v4042_v50 = vpop.eup %4041 }
0x1230   :  { %2201 = vadd.xlane.f32.xlu1 %v2200_v1  ;;  %v2194_v40 = vsel %vm473_vm5, %v4042_v50, 0.0 }
0x1233   :  { %v4044_v54 = vpop.eup %4043 }
0x1234   :  { %v4046_v55 = vpop.eup %4045  ;;  %2195 = vadd.xlane.f32.xlu1 %v2194_v40  ;;  %v2197_v59 = vsel %vm473_vm5, %v4044_v54, 0.0 }
0x1235   :  { %2198 = vadd.xlane.f32.xlu0 %v2197_v59  ;;  %v2024_v31 = vsel %vm473_vm5, %v4046_v55, 0.0 }
0x1238   :  { %2025 = vadd.xlane.f32.xlu1 %v2024_v31 }
0x1249   :  { %2040 = vrot.lane.b32.xlu1 %v4926_v34, %s4147_s24 }
0x124b   :  { %2038 = vrot.lane.b32.xlu0 %v4866_v3, %s4147_s24 }
0x124d   :  { %2211 = vrot.lane.b32.xlu1 %v4866_v3, %s4148_s6 }
0x124f   :  { %2402 = vrot.lane.b32.xlu0 %v5006_v2, %s4144_s4 }
0x1251   :  { %2213 = vrot.lane.b32.xlu1 %v4926_v34, %s4148_s6 }
0x1255   :  { %2404 = vrot.lane.b32.xlu1 %v4995_v63, %s4144_s4 }
0x12b6   :  { %v2029_v57 = vpop.xlane.xlu0 %2028 }
0x12b7   :  { %4047 = vrcp.f32 %v2029_v57 }
0x12ba   :  { %v2023_v41 = vpop.xlane.xlu0 %2022 }
0x12bb   :  { %4049 = vrcp.f32 %v2023_v41 }
0x12bd   :  { %v2202_v38 = vpop.xlane.xlu1 %2201 }
0x12c1   :  { %v2196_v26 = vpop.xlane.xlu1 %2195  ;;  %v4048_v33 = vpop.eup %4047 }
0x12c2   :  { %v2199_v3 = vpop.xlane.xlu0 %2198  ;;  %4051 = vrcp.f32 %v2196_v26  ;;  %v2035_v12 = vmul.f32 %v4048_v33, %v4970_v35 }
0x12c3   :  { %4053 = vrcp.f32 %v2199_v3 }
0x12c4   :  { %v2037_v18 = vpack.c.bf16 %v2035_v12, %v2035_v12 }
0x12c5   :  { %v2026_v4 = vpop.xlane.xlu1 %2025  ;;  %v4050_v10 = vpop.eup %4049 }
0x12c6   :  { %4055 = vrcp.f32 %v2026_v4  ;;  %v2039_v5 = vpop.permute.xlu0 %2038  ;;  %v2031_v13 = vmul.f32 %v4050_v10, %v4038_v24 }
0x12c7   :  { %3783 = vmatprep.subr.bf16.mxu0 %v2039_v5  ;;  %4057 = vrcp.f32 %v2202_v38 }
0x12c8   :  { %3784 = vmatpush3.bf16.msra.mxu0 %v2039_v5 }
0x12c9   :  { %v2041_v6 = vpop.permute.xlu1 %2040 }
0x12ca   :  { %v2050_v34 = vsel %vm520_vm6, %v2041_v6, 0  ;;  %v2403_v9 = vpop.permute.xlu0 %2402  ;;  %3921 = vmatprep.subr.msk.bf16.mxu0 %vm520_vm6, %v2041_v6 }
0x12cb   :  { %3925 = vmatprep.subr.msk.bf16.mxu1 %vm400_vm4, %v2403_v9  ;;  %v2413_v45 = vsel %vm400_vm4, %v2403_v9, 0 }
0x12cc   :  { %3786 = vmatpush3.bf16.msra.mxu0 %v2050_v34  ;;  %v4052_v0 = vpop.eup %4051 }
0x12cd   :  { %v2212_v11 = vpop.permute.xlu1 %2211  ;;  %v4054_v47 = vpop.eup %4053  ;;  %v2204_v53 = vmul.f32 %v4052_v0, %v4042_v50 }
0x12ce   :  { %3799 = vmatprep.subr.bf16.mxu0 %v2212_v11  ;;  %v2206_v39 = vmul.f32 %v4054_v47, %v4044_v54 }
0x12d0   :  { %v4056_v58 = vpop.eup %4055  ;;  %v2209_v32 = vpack.c.bf16 %v2206_v39, %v2204_v53 }
0x12d1   :  { %v2033_v52 = vmul.f32 %v4056_v58, %v4046_v55  ;;  %v4058_v44 = vpop.eup %4057  ;;  %v2214_v20 = vpop.permute.xlu1 %2213 }
0x12d2   :  { %v2208_v21 = vmul.f32 %v4058_v44, %v4975_v46  ;;  %v2223_v37 = vsel %vm520_vm6, %v2214_v20, 0 }
0x12d3   :  { %v2036_v8 = vpack.c.bf16 %v2033_v52, %v2031_v13 }
0x12d4   :  { %v2210_v22 = vpack.c.bf16 %v2208_v21, %v2208_v21 }
0x12d5   :  { %3787 = vmatprep.mubr.msk.bf16.mxu0 %vm473_vm5, %v2036_v8  ;;  %v2405_v46 = vpop.permute.xlu1 %2404 }
0x12d6   :  { %3788 = vmatmul.mubr.msk.bf16.vlgmr.msra.gmra.mrb[44].mxu0 %vm473_vm5, %v2037_v18  ;;  %v2416_v1 = vsel %vm400_vm4, %v2405_v46, 0 }
0x12d7   :  { %3800 = vmatpush3.bf16.msra.mxu0 %v2212_v11  ;;  %3803 = vmatprep.mubr.msk.bf16.mxu0 %vm473_vm5, %v2209_v32 }
0x12d8   :  { %3924 = vmatprep.subr.msk.bf16.mxu0 %vm520_vm6, %v2214_v20 }
0x12db   :  { %3802 = vmatpush3.bf16.msra.mxu0 %v2223_v37 }
0x12dc   :  { %3813 = vmatprep.subr.bf16.mxu0 %v5031_v51 }
0x12de   :  { %3804 = vmatmul.mubr.msk.bf16.vlgmr.msra.gmra.mrb[48].mxu0 %vm473_vm5, %v2210_v22 }
0x12df   :  { %3814 = vmatpush3.bf16.msra.mxu0 %v5031_v51 }
0x13a9   :  { %v3789_v23 = vpop.f32.mrb[44].mxu0 }
0x13aa   :  { %v2086_v48 = vpop.f32.mrb[45].mxu0  ;;  %v2101_v28 = vpack.c.bf16 %v3789_v23, %v3789_v23 }
0x13ab   :  { %v3790_v7 = vpop.f32.mrb[46].mxu0 }
0x13ac   :  { %v2089_v27 = vpop.f32.mrb[47].mxu0 }
0x13ad   :  { %v2100_v25 = vpack.c.bf16 %v2089_v27, %v2086_v48 }
0x13af   :  { %3815 = vmatprep.mubr.msk.bf16.mxu0 %vm400_vm4, %v2100_v25 }
0x13b0   :  { %3816 = vmatmul.mubr.msk.bf16.vlgmr.msra.gmra.mrb[52].mxu0 %vm400_vm4, %v2101_v28 }
0x13b1   :  { %v3805_v29 = vpop.f32.mrb[48].mxu0 }
0x13b2   :  { %v2259_v30 = vpop.f32.mrb[49].mxu0  ;;  %v2274_v24 = vpack.c.bf16 %v3805_v29, %v3805_v29 }
0x13b3   :  { %v3806_v35 = vpop.f32.mrb[50].mxu0 }
0x13b4   :  { %v2262_v49 = vpop.f32.mrb[51].mxu0 }
0x13b5   :  { %v2273_v36 = vpack.c.bf16 %v2262_v49, %v2259_v30 }
0x13b7   :  { %3809 = vmatprep.mubr.msk.bf16.mxu1 %vm400_vm4, %v2273_v36 }
0x13b8   :  { %3810 = vmatmul.mubr.msk.bf16.vlgmr.msra.gmra.mrb[64].mxu1 %vm400_vm4, %v2274_v24 }
0x13b9   :  { %3820 = vmatpush3.bf16.xpose.msra.mxu1 %v2413_v45  ;;  %3823 = vmatprep.mubr.msk.bf16.mxu1 %vm400_vm4, %v5006_v2 }
0x13ba   :  { %3926 = vmatprep.subr.msk.bf16.mxu1 %vm400_vm4, %v2405_v46 }
0x13c1   :  { %3822 = vmatpush3.bf16.xpose.msra.mxu1 %v2416_v1 }
0x13c8   :  { %3824 = vmatmul.mubr.msk.bf16.vlgmr.msra.gmra.mrb[68].mxu1 %vm400_vm4, %v4995_v63 }
0x1483   :  { %v3817_v50 = vpop.f32.mrb[52].mxu0 }
0x1484   :  { %v2369_v54 = vpop.f32.mrb[53].mxu0 }
0x1485   :  { %v3818_v40 = vpop.f32.mrb[54].mxu0 }
0x1486   :  { %v2372_v55 = vpop.f32.mrb[55].mxu0 }
0x148b   :  { %v3811_v59 = vpop.f32.mrb[64].mxu1 }
0x148c   :  { %v2378_v31 = vadd.f32 %v3817_v50, %v3811_v59  ;;  %v2315_v60 = vpop.f32.mrb[65].mxu1 }
0x148d   :  { %v2370_v42 = vadd.f32 %v2369_v54, %v2315_v60  ;;  %v3812_v57 = vpop.f32.mrb[66].mxu1 }
0x148e   :  { %v2385_v38 = vadd.f32 %v2378_v31, %v4868_v15  ;;  %v2318_v41 = vpop.f32.mrb[67].mxu1 }
0x148f   :  { %v2383_v26 = vadd.f32 %v2370_v42, %v4789_v14  ;;  %v2373_v3 = vadd.f32 %v2372_v55, %v2318_v41 }
0x1490   :  { %v2394_v4 = vadd.f32 %v5049_v61, %v2385_v38 }
0x1491   :  { %v2392_v5 = vadd.f32 %v5049_v61, %v2383_v26  ;;  %v2384_v6 = vadd.f32 %v2373_v3, %v4795_v17 }
0x1492   :  { %2397 = vst.msk [vmem:[#allocation2 + $0x10] sm:$0xff] %vm154_vm1, %v2394_v4 }
0x1493   :  { %2395 = vst.msk [vmem:[#allocation2] sm:$0xff] %vm154_vm1, %v2392_v5  ;;  %v2393_v34 = vadd.f32 %v5049_v61, %v2384_v6 }
0x1495   :  { %2396 = vst.msk [vmem:[#allocation2 + $0x8] sm:$0xff] %vm154_vm1, %v2393_v34 }
0x149b   :  { %v3825_v9 = vpop.f32.mrb[68].mxu1 }
0x149c   :  { %v2452_v15 = vpop.f32.mrb[69].mxu1  ;;  %v2468_v33 = vmul.f32 0.25, %v3825_v9 }
0x149d   :  { %v2466_v10 = vmul.f32 0.25, %v2452_v15  ;;  %v3826_v14 = vpop.f32.mrb[70].mxu1 }
0x149e   :  { %v2455_v0 = vpop.f32.mrb[71].mxu1  ;;  %v2471_v58 = vadd.f32 %v4956_v56, %v2468_v33 }
0x149f   :  { %v2469_v11 = vadd.f32 %v4956_v56, %v2466_v10  ;;  %v2467_v47 = vmul.f32 0.25, %v2455_v0 }
0x14a0   :  { %v2478_v52 = vsel %vm473_vm5, %v2471_v58, -inf }
0x14a1   :  { %v2470_v17 = vadd.f32 %v4956_v56, %v2467_v47  ;;  %v2472_v12 = vsel %vm473_vm5, %v2469_v11, -inf }
0x14a2   :  { %2473 = vmax.xlane.f32.xlu0 %v2472_v12 }
0x14a3   :  { %v2475_v13 = vsel %vm473_vm5, %v2470_v17, -inf }
0x14a4   :  { %2476 = vmax.xlane.f32.xlu1 %v2475_v13 }
0x14a6   :  { %2479 = vmax.xlane.f32.xlu0 %v2478_v52 }
0x152f   :  { %v2474_v53 = vpop.xlane.xlu0 %2473 }
0x1530   :  { %v2481_v39 = vsub.f32 %v2469_v11, %v2474_v53 }
0x1531   :  { %v2477_v8 = vpop.xlane.xlu1 %2476 }
0x1532   :  { %v2484_v18 = vmul.f32 1.442695, %v2481_v39  ;;  %v2482_v44 = vsub.f32 %v2470_v17, %v2477_v8 }
0x1533   :  { %v2480_v32 = vpop.xlane.xlu0 %2479 }
0x1534   :  { %4059 = vpow2.f32 %v2484_v18  ;;  %v2486_v20 = vmul.f32 1.442695, %v2482_v44  ;;  %v2483_v21 = vsub.f32 %v2471_v58, %v2480_v32 }
0x1536   :  { %4061 = vpow2.f32 %v2486_v20  ;;  %v2488_v37 = vmul.f32 1.442695, %v2483_v21 }
0x1538   :  { %4063 = vpow2.f32 %v2488_v37 }
0x153e   :  { %v4060_v22 = vpop.eup %4059 }
0x153f   :  { %v2490_v19 = vsel %vm473_vm5, %v4060_v22, 0.0 }
0x1540   :  { %v4062_v43 = vpop.eup %4061  ;;  %2491 = vadd.xlane.f32.xlu0 %v2490_v19 }
0x1541   :  { %v2493_v7 = vsel %vm473_vm5, %v4062_v43, 0.0 }
0x1542   :  { %v4064_v23 = vpop.eup %4063 }
0x1543   :  { %v2496_v48 = vsel %vm473_vm5, %v4064_v23, 0.0 }
0x1544   :  { %2497 = vadd.xlane.f32.xlu1 %v2496_v48  ;;  %2494 = vadd.xlane.f32.xlu0 %v2493_v7  ;;  %v5117_v7 = vld [vmem:[#allocation2] sm:$0xff] }
0x1555   :  { %2509 = vrot.lane.b32.xlu1 %v4995_v63, %s4147_s24 }
0x1559   :  { %2575 = vrot.lane.b32.xlu1 %v5006_v2, %s4146_s29 }
0x155a   :  { %2507 = vrot.lane.b32.xlu0 %v5006_v2, %s4147_s24 }
0x155d   :  { %2577 = vrot.lane.b32.xlu1 %v4995_v63, %s4146_s29 }
0x155e   :  { %2571 = vrot.lane.b32.xlu0 %v5006_v2, %s4145_s0 }
0x1561   :  { %2573 = vrot.lane.b32.xlu1 %v4995_v63, %s4145_s0 }
0x15cd   :  { %v2492_v27 = vpop.xlane.xlu0 %2491 }
0x15ce   :  { %4065 = vrcp.f32 %v2492_v27  ;;  %v5119_v27 = vld [vmem:[#allocation2 + $0x8] sm:$0xff] }
0x15d1   :  { %v2495_v25 = vpop.xlane.xlu0 %2494  ;;  %v2498_v28 = vpop.xlane.xlu1 %2497 }
0x15d2   :  { %4067 = vrcp.f32 %v2495_v25  ;;  %v2891_v25 = vsel %vm154_vm1, %v5117_v7, 0.0 }
0x15d3   :  { %4069 = vrcp.f32 %v2498_v28  ;;  %v2915_v28 = vmul.f32 %v5117_v7, %v5117_v7 }
0x15d5   :  { %v2508_v29 = vpop.permute.xlu0 %2507  ;;  %v2510_v30 = vpop.permute.xlu1 %2509 }
0x15d6   :  { %3827 = vmatprep.subr.bf16.mxu0 %v2508_v29  ;;  %v2519_v49 = vsel %vm520_vm6, %v2510_v30, 0 }
0x15d7   :  { %3828 = vmatpush3.bf16.msra.mxu0 %v2508_v29 }
0x15d8   :  { %3927 = vmatprep.subr.msk.bf16.mxu0 %vm520_vm6, %v2510_v30  ;;  %v4066_v35 = vpop.eup %4065  ;;  %v2921_v30 = vsel %vm154_vm1, %v2915_v28, 0.0  ;;  %v5170_v28 = vld [vmem:[%s5346_s13 + $0x1] ss:$0 sm:$0xff] }
0x15d9   :  { %v2576_v36 = vpop.permute.xlu1 %2575  ;;  %v2500_v46 = vmul.f32 %v4066_v35, %v4060_v22  ;;  %v2572_v55 = vpop.permute.xlu0 %2571  ;;  %v5131_v35 = vld [vmem:[#allocation2 + $0x10] sm:$0xff] }
0x15da   :  { %v2586_v59 = vsel %vm400_vm4, %v2576_v36, 0 }
0x15db   :  { %3830 = vmatpush3.bf16.msra.mxu0 %v2519_v49  ;;  %v2897_v49 = vsel %vm154_vm1, %v5131_v35, 0.0 }
0x15dc   :  { %v4068_v24 = vpop.eup %4067  ;;  %3928 = vmatprep.subr.msk.bf16.mxu0 %vm400_vm4, %v2576_v36  ;;  %v2917_v36 = vmul.f32 %v5131_v35, %v5131_v35 }
0x15dd   :  { %v4070_v45 = vpop.eup %4069  ;;  %v2502_v1 = vmul.f32 %v4068_v24, %v4062_v43  ;;  %v2578_v31 = vpop.permute.xlu1 %2577 }
0x15de   :  { %v2504_v50 = vmul.f32 %v4070_v45, %v4064_v23  ;;  %v2589_v60 = vsel %vm400_vm4, %v2578_v31, 0  ;;  %v2927_v24 = vsel %vm154_vm1, %v2917_v36, 0.0 }
0x15df   :  { %v2505_v54 = vpack.c.bf16 %v2502_v1, %v2500_v46 }
0x15e0   :  { %v2506_v40 = vpack.c.bf16 %v2504_v50, %v2504_v50 }
0x15e1   :  { %3831 = vmatprep.mubr.msk.bf16.mxu0 %vm473_vm5, %v2505_v54  ;;  %v2574_v42 = vpop.permute.xlu1 %2573 }
0x15e2   :  { %3832 = vmatmul.mubr.msk.bf16.vlgmr.msra.gmra.mrb[56].mxu0 %vm473_vm5, %v2506_v40 }
0x15e3   :  { %3839 = vmatprep.mubr.msk.bf16.mxu0 %vm400_vm4, %v2572_v55 }
0x15e4   :  { %3836 = vmatpush3.bf16.xpose.msra.mxu0 %v2586_v59 }
0x15e5   :  { %3929 = vmatprep.subr.msk.bf16.mxu0 %vm400_vm4, %v2578_v31 }
0x15ec   :  { %3838 = vmatpush3.bf16.xpose.msra.mxu0 %v2589_v60 }
0x15ed   :  { %3857 = vmatprep.subr.bf16.mxu0 %v5031_v51 }
0x15f3   :  { %3840 = vmatmul.mubr.msk.bf16.vlgmr.msra.gmra.mrb[60].mxu0 %vm400_vm4, %v2574_v42 }
0x15f4   :  { %3858 = vmatpush3.bf16.msra.mxu0 %v5031_v51 }
0x15f5   :  { %3879 = vmatprep.subr.bf16.mxu0 %v4142_v16 }
0x16b5   :  { %v3833_v57 = vpop.f32.mrb[56].mxu0 }
0x16b6   :  { %v2555_v38 = vpop.f32.mrb[57].mxu0  ;;  %v2570_v4 = vpack.c.bf16 %v3833_v57, %v3833_v57 }
0x16b7   :  { %v3834_v41 = vpop.f32.mrb[58].mxu0 }
0x16b8   :  { %v2558_v26 = vpop.f32.mrb[59].mxu0 }
0x16b9   :  { %v2569_v3 = vpack.c.bf16 %v2558_v26, %v2555_v38 }
0x16bb   :  { %3859 = vmatprep.mubr.msk.bf16.mxu0 %vm400_vm4, %v2569_v3 }
0x16bc   :  { %3860 = vmatmul.mubr.msk.bf16.vlgmr.msra.gmra.mrb[64].mxu0 %vm400_vm4, %v2570_v4 }
0x16bd   :  { %3887 = vmatprep.mubr.msk.bf16.mxu0 %vm4143_vm3, %v4142_v16 }
0x16c6   :  { %v3841_v5 = vpop.f32.mrb[60].mxu0 }
0x16c7   :  { %v2625_v6 = vpop.f32.mrb[61].mxu0  ;;  %v2641_v34 = vmul.f32 0.25, %v3841_v5 }
0x16c8   :  { %v2639_v9 = vmul.f32 0.25, %v2625_v6  ;;  %v3842_v51 = vpop.f32.mrb[62].mxu0 }
0x16c9   :  { %v2628_v15 = vpop.f32.mrb[63].mxu0  ;;  %v2644_v14 = vadd.f32 %v4956_v56, %v2641_v34 }
0x16ca   :  { %v2642_v33 = vadd.f32 %v4956_v56, %v2639_v9  ;;  %v2640_v10 = vmul.f32 0.25, %v2628_v15 }
0x16cb   :  { %v2651_v58 = vsel %vm473_vm5, %v2644_v14, -inf }
0x16cc   :  { %v2643_v0 = vadd.f32 %v4956_v56, %v2640_v10  ;;  %v2645_v11 = vsel %vm473_vm5, %v2642_v33, -inf }
0x16cd   :  { %2646 = vmax.xlane.f32.xlu0 %v2645_v11 }
0x16ce   :  { %v2648_v47 = vsel %vm473_vm5, %v2643_v0, -inf }
0x16cf   :  { %2649 = vmax.xlane.f32.xlu1 %v2648_v47 }
0x16d1   :  { %2652 = vmax.xlane.f32.xlu0 %v2651_v58 }
0x175a   :  { %v2647_v17 = vpop.xlane.xlu0 %2646 }
0x175b   :  { %v2654_v12 = vsub.f32 %v2642_v33, %v2647_v17 }
0x175c   :  { %v2650_v13 = vpop.xlane.xlu1 %2649 }
0x175d   :  { %v2657_v52 = vmul.f32 1.442695, %v2654_v12  ;;  %v2655_v53 = vsub.f32 %v2643_v0, %v2650_v13 }
0x175e   :  { %v2653_v39 = vpop.xlane.xlu0 %2652 }
0x175f   :  { %4071 = vpow2.f32 %v2657_v52  ;;  %v2659_v8 = vmul.f32 1.442695, %v2655_v53  ;;  %v2656_v18 = vsub.f32 %v2644_v14, %v2653_v39 }
0x1761   :  { %4073 = vpow2.f32 %v2659_v8  ;;  %v2661_v56 = vmul.f32 1.442695, %v2656_v18  ;;  %v3449_v18 = vld [vmem:[%s5347_s14 + $0x20] sm:$0xff] }
0x1763   :  { %4075 = vpow2.f32 %v2661_v56  ;;  %v3450_v56 = vld [vmem:[%s5347_s14 + $0x28] sm:$0xff] }
0x1769   :  { %v4072_v44 = vpop.eup %4071 }
0x176a   :  { %v2663_v32 = vsel %vm473_vm5, %v4072_v44, 0.0 }
0x176b   :  { %v4074_v20 = vpop.eup %4073  ;;  %2664 = vadd.xlane.f32.xlu0 %v2663_v32  ;;  %v5156_v32 = vld [vmem:[%s5345_s12 + $0x1] ss:$0 sm:$0xff] }
0x176c   :  { %v2666_v22 = vsel %vm473_vm5, %v4074_v20, 0.0 }
0x176d   :  { %v4076_v21 = vpop.eup %4075 }
0x176e   :  { %v2669_v37 = vsel %vm473_vm5, %v4076_v21, 0.0 }
0x176f   :  { %2670 = vadd.xlane.f32.xlu1 %v2669_v37  ;;  %2667 = vadd.xlane.f32.xlu0 %v2666_v22  ;;  %v2866_v37 = vpack.c.bf16 %v3450_v56, %v3449_v18 }
0x1780   :  { %2682 = vrot.lane.b32.xlu1 %v4995_v63, %s4148_s6  ;;  %v2894_v63 = vsel %vm154_vm1, %v5119_v27, 0.0 }
0x1785   :  { %2680 = vrot.lane.b32.xlu0 %v5006_v2, %s4148_s6  ;;  %v2916_v2 = vmul.f32 %v5119_v27, %v5119_v27 }
0x1787   :  { %v2924_v29 = vsel %vm154_vm1, %v2916_v2, 0.0 }
0x178f   :  { %v5111_v19 = vpop.f32.mrb[64].mxu0 }
0x1790   :  { %v5113_v43 = vpop.f32.mrb[65].mxu0 }
0x1791   :  { %v3862_v23 = vpop.f32.mrb[66].mxu0 }
0x1792   :  { %v5115_v48 = vpop.f32.mrb[67].mxu0  ;;  %v3451_v23 = vld [vmem:[%s5347_s14 + $0x30] sm:$0xff] }
0x17a4   :  { %2892 = vadd.xlane.f32.xlu1 %v2891_v25  ;;  %2895 = vadd.xlane.f32.xlu0 %v2894_v63  ;;  %v3452_v25 = vld [vmem:[%s5347_s14 + $0x38] sm:$0xff] }
0x17a8   :  { %2925 = vadd.xlane.f32.xlu1 %v2924_v29  ;;  %2922 = vadd.xlane.f32.xlu0 %v2921_v30  ;;  %v2867_v29 = vpack.c.bf16 %v3452_v25, %v3451_v23 }
0x17ac   :  { %2898 = vadd.xlane.f32.xlu0 %v2897_v49 }
0x17b0   :  { %2928 = vadd.xlane.f32.xlu0 %v2927_v24  ;;  %v3453_v24 = vld [vmem:[%s5349_s16 + $0x40] sm:$0xff] }
0x17f8   :  { %v2665_v45 = vpop.xlane.xlu0 %2664 }
0x17f9   :  { %4077 = vrcp.f32 %v2665_v45  ;;  %v3454_v45 = vld [vmem:[%s5349_s16 + $0x48] sm:$0xff] }
0x17fc   :  { %v2668_v46 = vpop.xlane.xlu0 %2667  ;;  %v2671_v1 = vpop.xlane.xlu1 %2670 }
0x17fd   :  { %4079 = vrcp.f32 %v2668_v46  ;;  %v2877_v46 = vpack.c.bf16 %v3454_v45, %v3453_v24 }
0x17fe   :  { %4081 = vrcp.f32 %v2671_v1  ;;  %v3455_v1 = vld [vmem:[%s5349_s16 + $0x50] sm:$0xff] }
0x17ff   :  { %3880 = vmatpush3.bf16.msra.mxu0 %v2877_v46 }
0x1800   :  { %v2681_v50 = vpop.permute.xlu0 %2680  ;;  %v2683_v54 = vpop.permute.xlu1 %2682  ;;  %3881 = vmatprep.subr.bf16.mxu0 %v4142_v16 }
0x1801   :  { %3843 = vmatprep.subr.bf16.mxu1 %v2681_v50  ;;  %v2692_v55 = vsel %vm520_vm6, %v2683_v54, 0 }
0x1802   :  { %3844 = vmatpush3.bf16.msra.mxu1 %v2681_v50  ;;  %v3456_v50 = vld [vmem:[%s5349_s16 + $0x58] sm:$0xff] }
0x1803   :  { %3930 = vmatprep.subr.msk.bf16.mxu1 %vm520_vm6, %v2683_v54  ;;  %v4078_v40 = vpop.eup %4077  ;;  %v2878_v54 = vpack.c.bf16 %v3456_v50, %v3455_v1 }
0x1804   :  { %v2673_v60 = vmul.f32 %v4078_v40, %v4072_v44  ;;  %v3457_v40 = vld [vmem:[%s5349_s16 + $0x60] sm:$0xff] }
0x1805   :  { %3882 = vmatpush3.bf16.msra.mxu0 %v2878_v54 }
0x1806   :  { %3846 = vmatpush3.bf16.msra.mxu1 %v2692_v55  ;;  %3883 = vmatprep.subr.bf16.mxu0 %v4142_v16  ;;  %v3458_v55 = vld [vmem:[%s5349_s16 + $0x68] sm:$0xff] }
0x1807   :  { %v4080_v59 = vpop.eup %4079  ;;  %3851 = vmatprep.subr.bf16.mxu1 %v4988_v62 }
0x1808   :  { %v4082_v31 = vpop.eup %4081  ;;  %v2675_v42 = vmul.f32 %v4080_v59, %v4074_v20  ;;  %v2879_v59 = vpack.c.bf16 %v3458_v55, %v3457_v40 }
0x1809   :  { %v2677_v57 = vmul.f32 %v4082_v31, %v4076_v21  ;;  %v3459_v31 = vld [vmem:[%s5349_s16 + $0x70] sm:$0xff] }
0x180a   :  { %v2678_v38 = vpack.c.bf16 %v2675_v42, %v2673_v60  ;;  %3884 = vmatpush3.bf16.msra.mxu0 %v2879_v59  ;;  %v3460_v60 = vld [vmem:[%s5349_s16 + $0x78] sm:$0xff] }
0x180b   :  { %v2679_v41 = vpack.c.bf16 %v2677_v57, %v2677_v57  ;;  %3885 = vmatprep.subr.bf16.mxu0 %v4142_v16  ;;  %v2880_v42 = vpack.c.bf16 %v3460_v60, %v3459_v31 }
0x180c   :  { %3847 = vmatprep.mubr.msk.bf16.mxu1 %vm473_vm5, %v2678_v38 }
0x180d   :  { %3848 = vmatmul.mubr.msk.bf16.vlgmr.msra.gmra.mrb[72].mxu1 %vm473_vm5, %v2679_v41 }
0x180e   :  { %3852 = vmatpush3.bf16.msra.mxu1 %v4988_v62  ;;  %3886 = vmatpush3.bf16.msra.mxu0 %v2880_v42 }
0x180f   :  { %3863 = vmatprep.subr.bf16.mxu1 %v4142_v16 }
0x1831   :  { %v2896_v26 = vpop.xlane.xlu0 %2895  ;;  %v2893_v3 = vpop.xlane.xlu1 %2892 }
0x1832   :  { %v2909_v5 = vmul.f32 0.03125, %v2893_v3  ;;  %v2910_v34 = vmul.f32 0.03125, %v2896_v26 }
0x1834   :  { %v2945_v15 = vmul.f32 %v2909_v5, %v2909_v5  ;;  %v2946_v33 = vmul.f32 %v2910_v34, %v2910_v34  ;;  %v2964_v12 = vsub.f32 %v5119_v27, %v2910_v34  ;;  %v2963_v13 = vsub.f32 %v5117_v7, %v2909_v5  ;;  %v4116_v34 = vld [vmem:[#allocation2 + $0x18] sm:$0xff] }
0x1835   :  { %v2923_v4 = vpop.xlane.xlu0 %2922  ;;  %v2926_v6 = vpop.xlane.xlu1 %2925 }
0x1836   :  { %v2939_v9 = vmul.f32 0.03125, %v2923_v4  ;;  %v2940_v51 = vmul.f32 0.03125, %v2926_v6  ;;  %v4115_v4 = vld [vmem:[#allocation2 + $0x28] sm:$0xff] }
0x1838   :  { %v2951_v10 = vsub.f32 %v2939_v9, %v2945_v15  ;;  %v2952_v14 = vsub.f32 %v2940_v51, %v2946_v33 }
0x1839   :  { %v2899_v59 = vpop.xlane.xlu0 %2898 }
0x183a   :  { %v2957_v0 = vmax.f32 %v2951_v10, 0.0  ;;  %v2958_v11 = vmax.f32 %v2952_v14, 0.0  ;;  %v4117_v10 = vld [vmem:[#allocation2 + $0x20] sm:$0xff]  ;;  %v2911_v60 = vmul.f32 0.03125, %v2899_v59 }
0x183c   :  { %v2969_v47 = vadd.f32 1e-12, %v2957_v0  ;;  %v2970_v58 = vadd.f32 1e-12, %v2958_v11 }
0x183d   :  { %v2929_v31 = vpop.xlane.xlu0 %2928 }
0x183e   :  { %4083 = vrsqrt.f32 %v2969_v47  ;;  %v2941_v42 = vmul.f32 0.03125, %v2929_v31  ;;  %v5270_v31 = vld [vmem:[%s5350_s17 + $0x1] ss:$0 sm:$0xff] }
0x183f   :  { %4085 = vrsqrt.f32 %v2970_v58 }
0x1848   :  { %v4084_v62 = vpop.eup %4083 }
0x1849   :  { %v4086_v17 = vpop.eup %4085  ;;  %v2981_v53 = vmul.f32 %v4084_v62, %v2963_v13 }
0x184a   :  { %v2982_v39 = vmul.f32 %v4086_v17, %v2964_v12 }
0x184b   :  { %v2993_v63 = vmul.f32 %v5156_v32, %v2981_v53 }
0x184c   :  { %v2994_v2 = vmul.f32 %v5156_v32, %v2982_v39 }
0x184d   :  { %v3005_v30 = vadd.f32 %v5170_v28, %v2993_v63 }
0x184e   :  { %v3006_v49 = vadd.f32 %v5170_v28, %v2994_v2 }
0x1850   :  { %v3011_v36 = vpack.c.bf16 %v3006_v49, %v3005_v30 }
0x18e0   :  { %v3849_v52 = vpop.f32.mrb[72].mxu1 }
0x18e1   :  { %v2728_v8 = vpop.f32.mrb[73].mxu1  ;;  %v2743_v22 = vpack.c.bf16 %v3849_v52, %v3849_v52 }
0x18e2   :  { %v3850_v44 = vpop.f32.mrb[74].mxu1 }
0x18e3   :  { %v2731_v20 = vpop.f32.mrb[75].mxu1 }
0x18e4   :  { %v2742_v21 = vpack.c.bf16 %v2731_v20, %v2728_v8 }
0x18e6   :  { %3853 = vmatprep.mubr.msk.bf16.mxu1 %vm400_vm4, %v2742_v21 }
0x18e7   :  { %3854 = vmatmul.mubr.msk.bf16.vlgmr.msra.gmra.mrb[76].mxu1 %vm400_vm4, %v2743_v22 }
0x18e8   :  { %3864 = vmatpush3.bf16.msra.mxu1 %v2866_v37  ;;  %3867 = vmatprep.mubr.msk.bf16.mxu1 %vm4143_vm3, %v4142_v16 }
0x18e9   :  { %3865 = vmatprep.subr.bf16.mxu1 %v4142_v16 }
0x18ec   :  { %3866 = vmatpush3.bf16.msra.mxu1 %v2867_v29 }
0x18ed   :  { %3899 = vmatprep.subr.bf16.mxu1 %v4142_v16 }
0x18ef   :  { %3868 = vmatmul.mubr.msk.bf16.vlgmr.msra.gmra.mrb[80].mxu1 %vm154_vm1, %v3011_v36 }
0x18f0   :  { %3871 = vmatprep.mubr.msk.bf16.mxu1 %vm4143_vm3, %v4142_v16 }
0x19ba   :  { %v3855_v57 = vpop.f32.mrb[76].mxu1 }
0x19bb   :  { %v2847_v38 = vadd.f32 %v5111_v19, %v3855_v57  ;;  %v2784_v41 = vpop.f32.mrb[77].mxu1  ;;  %v5217_v19 = vld [vmem:[%s5348_s15 + $0x1] ss:$0 sm:$0xff]  ;;  %v2947_v57 = vmul.f32 %v2911_v60, %v2911_v60 }
0x19bc   :  { %v2839_v26 = vadd.f32 %v5113_v43, %v2784_v41  ;;  %v3856_v3 = vpop.f32.mrb[78].mxu1 }
0x19bd   :  { %v2854_v5 = vadd.f32 %v4115_v4, %v2847_v38  ;;  %v2787_v6 = vpop.f32.mrb[79].mxu1  ;;  %v2953_v38 = vsub.f32 %v2941_v42, %v2947_v57 }
0x19be   :  { %v2852_v9 = vadd.f32 %v4116_v34, %v2839_v26  ;;  %v2842_v51 = vadd.f32 %v5115_v48, %v2787_v6 }
0x19bf   :  { %v2857_v15 = vadd.f32 %v5049_v61, %v2854_v5  ;;  %v2959_v41 = vmax.f32 %v2953_v38, 0.0 }
0x19c0   :  { %v2855_v33 = vadd.f32 %v5049_v61, %v2852_v9  ;;  %v2853_v14 = vadd.f32 %v4117_v10, %v2842_v51 }
0x19c1   :  { %2860 = vst.msk [vmem:[#allocation2 + $0x28] sm:$0xff] %vm154_vm1, %v2857_v15  ;;  %v2971_v5 = vadd.f32 1e-12, %v2959_v41 }
0x19c2   :  { %2858 = vst.msk [vmem:[#allocation2 + $0x18] sm:$0xff] %vm154_vm1, %v2855_v33  ;;  %v2856_v43 = vadd.f32 %v5049_v61, %v2853_v14  ;;  %v3065_v0 = vpop.f32.mrb[80].mxu1 }
0x19c3   :  { %v3066_v48 = vadd.f32 %v5217_v19, %v3065_v0  ;;  %v3869_v11 = vpop.f32.mrb[81].mxu1 }
0x19c4   :  { %2859 = vst.msk [vmem:[#allocation2 + $0x20] sm:$0xff] %vm154_vm1, %v2856_v43  ;;  %v3068_v47 = vpop.f32.mrb[82].mxu1 }
0x19c5   :  { %v3088_v58 = vmul.f32 %v3066_v48, %v3066_v48  ;;  %v3069_v62 = vadd.f32 %v5217_v19, %v3068_v47  ;;  %v3870_v17 = vpop.f32.mrb[83].mxu1 }
0x19c7   :  { %v3094_v12 = vmul.f32 %v3088_v58, %v3066_v48  ;;  %v3089_v13 = vmul.f32 %v3069_v62, %v3069_v62 }
0x19c8   :  { %v5238_v63 = vld [vmem:[#allocation2 + $0x28] sm:$0xff] }
0x19c9   :  { %v3100_v52 = vmul.f32 0.044715, %v3094_v12  ;;  %v3095_v53 = vmul.f32 %v3089_v13, %v3069_v62  ;;  %v5225_v39 = vld [vmem:[#allocation2 + $0x18] sm:$0xff]  ;;  %v2906_v29 = vsel %vm154_vm1, %v5238_v63, 0.0  ;;  %v2920_v30 = vmul.f32 %v5238_v63, %v5238_v63 }
0x19ca   :  { %v2900_v61 = vsel %vm154_vm1, %v5225_v39, 0.0  ;;  %v2918_v8 = vmul.f32 %v5225_v39, %v5225_v39 }
0x19cb   :  { %v3106_v18 = vadd.f32 %v3100_v52, %v3066_v48  ;;  %v3101_v56 = vmul.f32 0.044715, %v3095_v53  ;;  %2901 = vadd.xlane.f32.xlu1 %v2900_v61  ;;  %v5231_v44 = vld [vmem:[#allocation2 + $0x20] sm:$0xff]  ;;  %v2936_v49 = vsel %vm154_vm1, %v2920_v30, 0.0 }
0x19cc   :  { %v2903_v20 = vsel %vm154_vm1, %v5231_v44, 0.0  ;;  %v2919_v21 = vmul.f32 %v5231_v44, %v5231_v44  ;;  %v2930_v23 = vsel %vm154_vm1, %v2918_v8, 0.0  ;;  %v2965_v8 = vsub.f32 %v5131_v35, %v2911_v60 }
0x19cd   :  { %v3112_v37 = vmul.f32 0.7978846, %v3106_v18  ;;  %v3107_v22 = vadd.f32 %v3101_v56, %v3069_v62  ;;  %2904 = vadd.xlane.f32.xlu0 %v2903_v20 }
0x19ce   :  { %v2933_v2 = vsel %vm154_vm1, %v2919_v21, 0.0 }
0x19cf   :  { %4087 = vtanh.f32 %v3112_v37  ;;  %v3113_v25 = vmul.f32 0.7978846, %v3107_v22  ;;  %2931 = vadd.xlane.f32.xlu1 %v2930_v23 }
0x19d1   :  { %4089 = vtanh.f32 %v3113_v25  ;;  %2934 = vadd.xlane.f32.xlu0 %v2933_v2 }
0x19d2   :  { %4091 = vrsqrt.f32 %v2971_v5 }
0x19d3   :  { %2907 = vadd.xlane.f32.xlu1 %v2906_v29 }
0x19d7   :  { %2937 = vadd.xlane.f32.xlu1 %v2936_v49 }
0x19d9   :  { %v4088_v36 = vpop.eup %4087 }
0x19da   :  { %v3124_v24 = vadd.f32 1.0, %v4088_v36 }
0x19db   :  { %v4090_v45 = vpop.eup %4089 }
0x19dc   :  { %v3130_v46 = vmul.f32 0.5, %v3124_v24  ;;  %v3125_v1 = vadd.f32 1.0, %v4090_v45  ;;  %v4092_v53 = vpop.eup %4091 }
0x19dd   :  { %v2983_v56 = vmul.f32 %v4092_v53, %v2965_v8 }
0x19de   :  { %v3131_v50 = vmul.f32 0.5, %v3125_v1  ;;  %v3136_v54 = vmul.f32 %v3130_v46, %v3066_v48 }
0x19df   :  { %v2995_v22 = vmul.f32 %v5156_v32, %v2983_v56 }
0x19e0   :  { %v3137_v40 = vmul.f32 %v3131_v50, %v3069_v62 }
0x19e1   :  { %v3007_v29 = vadd.f32 %v5170_v28, %v2995_v22 }
0x19e2   :  { %v3142_v55 = vpack.c.bf16 %v3137_v40, %v3136_v54 }
0x19e4   :  { %3888 = vmatmul.mubr.msk.bf16.vlgmr.msra.gmra.mrb[68].mxu0 %vm1613_vm7, %v3142_v55 }
0x19e5   :  { %3891 = vmatprep.mubr.msk.bf16.mxu0 %vm4143_vm3, %v4142_v16 }
0x1a58   :  { %v2902_v26 = vpop.xlane.xlu1 %2901 }
0x1a59   :  { %v2912_v3 = vmul.f32 0.03125, %v2902_v26 }
0x1a5a   :  { %v2905_v4 = vpop.xlane.xlu0 %2904 }
0x1a5b   :  { %v2913_v6 = vmul.f32 0.03125, %v2905_v4  ;;  %v2948_v9 = vmul.f32 %v2912_v3, %v2912_v3  ;;  %v2966_v20 = vsub.f32 %v5225_v39, %v2912_v3 }
0x1a5c   :  { %v2932_v34 = vpop.xlane.xlu1 %2931 }
0x1a5d   :  { %v2942_v51 = vmul.f32 0.03125, %v2932_v34  ;;  %v2949_v33 = vmul.f32 %v2913_v6, %v2913_v6  ;;  %v2967_v25 = vsub.f32 %v5231_v44, %v2913_v6 }
0x1a5e   :  { %v2935_v15 = vpop.xlane.xlu0 %2934 }
0x1a5f   :  { %v2954_v10 = vsub.f32 %v2942_v51, %v2948_v9  ;;  %v2943_v14 = vmul.f32 0.03125, %v2935_v15 }
0x1a60   :  { %v2908_v43 = vpop.xlane.xlu1 %2907 }
0x1a61   :  { %v2960_v0 = vmax.f32 %v2954_v10, 0.0  ;;  %v2955_v48 = vsub.f32 %v2943_v14, %v2949_v33  ;;  %v2914_v11 = vmul.f32 0.03125, %v2908_v43 }
0x1a63   :  { %v2972_v47 = vadd.f32 1e-12, %v2960_v0  ;;  %v2961_v58 = vmax.f32 %v2955_v48, 0.0  ;;  %v2950_v12 = vmul.f32 %v2914_v11, %v2914_v11  ;;  %v2968_v36 = vsub.f32 %v5238_v63, %v2914_v11 }
0x1a64   :  { %v2938_v62 = vpop.xlane.xlu1 %2937 }
0x1a65   :  { %4093 = vrsqrt.f32 %v2972_v47  ;;  %v2973_v17 = vadd.f32 1e-12, %v2961_v58  ;;  %v2944_v13 = vmul.f32 0.03125, %v2938_v62 }
0x1a67   :  { %4095 = vrsqrt.f32 %v2973_v17  ;;  %v2956_v52 = vsub.f32 %v2944_v13, %v2950_v12 }
0x1a69   :  { %v2962_v61 = vmax.f32 %v2956_v52, 0.0 }
0x1a6b   :  { %v2974_v18 = vadd.f32 1e-12, %v2962_v61 }
0x1a6d   :  { %4097 = vrsqrt.f32 %v2974_v18 }
0x1a6f   :  { %v4094_v21 = vpop.eup %4093 }
0x1a70   :  { %v2984_v37 = vmul.f32 %v4094_v21, %v2966_v20 }
0x1a71   :  { %v4096_v23 = vpop.eup %4095 }
0x1a72   :  { %v2996_v2 = vmul.f32 %v5156_v32, %v2984_v37  ;;  %v2985_v49 = vmul.f32 %v4096_v23, %v2967_v25 }
0x1a74   :  { %v3008_v30 = vadd.f32 %v5170_v28, %v2996_v2  ;;  %v2997_v1 = vmul.f32 %v5156_v32, %v2985_v49 }
0x1a76   :  { %v3012_v24 = vpack.c.bf16 %v3008_v30, %v3007_v29  ;;  %v3009_v54 = vadd.f32 %v5170_v28, %v2997_v1 }
0x1a77   :  { %v4098_v45 = vpop.eup %4097 }
0x1a78   :  { %3872 = vmatmul.mubr.msk.bf16.gmra.mrb[84].mxu1 %vm154_vm1, %v3012_v24  ;;  %v2986_v46 = vmul.f32 %v4098_v45, %v2968_v36 }
0x1a79   :  { %3875 = vmatprep.mubr.msk.bf16.mxu1 %vm4143_vm3, %v4142_v16 }
0x1a7a   :  { %v2998_v50 = vmul.f32 %v5156_v32, %v2986_v46 }
0x1a7c   :  { %v3010_v40 = vadd.f32 %v5170_v28, %v2998_v50 }
0x1a7e   :  { %v3013_v55 = vpack.c.bf16 %v3010_v40, %v3009_v54 }
0x1a80   :  { %3876 = vmatmul.mubr.msk.bf16.gmra.mrb[88].mxu1 %vm154_vm1, %v3013_v55 }
0x1a81   :  { %3903 = vmatprep.mubr.msk.bf16.mxu1 %vm4143_vm3, %v4142_v16 }
0x1ab7   :  { %v3188_v59 = vpop.f32.mrb[68].mxu0 }
0x1ab8   :  { %v3211_v60 = vadd.f32 %v3188_v59, %v5117_v7  ;;  %v3889_v42 = vpop.f32.mrb[69].mxu0 }
0x1ab9   :  { %v3191_v32 = vpop.f32.mrb[70].mxu0 }
0x1aba   :  { %v3225_v57 = vadd.f32 %v5270_v31, %v3211_v60  ;;  %v3212_v28 = vadd.f32 %v3191_v32, %v5119_v27  ;;  %v3890_v38 = vpop.f32.mrb[71].mxu0 }
0x1abc   :  { %3231 = vst.msk [vmem:[#allocation2] sm:$0xff] %vm154_vm1, %v3225_v57  ;;  %v3226_v41 = vadd.f32 %v5270_v31, %v3212_v28 }
0x1abe   :  { %3232 = vst.msk [vmem:[#allocation2 + $0x8] sm:$0xff] %vm154_vm1, %v3226_v41 }
0x1b4b   :  { %v3073_v26 = vpop.f32.mrb[84].mxu1 }
0x1b4c   :  { %v3074_v3 = vadd.f32 %v5217_v19, %v3073_v26  ;;  %v3873_v4 = vpop.f32.mrb[85].mxu1 }
0x1b4d   :  { %v3076_v5 = vpop.f32.mrb[86].mxu1 }
0x1b4e   :  { %v3090_v6 = vmul.f32 %v3074_v3, %v3074_v3  ;;  %v3077_v7 = vadd.f32 %v5217_v19, %v3076_v5  ;;  %v3874_v34 = vpop.f32.mrb[87].mxu1 }
0x1b50   :  { %v3096_v9 = vmul.f32 %v3090_v6, %v3074_v3  ;;  %v3091_v51 = vmul.f32 %v3077_v7, %v3077_v7 }
0x1b52   :  { %v3102_v15 = vmul.f32 0.044715, %v3096_v9  ;;  %v3097_v27 = vmul.f32 %v3091_v51, %v3077_v7  ;;  %v3237_v51 = vld [vmem:[#allocation2] sm:$0x1] }
0x1b53   :  { %v3081_v33 = vpop.f32.mrb[88].mxu1 }
0x1b54   :  { %v3108_v10 = vadd.f32 %v3102_v15, %v3074_v3  ;;  %v3103_v14 = vmul.f32 0.044715, %v3097_v27  ;;  %v3082_v43 = vadd.f32 %v5217_v19, %v3081_v33  ;;  %v3877_v0 = vpop.f32.mrb[89].mxu1 }
0x1b55   :  { %v3084_v48 = vpop.f32.mrb[90].mxu1 }
0x1b56   :  { %v3114_v11 = vmul.f32 0.7978846, %v3108_v10  ;;  %v3109_v47 = vadd.f32 %v3103_v14, %v3077_v7  ;;  %v3092_v58 = vmul.f32 %v3082_v43, %v3082_v43  ;;  %v3085_v62 = vadd.f32 %v5217_v19, %v3084_v48  ;;  %v3878_v17 = vpop.f32.mrb[91].mxu1  ;;  %v3280_v14 = vld [vmem:[%s5353_s20 + $0x10] sm:$0xff] }
0x1b58   :  { %4099 = vtanh.f32 %v3114_v11  ;;  %v3115_v12 = vmul.f32 0.7978846, %v3109_v47  ;;  %v3098_v13 = vmul.f32 %v3092_v58, %v3082_v43  ;;  %v3093_v52 = vmul.f32 %v3085_v62, %v3085_v62 }
0x1b5a   :  { %4101 = vtanh.f32 %v3115_v12  ;;  %v3104_v53 = vmul.f32 0.044715, %v3098_v13  ;;  %v3099_v61 = vmul.f32 %v3093_v52, %v3085_v62 }
0x1b5c   :  { %v3110_v8 = vadd.f32 %v3104_v53, %v3082_v43  ;;  %v3105_v18 = vmul.f32 0.044715, %v3099_v61  ;;  %v3475_v61 = vld [vmem:[%s5351_s18] ss:$0 sm:$0xff]  ;;  %s4149_s18 = smov [#allocation3]  }
0x1b5e   :  { %v3116_v56 = vmul.f32 0.7978846, %v3110_v8  ;;  %v3111_v20 = vadd.f32 %v3105_v18, %v3085_v62 }
0x1b60   :  { %4103 = vtanh.f32 %v3116_v56  ;;  %v3117_v21 = vmul.f32 0.7978846, %v3111_v20 }
0x1b62   :  { %v4100_v37 = vpop.eup %4099  ;;  %4105 = vtanh.f32 %v3117_v21  ;;  %v3477_v21 = vld [vmem:[%s5354_s21] ss:$0 sm:$0xff] }
0x1b63   :  { %v3126_v22 = vadd.f32 1.0, %v4100_v37 }
0x1b64   :  { %v4102_v23 = vpop.eup %4101 }
0x1b65   :  { %v3132_v25 = vmul.f32 0.5, %v3126_v22  ;;  %v3127_v19 = vadd.f32 1.0, %v4102_v23 }
0x1b67   :  { %v3133_v2 = vmul.f32 0.5, %v3127_v19  ;;  %v3138_v29 = vmul.f32 %v3132_v25, %v3074_v3 }
0x1b69   :  { %v3139_v30 = vmul.f32 %v3133_v2, %v3077_v7 }
0x1b6a   :  { %v4104_v49 = vpop.eup %4103 }
0x1b6b   :  { %v3128_v36 = vadd.f32 1.0, %v4104_v49  ;;  %v3143_v24 = vpack.c.bf16 %v3139_v30, %v3138_v29 }
0x1b6c   :  { %v4106_v45 = vpop.eup %4105 }
0x1b6d   :  { %v3134_v46 = vmul.f32 0.5, %v3128_v36  ;;  %v3129_v1 = vadd.f32 1.0, %v4106_v45  ;;  %3892 = vmatmul.mubr.msk.bf16.gmra.mrb[72].mxu0 %vm1613_vm7, %v3143_v24 }
0x1b6e   :  { %3895 = vmatprep.mubr.msk.bf16.mxu0 %vm4143_vm3, %v4142_v16 }
0x1b6f   :  { %v3135_v50 = vmul.f32 0.5, %v3129_v1  ;;  %v3140_v54 = vmul.f32 %v3134_v46, %v3082_v43  ;;  %v3281_v43 = vld [vmem:[%s5353_s20 + $0x18] sm:$0xff] }
0x1b70   :  { %v3283_v0 = vpack.c.bf16 %v3281_v43, %v3280_v14 }
0x1b71   :  { %v3141_v40 = vmul.f32 %v3135_v50, %v3085_v62 }
0x1b73   :  { %v3144_v55 = vpack.c.bf16 %v3141_v40, %v3140_v54 }
0x1b75   :  { %3896 = vmatmul.mubr.msk.bf16.gmra.mrb[76].mxu0 %vm1613_vm7, %v3144_v55 }
0x1c40   :  { %v3196_v59 = vpop.f32.mrb[72].mxu0 }
0x1c41   :  { %v3213_v60 = vadd.f32 %v3196_v59, %v5131_v35  ;;  %v3893_v42 = vpop.f32.mrb[73].mxu0 }
0x1c42   :  { %v3199_v32 = vpop.f32.mrb[74].mxu0 }
0x1c43   :  { %v3227_v57 = vadd.f32 %v5270_v31, %v3213_v60  ;;  %v3214_v28 = vadd.f32 %v3199_v32, %v5225_v39  ;;  %v3894_v38 = vpop.f32.mrb[75].mxu0 }
0x1c45   :  { %3233 = vst.msk [vmem:[#allocation2 + $0x10] sm:$0xff] %vm154_vm1, %v3227_v57  ;;  %v3228_v41 = vadd.f32 %v5270_v31, %v3214_v28 }
0x1c47   :  { %3234 = vst.msk [vmem:[#allocation2 + $0x18] sm:$0xff] %vm154_vm1, %v3228_v41 }
0x1c48   :  { %v3204_v26 = vpop.f32.mrb[76].mxu0 }
0x1c49   :  { %v3215_v3 = vadd.f32 %v3204_v26, %v5231_v44  ;;  %v3897_v4 = vpop.f32.mrb[77].mxu0 }
0x1c4a   :  { %v3207_v5 = vpop.f32.mrb[78].mxu0 }
0x1c4b   :  { %v3229_v35 = vadd.f32 %v5270_v31, %v3215_v3  ;;  %v3216_v6 = vadd.f32 %v3207_v5, %v5238_v63  ;;  %v3898_v7 = vpop.f32.mrb[79].mxu0  ;;  %v3278_v63 = vld [vmem:[%s5353_s20] sm:$0xff] }
0x1c4d   :  { %3235 = vst.msk [vmem:[#allocation2 + $0x20] sm:$0xff] %vm154_vm1, %v3229_v35  ;;  %v3230_v39 = vadd.f32 %v5270_v31, %v3216_v6  ;;  %v3279_v31 = vld [vmem:[%s5353_s20 + $0x8] sm:$0xff] }
0x1c4e   :  { %v3238_v34 = vld [vmem:[#allocation2 + $0x18] sm:$0x1]  ;;  %v3282_v10 = vpack.c.bf16 %v3279_v31, %v3278_v63 }
0x1c4f   :  { %3236 = vst.msk [vmem:[#allocation2 + $0x28] sm:$0xff] %vm154_vm1, %v3230_v39  ;;  %v3240_v9 = vrot.slane %v3238_v34, 7 }
0x1c50   :  { %3900 = vmatpush3.bf16.msra.mxu1 %v3282_v10 }
0x1c51   :  { %v3243_v15 = vsel %vm3242_vm8, %v3237_v51, %v3240_v9  ;;  %3901 = vmatprep.subr.bf16.mxu1 %v4142_v16  ;;  %v3476_v16 = vld [vmem:[%s5352_s19] ss:$0 sm:$0xff]  ;;  %s3353_s19 = sshll.u32 %s4149_s18, 4  ;;  %s3354_s19 = int_to_ptr.vmem [resolvable:$true] %s3353_s19 }
0x1c52   :  { %v3247_v44 = vsel %vm3246_vm9, %v3243_v15, 0.0  ;;  %v3251_v27 = vmul.f32 %v3243_v15, %v3243_v15  ;;  %s4118_s21 = scalar_lea.vmem %s3354_s19, 32  ;;  %p4123_p1 = scmp.lt.s32.totalorder %s3354_s19, %s3354_s19 }
0x1c53   :  { %3248 = vadd.xlane.f32.xlu0 %v3247_v44  ;;  %p4119_p0 = scmp.ne.s32.totalorder %s3354_s19, %s4118_s21  ;;  %p4124_p2 = scmp.lt.s32.totalorder %s4118_s21, %s4118_s21 }
0x1c54   :  { %v3252_v33 = vsel %vm3246_vm9, %v3251_v27, 0.0  ;;  %3902 = vmatpush3.bf16.msra.mxu1 %v3283_v0 }
0x1c55   :  { %3253 = vadd.xlane.f32.xlu1 %v3252_v33  ;;  %p4125_p3 = por %p4124_p2, %p4123_p1 }
0x1c57   :  { %p4126_p4 = pnand %p4125_p3, %p4119_p0 }
0x1ce0   :  { %v3249_v48 = vpop.xlane.xlu0 %3248 }
0x1ce1   :  { %v3250_v11 = vmul.f32 0.03125, %v3249_v48 }
0x1ce2   :  { %v3254_v47 = vpop.xlane.xlu1 %3253 }
0x1ce3   :  { %v3256_v58 = vmul.f32 %v3250_v11, %v3250_v11  ;;  %v3255_v62 = vmul.f32 0.03125, %v3254_v47  ;;  %v3259_v52 = vsub.f32 %v3243_v15, %v3250_v11 }
0x1ce5   :  { %v3257_v17 = vsub.f32 %v3255_v62, %v3256_v58 }
0x1ce7   :  { %v3258_v12 = vmax.f32 %v3257_v17, 0.0 }
0x1ce9   :  { %v3260_v13 = vadd.f32 1e-12, %v3258_v12 }
0x1ceb   :  { %4107 = vrsqrt.f32 %v3260_v13 }
0x1cf5   :  { %v4108_v53 = vpop.eup %4107 }
0x1cf6   :  { %v3262_v8 = vmul.f32 %v4108_v53, %v3259_v52 }
0x1cf8   :  { %v3269_v18 = vmul.f32 %v3475_v61, %v3262_v8 }
0x1cfa   :  { %v3276_v56 = vadd.f32 %v3476_v16, %v3269_v18 }
0x1cfc   :  { %v3277_v20 = vpack.c.bf16 %v3276_v56, %v3276_v56 }
0x1cfe   :  { %3904 = vmatmul.mubr.msk.bf16.vlgmr.msra.gmra.mrb[92].mxu1 %vm154_vm1, %v3277_v20 }
0x1dd1   :  { %v3328_v37 = vpop.f32.mrb[92].mxu1 }
0x1dd2   :  { %v3329_v22 = vadd.f32 %v3477_v21, %v3328_v37  ;;  %v3905_v23 = vpop.f32.mrb[93].mxu1 }
0x1dd3   :  { %v3331_v25 = vpop.f32.mrb[94].mxu1 }
0x1dd4   :  { %v3906_v19 = vpop.f32.mrb[95].mxu1  ;;  %v3335_v2 = vsel %vm3334_vm10, %v3329_v22, -inf }
0x1dd5   :  { %3336 = vmax.xlane.f32.xlu0 %v3335_v2 }
0x1e62   :  { %v3337_v29 = vpop.xlane.xlu0 %3336 }
0x1e63   :  { %v3338_v30 = vsub.f32 %v3329_v22, %v3337_v29 }
0x1e65   :  { %v3339_v49 = vmul.f32 1.442695, %v3338_v30 }
0x1e67   :  { %4109 = vpow2.f32 %v3339_v49 }
0x1e71   :  { %v4110_v36 = vpop.eup %4109 }
0x1e72   :  { %v3341_v24 = vsel %vm3334_vm10, %v4110_v36, 0.0 }
0x1e73   :  { %3342 = vadd.xlane.f32.xlu1 %v3341_v24 }
0x1f00   :  { %v3343_v45 = vpop.xlane.xlu1 %3342 }
0x1f01   :  { %4111 = vrcp.f32 %v3343_v45 }
0x1f0b   :  { %v4112_v46 = vpop.eup %4111 }
0x1f0c   :  { %v3345_v1 = vmul.f32 %v4112_v46, %v4110_v36 }
0x1f0e   :  { %3346 = vst [vmem:[#allocation3] sm:$0x3] %v3345_v1 }
0x1f0f   :  { %4129 = shalt.err (!%p4126_p4)
}
0x1f10   :  { %s4130_s10 = scalar_lea.hbm %s5355_s22, 32 }
0x1f11   :  { %p4131_p5 = scmp.ne.s32.totalorder %s5355_s22, %s4130_s10  ;;  %p4134_p6 = scmp.lt.u32.totalorder %s4130_s10, %s5355_s22 }
0x1f13   :  { %p4136_p7 = pnand %p4134_p6, %p4131_p5 }
0x1f15   :  { %4139 = shalt.err (!%p4136_p7)
}
0x1f16   :  { %3356 = dma.vmem_to_hbm [thread:$0]  %s3354_s19, 32, %s5355_s22, [#allocation4]  }
0x1f17   :  { %4140 = dma.done.wait [#allocation4], 32  }
0x1f18   :  { %4141 = vsyncadd [#allocation4], 4294967264 }
0x1f19   :  { %3360 = vsyncpa [#allocation4], 1 }

</bundles_post_ra>
